<compile_context>
chip_gen: v5e
topology: v5e:2x2
jax: 0.10.0
libtpu: 0.0.40
codegen_flags: <defaults>
</compile_context>

<pallas_src>
import functools

import jax
import jax.numpy as jnp
from jax import lax
from jax.experimental import pallas as pl
from jax.experimental.pallas import tpu as pltpu

_MXU_DTYPE = jnp.bfloat16


def _dot(a, b):
    """MXU matmul: bf16 operands, f32 accumulation (fast path on v6e/v7x)."""
    return jnp.dot(a.astype(_MXU_DTYPE), b.astype(_MXU_DTYPE),
                   preferred_element_type=jnp.float32)


def _dot_f32(a, b):
    """Full-precision matmul (decay LoRA / WKV / StateEncoder paths)."""
    return jnp.dot(a, b, preferred_element_type=jnp.float32)


def _sigmoid(x):
    # reciprocal on the EUP slot instead of a VALU divide.
    return pl.reciprocal(1.0 + jnp.exp(-x), approx=True)


def _ln_rows(x, g, b, eps):
    mean = jnp.mean(x, axis=-1, keepdims=True)
    xc = x - mean
    var = jnp.mean(xc * xc, axis=-1, keepdims=True)
    return xc * lax.rsqrt(var + eps) * g + b


def _full_spec(arr):
    nd = arr.ndim
    return pl.BlockSpec(arr.shape, lambda b, _n=nd: (0,) * _n)


def _row(a):
    return a.reshape(1, -1)


def _pick_chunk(T, target=128):
    L = min(T, target)
    while T % L:
        L -= 1
    return L


# -----------------------------------------------------------------------------
# Pallas kernels
# -----------------------------------------------------------------------------
def _layernorm_kernel(eps, x_ref, g_ref, b_ref, o_ref):
    o_ref[...] = _ln_rows(x_ref[...], g_ref[...], b_ref[...], eps).astype(o_ref.dtype)


def layernorm(x2d, gamma, beta, eps=1e-5):
    M, D = x2d.shape
    return pl.pallas_call(
        functools.partial(_layernorm_kernel, float(eps)),
        out_shape=jax.ShapeDtypeStruct((M, D), jnp.float32),
    )(x2d, gamma.reshape(1, D), beta.reshape(1, D))


def _tmix_prep_kernel(ln_eps, x_ref, g1_ref, b1_ref, shift_ref, maa_ref,
                      w1_ref, w2_ref, wr_ref, wk_ref, wv_ref, wg_ref,
                      dw1_ref, dw2_ref, td_ref,
                      r_ref, k_ref, v_ref, g_ref, w_ref):
    # One batch element: x (T, C).  ln1 + token_shift fused in-kernel.
    tm = w2_ref.shape[1]
    x = _ln_rows(x_ref[...], g1_ref[...], b1_ref[...], ln_eps)          # ln1(x)
    # token shift: prev[t] = ln1(x)[t-1], prev[0] = token_shift_state.
    prev = jnp.concatenate([shift_ref[...], x[:-1, :]], axis=0)
    xx = prev - x
    maa = maa_ref[...]                                                   # (6, C)
    xxx = x + xx * maa[0:1, :]
    lo = jnp.tanh(_dot(xxx, w1_ref[...]))                                # (T, 5*TM)
    mixed = []
    for i in range(5):                                                   # static: 5 in-kernel dots
        m_i = _dot(lo[:, i * tm:(i + 1) * tm], w2_ref[i])                # (T, C)
        mixed.append(x + xx * (maa[i + 1:i + 2, :] + m_i))
    xw, xk, xv, xr, xg = mixed
    r_ref[...] = _dot(xr, wr_ref[...]).astype(r_ref.dtype)
    k_ref[...] = _dot(xk, wk_ref[...]).astype(k_ref.dtype)
    v_ref[...] = _dot(xv, wv_ref[...]).astype(v_ref.dtype)
    gg = _dot(xg, wg_ref[...])
    g_ref[...] = (gg * _sigmoid(gg)).astype(g_ref.dtype)                 # SiLU fused
    # decay LoRA stays f32 (feeds exp(-exp(.)))
    ww = _dot_f32(jnp.tanh(_dot_f32(xw, dw1_ref[...])), dw2_ref[...])
    w_ref[...] = (td_ref[...] + ww).astype(w_ref.dtype)


def _wkv6_kernel(H, N, L, r_ref, k_ref, v_ref, w_ref, u_ref, s_ref, o_ref, st_ref):
    # One batch element.  r/k/v/w: (T, H*N); u: (1, H*N); s: (H, N, N) with rows=key,
    # cols=value.  Chunked recurrence: intra-chunk via causal-masked matmuls, (N,N)
    # state carried across chunks in the st_ref scratch.  Output stored per head
    # slice directly (no concats).
    T = r_ref.shape[0]
    nchunks = T // L
    u = u_ref[...]
    st_ref[...] = s_ref[...]

    rows = lax.broadcasted_iota(jnp.int32, (L, L), 0)
    cols = lax.broadcasted_iota(jnp.int32, (L, L), 1)
    tri = (cols <= rows).astype(jnp.float32)        # inclusive cumsum operator
    strict = rows > cols                            # strictly-causal mask

    @pl.loop(0, nchunks)
    def _chunk(c):
        t0 = pl.multiple_of(c * L, L)
        r = r_ref[pl.ds(t0, L), :]
        k = k_ref[pl.ds(t0, L), :]
        v = v_ref[pl.ds(t0, L), :]
        a = -jnp.exp(w_ref[pl.ds(t0, L), :])                     # per-step log-decay (EUP)
        ca = _dot_f32(tri, a)                                    # inclusive cumsum via MXU
        rd = r * jnp.exp(ca - a)                                 # r * exclusive cumulative decay
        kd = k * jnp.exp(-ca)                                    # k / inclusive cumulative decay
        dend = jnp.exp(ca[L - 1:L, :])                           # (1, H*N) total chunk decay
        coef = r * u * k                                         # diagonal (bonus) term, full width
        for h in range(H):                                       # static head loop: matmuls only
            sl = slice(h * N, (h + 1) * N)
            rd_h, v_h = rd[:, sl], v[:, sl]
            kdT = kd[:, sl].T                                    # (N, L)
            S = st_ref[h]                                        # (N, N)  rows=key, cols=value
            att = jnp.where(strict, _dot_f32(rd_h, kdT), 0.0)    # (L, L) intra-chunk
            diag = jnp.sum(coef[:, sl], axis=-1, keepdims=True)  # (L, 1)
            y = _dot_f32(rd_h, S) + _dot_f32(att, v_h) + diag * v_h
            o_ref[pl.ds(t0, L), pl.ds(h * N, N)] = y.astype(o_ref.dtype)
            scale = jnp.broadcast_to(dend[:, sl], (N, N)).T      # per-key row scale
            st_ref[h] = scale * (S + _dot_f32(kdT, v_h))


def _tmix_out_cmix_kernel(H, lnx_eps, y_ref, g_ref, res_ref,
                          lnx_g_ref, lnx_b_ref, wo_ref,
                          ln2_g_ref, ln2_b_ref,
                          fshift_ref, fmk_ref, fmr_ref,
                          fwk_ref, fwv_ref, fwr_ref, o_ref):
    # Fused: GroupNorm(H) -> *g -> output proj -> +residual -> ln2 -> token_shift
    # -> CMix -> +residual.  One batch element.
    y = y_ref[...]                                   # (T, A)
    A = y.shape[-1]
    N = A // H
    segs = []
    for h in range(H):                               # static per-group stats
        seg = y[:, h * N:(h + 1) * N]
        mu = jnp.mean(seg, axis=-1, keepdims=True)
        sc = seg - mu
        var = jnp.mean(sc * sc, axis=-1, keepdims=True)
        segs.append(sc * lax.rsqrt(var + lnx_eps))
    yn = jnp.concatenate(segs, axis=-1) * lnx_g_ref[...] + lnx_b_ref[...]
    x1 = res_ref[...] + _dot(yn * g_ref[...], wo_ref[...])       # post-attention residual

    xl = _ln_rows(x1, ln2_g_ref[...], ln2_b_ref[...], 1e-5)      # ln2 fused
    prev = jnp.concatenate([fshift_ref[...], xl[:-1, :]], axis=0)
    xx = prev - xl
    xk = xl + xx * fmk_ref[...]
    xr = xl + xx * fmr_ref[...]
    kk = _dot(xk, fwk_ref[...])
    kk = jnp.maximum(kk, 0.0)
    kk = kk * kk
    kv = _dot(kk, fwv_ref[...])
    rr = _sigmoid(_dot(xr, fwr_ref[...]))
    o_ref[...] = (x1 + rr * kv).astype(o_ref.dtype)


def _state_enc_kernel(eps, es_ref, w1_ref, b1_ref, g1_ref, bb1_ref,
                      w2_ref, b2_ref, g2_ref, bb2_ref, o_ref):
    # StateEncoder MLP: Linear -> LN -> tanh -> Linear -> LN (f32, tiny one-shot).
    h = _dot_f32(es_ref[...], w1_ref[...]) + b1_ref[...]
    h = jnp.tanh(_ln_rows(h, g1_ref[...], bb1_ref[...], eps))
    h = _dot_f32(h, w2_ref[...]) + b2_ref[...]
    o_ref[...] = _ln_rows(h, g2_ref[...], bb2_ref[...], eps).astype(o_ref.dtype)


# -----------------------------------------------------------------------------
# pallas_call wrappers
# -----------------------------------------------------------------------------
def tmix_prep_call(p, x, args):
    B, T, C = x.shape
    A = args.dim_att
    maa6 = jnp.stack([p["att.time_maa_x"], p["att.time_maa_w"], p["att.time_maa_k"],
                      p["att.time_maa_v"], p["att.time_maa_r"], p["att.time_maa_g"]], axis=0)
    ins = [x,
           _row(p["ln1_g"]), _row(p["ln1_b"]), p["att.token_shift_state"],
           maa6, p["att.time_maa_w1"], p["att.time_maa_w2"],
           p["att.Wr"], p["att.Wk"], p["att.Wv"], p["att.Wg"],
           p["att.time_decay_w1"], p["att.time_decay_w2"], _row(p["att.time_decay"])]
    in_specs = ([pl.BlockSpec((None, T, C), lambda b: (b, 0, 0))]
                + [_full_spec(a) for a in ins[1:]])
    out_spec = pl.BlockSpec((None, T, A), lambda b: (b, 0, 0))
    return pl.pallas_call(
        functools.partial(_tmix_prep_kernel, 1e-5),
        grid=(B,),
        in_specs=in_specs,
        out_specs=tuple(out_spec for _ in range(5)),
        out_shape=tuple(jax.ShapeDtypeStruct((B, T, A), jnp.float32) for _ in range(5)),
        compiler_params=pltpu.CompilerParams(dimension_semantics=("parallel",)),
    )(*ins)


def wkv6(r, k, v, w, u_row, s_kv, chunk=128):
    """RWKV-6 chunked recurrence, shared initial state per head.
    r,k,v,w: (B,T,H*N); u_row: (1,H*N); s_kv: (H,N,N) with rows=key, cols=value."""
    B, T, A = r.shape
    H = s_kv.shape[0]
    N = A // H
    L = _pick_chunk(T, chunk)
    tA = pl.BlockSpec((None, T, A), lambda b: (b, 0, 0))
    return pl.pallas_call(
        functools.partial(_wkv6_kernel, H, N, L),
        grid=(B,),
        in_specs=[tA, tA, tA, tA,
                  pl.BlockSpec((1, A), lambda b: (0, 0)),
                  pl.BlockSpec((H, N, N), lambda b: (0, 0, 0))],
        out_specs=pl.BlockSpec((None, T, A), lambda b: (b, 0, 0)),
        out_shape=jax.ShapeDtypeStruct((B, T, A), jnp.float32),
        scratch_shapes=[pltpu.VMEM((H, N, N), jnp.float32)],
        compiler_params=pltpu.CompilerParams(dimension_semantics=("parallel",)),
    )(r, k, v, w, u_row, s_kv)


def tmix_out_cmix_call(p, y, g, x_res, args):
    B, T, C = x_res.shape
    A = args.dim_att
    H = A // args.head_size_a
    lnx_eps = 1e-5 * float(args.head_size_divisor) ** 2           # static Python float
    ins = [y, g, x_res,
           _row(p["att.ln_x_g"]), _row(p["att.ln_x_b"]), p["att.Wo"],
           _row(p["ln2_g"]), _row(p["ln2_b"]),
           p["ffn.token_shift_state"], _row(p["ffn.time_maa_k"]), _row(p["ffn.time_maa_r"]),
           p["ffn.Wk"], p["ffn.Wv"], p["ffn.Wr"]]
    in_specs = ([pl.BlockSpec((None, T, A), lambda b: (b, 0, 0)),
                 pl.BlockSpec((None, T, A), lambda b: (b, 0, 0)),
                 pl.BlockSpec((None, T, C), lambda b: (b, 0, 0))]
                + [_full_spec(a) for a in ins[3:]])
    return pl.pallas_call(
        functools.partial(_tmix_out_cmix_kernel, H, lnx_eps),
        grid=(B,),
        in_specs=in_specs,
        out_specs=pl.BlockSpec((None, T, C), lambda b: (b, 0, 0)),
        out_shape=jax.ShapeDtypeStruct((B, T, C), jnp.float32),
        compiler_params=pltpu.CompilerParams(dimension_semantics=("parallel",)),
    )(*ins)


def state_encoder_forward(p, N):
    H = p["se.encoded_state"].shape[0]
    out = pl.pallas_call(
        functools.partial(_state_enc_kernel, 1e-5),
        out_shape=jax.ShapeDtypeStruct((H, N * N), jnp.float32),
    )(p["se.encoded_state"],
      p["se.W1"], _row(p["se.b1"]), _row(p["se.ln1_g"]), _row(p["se.ln1_b"]),
      p["se.W2"], _row(p["se.b2"]), _row(p["se.ln2_g"]), _row(p["se.ln2_b"]))
    return out.reshape(H, N, N)      # s[h, value, key] (CUDA wkv6-state layout)


# -----------------------------------------------------------------------------
# Parameters (deterministic init, mirrors the PyTorch __init__)
# -----------------------------------------------------------------------------
class Args:
    n_embd = 64
    n_layer = 4
    dim_att = 64
    dim_ffn = 128
    head_size_a = 32
    head_size_divisor = 8
    dropout = 0.0


def init_params(key, args, layer_id):
    C, A, Ff = args.n_embd, args.dim_att, args.dim_ffn
    N = args.head_size_a
    H = A // N
    r01 = layer_id / (args.n_layer - 1)
    r1a0 = 1.0 - layer_id / args.n_layer

    ks = iter(jax.random.split(key, 40))

    def lin(fan_in, fan_out):
        bound = 1.0 / (fan_in ** 0.5)
        return jax.random.uniform(next(ks), (fan_in, fan_out), jnp.float32, -bound, bound)

    def lin_bias(fan_in, fan_out):
        bound = 1.0 / (fan_in ** 0.5)
        w = jax.random.uniform(next(ks), (fan_in, fan_out), jnp.float32, -bound, bound)
        b = jax.random.uniform(next(ks), (fan_out,), jnp.float32, -bound, bound)
        return w, b

    idx_c = jnp.arange(C, dtype=jnp.float32) / C
    idx_a = jnp.arange(A, dtype=jnp.float32)

    p = {}
    for name in ("ln0", "ln1", "ln2"):
        p[f"{name}_g"] = jnp.ones((C,), jnp.float32)
        p[f"{name}_b"] = jnp.zeros((C,), jnp.float32)

    # --- RWKV_Tmix_x060 ---
    p["att.time_maa_x"] = 1.0 - idx_c ** r1a0
    p["att.time_maa_w"] = 1.0 - idx_c ** r1a0
    p["att.time_maa_k"] = 1.0 - idx_c ** r1a0
    p["att.time_maa_v"] = 1.0 - (idx_c ** r1a0 + 0.3 * r01)
    p["att.time_maa_r"] = 1.0 - idx_c ** (0.5 * r1a0)
    p["att.time_maa_g"] = 1.0 - idx_c ** (0.5 * r1a0)
    p["att.time_maa_w1"] = jax.random.uniform(next(ks), (C, 32 * 5), jnp.float32, -1e-4, 1e-4)
    p["att.time_maa_w2"] = jax.random.uniform(next(ks), (5, 32, C), jnp.float32, -1e-4, 1e-4)
    p["att.time_decay"] = -6.0 + 5.0 * (idx_a / (A - 1)) ** (0.7 + 1.3 * r01)
    p["att.time_decay_w1"] = jax.random.uniform(next(ks), (C, 64), jnp.float32, -1e-4, 1e-4)
    p["att.time_decay_w2"] = jax.random.uniform(next(ks), (64, A), jnp.float32, -1e-4, 1e-4)
    zig = ((jnp.arange(A) + 1) % 3 - 1).astype(jnp.float32) * 0.1
    p["att.time_faaaa"] = (r01 * (1.0 - idx_a / (A - 1)) + zig).reshape(H, N)
    p["att.token_shift_state"] = jnp.zeros((1, C), jnp.float32)
    p["att.Wr"] = lin(C, A)
    p["att.Wk"] = lin(C, A)
    p["att.Wv"] = lin(C, A)
    p["att.Wg"] = lin(C, A)
    p["att.Wo"] = lin(A, C)
    p["att.ln_x_g"] = jnp.ones((A,), jnp.float32)
    p["att.ln_x_b"] = jnp.zeros((A,), jnp.float32)

    # --- StateEncoder ---
    enc, df = 64, 8
    p["se.encoded_state"] = 0.02 * jax.random.normal(next(ks), (H, enc), jnp.float32)
    p["se.W1"], p["se.b1"] = lin_bias(enc, enc * df)
    p["se.W2"], p["se.b2"] = lin_bias(enc * df, N * N)
    p["se.ln1_g"] = jnp.ones((enc * df,), jnp.float32)
    p["se.ln1_b"] = jnp.zeros((enc * df,), jnp.float32)
    p["se.ln2_g"] = jnp.ones((N * N,), jnp.float32)
    p["se.ln2_b"] = jnp.zeros((N * N,), jnp.float32)

    # --- RWKV_CMix_x060 ---
    p["ffn.time_maa_k"] = 1.0 - idx_c ** r1a0
    p["ffn.time_maa_r"] = 1.0 - idx_c ** r1a0
    p["ffn.token_shift_state"] = jnp.zeros((1, C), jnp.float32)
    p["ffn.Wk"] = lin(C, Ff)
    p["ffn.Wr"] = lin(C, C)
    p["ffn.Wv"] = lin(Ff, C)
    return p


# -----------------------------------------------------------------------------
# Forward pass (5 pallas_calls for layer 0; 4 for other layers)
# -----------------------------------------------------------------------------
def block_forward(p, x, args, layer_id):
    B, T, C = x.shape
    A, N = args.dim_att, args.head_size_a
    if layer_id == 0:
        x = layernorm(x.reshape(B * T, C), p["ln0_g"], p["ln0_b"]).reshape(B, T, C)

    # Tmix prep (ln1 + token_shift + mixes + r/k/v/g projections + decay LoRA)
    r, k, v, g, w = tmix_prep_call(p, x, args)

    # Initial state: StateEncoder gives s[h, value, key]; the WKV kernel carries
    # S with rows=key, cols=value, so transpose the last two axes here.
    s_vk = state_encoder_forward(p, N)
    s_kv = jnp.swapaxes(s_vk, 1, 2)
    u_row = p["att.time_faaaa"].reshape(1, A)

    y = wkv6(r, k, v, w, u_row, s_kv)

    # GroupNorm + gate + Wo + residual + ln2 + token_shift + CMix + residual
    return tmix_out_cmix_call(p, y, g, x, args)


# -----------------------------------------------------------------------------
# Pure-JAX reference (exact PyTorch / CUDA-wkv6state semantics)
# -----------------------------------------------------------------------------
def _ln_ref(x, g, b, eps=1e-5):
    mu = x.mean(-1, keepdims=True)
    var = ((x - mu) ** 2).mean(-1, keepdims=True)
    return (x - mu) / jnp.sqrt(var + eps) * g + b


def block_ref(p, x, args, layer_id):
    B, T, C = x.shape
    A, N = args.dim_att, args.head_size_a
    H = A // N
    if layer_id == 0:
        x = _ln_ref(x, p["ln0_g"], p["ln0_b"])

    # --- Tmix ---
    xl = _ln_ref(x, p["ln1_g"], p["ln1_b"])
    shift = jnp.broadcast_to(p["att.token_shift_state"].reshape(1, 1, C), (B, 1, C))
    xx = jnp.concatenate([shift, xl[:, :-1]], axis=1) - xl
    xxx = xl + xx * p["att.time_maa_x"]
    lo = jnp.tanh(xxx @ p["att.time_maa_w1"]).reshape(B, T, 5, -1)
    m = jnp.einsum('btfi,fic->fbtc', lo, p["att.time_maa_w2"])
    xw = xl + xx * (p["att.time_maa_w"] + m[0])
    xk = xl + xx * (p["att.time_maa_k"] + m[1])
    xv = xl + xx * (p["att.time_maa_v"] + m[2])
    xr = xl + xx * (p["att.time_maa_r"] + m[3])
    xg = xl + xx * (p["att.time_maa_g"] + m[4])
    r = xr @ p["att.Wr"]
    k = xk @ p["att.Wk"]
    v = xv @ p["att.Wv"]
    g = jax.nn.silu(xg @ p["att.Wg"])
    w = p["att.time_decay"] + jnp.tanh(xw @ p["att.time_decay_w1"]) @ p["att.time_decay_w2"]

    h1 = jnp.tanh(_ln_ref(p["se.encoded_state"] @ p["se.W1"] + p["se.b1"],
                          p["se.ln1_g"], p["se.ln1_b"]))
    s_vk = _ln_ref(h1 @ p["se.W2"] + p["se.b2"],
                   p["se.ln2_g"], p["se.ln2_b"]).reshape(H, N, N)

    # Step-by-step WKV6 (CUDA wkv6state semantics: s[h, value, key]).
    rh = r.reshape(B, T, H, N)
    kh = k.reshape(B, T, H, N)
    vh = v.reshape(B, T, H, N)
    dh = jnp.exp(-jnp.exp(w.reshape(B, T, H, N)))
    u = p["att.time_faaaa"]
    S = jnp.broadcast_to(s_vk, (B, H, N, N))
    ys = []
    for t in range(T):
        rt, kt, vt, dt = rh[:, t], kh[:, t], vh[:, t], dh[:, t]
        y_t = (jnp.einsum('bhj,bhij->bhi', rt, S)
               + jnp.einsum('bhj,hj,bhj->bh', rt, u, kt)[..., None] * vt)
        ys.append(y_t)
        S = S * dt[:, :, None, :] + vt[:, :, :, None] * kt[:, :, None, :]
    y = jnp.stack(ys, axis=1).reshape(B, T, A)

    eps = 1e-5 * args.head_size_divisor ** 2
    yg = y.reshape(B, T, H, N)
    mu = yg.mean(-1, keepdims=True)
    var = ((yg - mu) ** 2).mean(-1, keepdims=True)
    yn = ((yg - mu) / jnp.sqrt(var + eps)).reshape(B, T, A) * p["att.ln_x_g"] + p["att.ln_x_b"]
    x = x + (yn * g) @ p["att.Wo"]

    # --- CMix ---
    xl2 = _ln_ref(x, p["ln2_g"], p["ln2_b"])
    shift2 = jnp.broadcast_to(p["ffn.token_shift_state"].reshape(1, 1, C), (B, 1, C))
    xx2 = jnp.concatenate([shift2, xl2[:, :-1]], axis=1) - xl2
    xk2 = xl2 + xx2 * p["ffn.time_maa_k"]
    xr2 = xl2 + xx2 * p["ffn.time_maa_r"]
    kk = jnp.maximum(xk2 @ p["ffn.Wk"], 0.0) ** 2
    ffn = jax.nn.sigmoid(xr2 @ p["ffn.Wr"]) * (kk @ p["ffn.Wv"])
    return x + ffn


# -----------------------------------------------------------------------------
if __name__ == "__main__":
    args = Args()
    layer_id = 0
    B, T = 2, 16

    key = jax.random.PRNGKey(0)
    pkey, xkey = jax.random.split(key)
    params = init_params(pkey, args, layer_id)
    x = jax.random.normal(xkey, (B, T, args.n_embd), jnp.float32)

    fwd = jax.jit(lambda p, xx: block_forward(p, xx, args, layer_id))
    out = fwd(params, x)
    jax.block_until_ready(out)

    ref = jax.jit(lambda p, xx: block_ref(p, xx, args, layer_id))(params, x)
    jax.block_until_ready(ref)

    assert out.shape == (B, T, args.n_embd)
    assert bool(jnp.all(jnp.isfinite(out)))
    # bf16-MXU tolerance for the projection matmuls; recurrence/decay paths are f32.
    max_err = float(jnp.max(jnp.abs(out - ref)))
    assert bool(jnp.allclose(out, ref, rtol=5e-2, atol=5e-2)), max_err
    print("KERNEL_OK")
</pallas_src>

<mosaic_0001>
module attributes {stable_mosaic.version = 11 : i64} {
  func.func @_layernorm_kernel(%arg0: memref<32x64xf32, #tpu.memory_space<vmem>>, %arg1: memref<1x64xf32, #tpu.memory_space<vmem>>, %arg2: memref<1x64xf32, #tpu.memory_space<vmem>>, %arg3: memref<32x64xf32, #tpu.memory_space<vmem>>) attributes {dimension_semantics = [], scalar_prefetch = 0 : i64, scratch_operands = 0 : i64, tpu.core_type = #tpu.core_type<tc>} {
    %c0 = arith.constant 0 : index
    %c0_0 = arith.constant 0 : index
    %0 = vector.load %arg0[%c0, %c0_0] : memref<32x64xf32, #tpu.memory_space<vmem>>, vector<32x64xf32>
    %c0_1 = arith.constant 0 : index
    %c0_2 = arith.constant 0 : index
    %1 = vector.load %arg1[%c0_1, %c0_2] : memref<1x64xf32, #tpu.memory_space<vmem>>, vector<1x64xf32>
    %c0_3 = arith.constant 0 : index
    %c0_4 = arith.constant 0 : index
    %2 = vector.load %arg2[%c0_3, %c0_4] : memref<1x64xf32, #tpu.memory_space<vmem>>, vector<1x64xf32>
    %cst = arith.constant dense<0.000000e+00> : vector<32xf32>
    %3 = vector.multi_reduction <add>, %0, %cst [1] : vector<32x64xf32> to vector<32xf32>
    %4 = vector.shape_cast %3 : vector<32xf32> to vector<32x1xf32>
    %cst_5 = arith.constant 6.400000e+01 : f32
    %5 = vector.broadcast %cst_5 : f32 to vector<32x1xf32>
    %6 = arith.divf %4, %5 : vector<32x1xf32>
    %7 = vector.broadcast %6 : vector<32x1xf32> to vector<32x64xf32>
    %8 = arith.subf %0, %7 : vector<32x64xf32>
    %9 = arith.mulf %8, %8 : vector<32x64xf32>
    %cst_6 = arith.constant dense<0.000000e+00> : vector<32xf32>
    %10 = vector.multi_reduction <add>, %9, %cst_6 [1] : vector<32x64xf32> to vector<32xf32>
    %11 = vector.shape_cast %10 : vector<32xf32> to vector<32x1xf32>
    %cst_7 = arith.constant 6.400000e+01 : f32
    %12 = vector.broadcast %cst_7 : f32 to vector<32x1xf32>
    %13 = arith.divf %11, %12 : vector<32x1xf32>
    %cst_8 = arith.constant 9.99999974E-6 : f32
    %14 = vector.broadcast %cst_8 : f32 to vector<32x1xf32>
    %15 = arith.addf %13, %14 : vector<32x1xf32>
    %16 = math.rsqrt %15 : vector<32x1xf32>
    %17 = vector.broadcast %16 : vector<32x1xf32> to vector<32x64xf32>
    %18 = arith.mulf %8, %17 : vector<32x64xf32>
    %19 = vector.broadcast %1 : vector<1x64xf32> to vector<32x64xf32>
    %20 = arith.mulf %18, %19 : vector<32x64xf32>
    %21 = vector.broadcast %2 : vector<1x64xf32> to vector<32x64xf32>
    %22 = arith.addf %20, %21 : vector<32x64xf32>
    %c0_9 = arith.constant 0 : index
    %c0_10 = arith.constant 0 : index
    %23 = vector.load %arg3[%c0_9, %c0_10] : memref<32x64xf32, #tpu.memory_space<vmem>>, vector<32x64xf32>
    tpu.vector_store %arg3[%c0_9, %c0_10], %22 {strides = array<i32>} : memref<32x64xf32, #tpu.memory_space<vmem>>, vector<32x64xf32>,
    return
  }
}

module attributes {stable_mosaic.version = 11 : i64} {
  func.func @_state_enc_kernel(%arg0: memref<2x64xf32, #tpu.memory_space<vmem>>, %arg1: memref<64x512xf32, #tpu.memory_space<vmem>>, %arg2: memref<1x512xf32, #tpu.memory_space<vmem>>, %arg3: memref<1x512xf32, #tpu.memory_space<vmem>>, %arg4: memref<1x512xf32, #tpu.memory_space<vmem>>, %arg5: memref<512x1024xf32, #tpu.memory_space<vmem>>, %arg6: memref<1x1024xf32, #tpu.memory_space<vmem>>, %arg7: memref<1x1024xf32, #tpu.memory_space<vmem>>, %arg8: memref<1x1024xf32, #tpu.memory_space<vmem>>, %arg9: memref<2x1024xf32, #tpu.memory_space<vmem>>) attributes {dimension_semantics = [], scalar_prefetch = 0 : i64, scratch_operands = 0 : i64, tpu.core_type = #tpu.core_type<tc>} {
    %c0 = arith.constant 0 : index
    %c0_0 = arith.constant 0 : index
    %0 = vector.load %arg0[%c0, %c0_0] : memref<2x64xf32, #tpu.memory_space<vmem>>, vector<2x64xf32>
    %c0_1 = arith.constant 0 : index
    %c0_2 = arith.constant 0 : index
    %1 = vector.load %arg1[%c0_1, %c0_2] : memref<64x512xf32, #tpu.memory_space<vmem>>, vector<64x512xf32>
    %cst = arith.constant dense<0.000000e+00> : vector<2x512xf32>
    %2 = tpu.matmul %0, %1, %cst {dimension_numbers = #tpu.dot_dimension_numbers<[1], [0], [0], [1], [0, 0, 1, 1], [], []>} : vector<2x64xf32>, vector<64x512xf32>, vector<2x512xf32> -> vector<2x512xf32>
    %c0_3 = arith.constant 0 : index
    %c0_4 = arith.constant 0 : index
    %3 = vector.load %arg2[%c0_3, %c0_4] : memref<1x512xf32, #tpu.memory_space<vmem>>, vector<1x512xf32>
    %4 = vector.broadcast %3 : vector<1x512xf32> to vector<2x512xf32>
    %5 = arith.addf %2, %4 : vector<2x512xf32>
    %c0_5 = arith.constant 0 : index
    %c0_6 = arith.constant 0 : index
    %6 = vector.load %arg3[%c0_5, %c0_6] : memref<1x512xf32, #tpu.memory_space<vmem>>, vector<1x512xf32>
    %c0_7 = arith.constant 0 : index
    %c0_8 = arith.constant 0 : index
    %7 = vector.load %arg4[%c0_7, %c0_8] : memref<1x512xf32, #tpu.memory_space<vmem>>, vector<1x512xf32>
    %cst_9 = arith.constant dense<0.000000e+00> : vector<2xf32>
    %8 = vector.multi_reduction <add>, %5, %cst_9 [1] : vector<2x512xf32> to vector<2xf32>
    %9 = vector.shape_cast %8 : vector<2xf32> to vector<2x1xf32>
    %cst_10 = arith.constant 5.120000e+02 : f32
    %10 = vector.broadcast %cst_10 : f32 to vector<2x1xf32>
    %11 = arith.divf %9, %10 : vector<2x1xf32>
    %12 = vector.broadcast %11 : vector<2x1xf32> to vector<2x512xf32>
    %13 = arith.subf %5, %12 : vector<2x512xf32>
    %14 = arith.mulf %13, %13 : vector<2x512xf32>
    %cst_11 = arith.constant dense<0.000000e+00> : vector<2xf32>
    %15 = vector.multi_reduction <add>, %14, %cst_11 [1] : vector<2x512xf32> to vector<2xf32>
    %16 = vector.shape_cast %15 : vector<2xf32> to vector<2x1xf32>
    %cst_12 = arith.constant 5.120000e+02 : f32
    %17 = vector.broadcast %cst_12 : f32 to vector<2x1xf32>
    %18 = arith.divf %16, %17 : vector<2x1xf32>
    %cst_13 = arith.constant 9.99999974E-6 : f32
    %19 = vector.broadcast %cst_13 : f32 to vector<2x1xf32>
    %20 = arith.addf %18, %19 : vector<2x1xf32>
    %21 = math.rsqrt %20 : vector<2x1xf32>
    %22 = vector.broadcast %21 : vector<2x1xf32> to vector<2x512xf32>
    %23 = arith.mulf %13, %22 : vector<2x512xf32>
    %24 = vector.broadcast %6 : vector<1x512xf32> to vector<2x512xf32>
    %25 = arith.mulf %23, %24 : vector<2x512xf32>
    %26 = vector.broadcast %7 : vector<1x512xf32> to vector<2x512xf32>
    %27 = arith.addf %25, %26 : vector<2x512xf32>
    %28 = math.tanh %27 : vector<2x512xf32>
    %c0_14 = arith.constant 0 : index
    %c0_15 = arith.constant 0 : index
    %29 = vector.load %arg5[%c0_14, %c0_15] : memref<512x1024xf32, #tpu.memory_space<vmem>>, vector<512x1024xf32>
    %cst_16 = arith.constant dense<0.000000e+00> : vector<2x1024xf32>
    %30 = tpu.matmul %28, %29, %cst_16 {dimension_numbers = #tpu.dot_dimension_numbers<[1], [0], [0], [1], [0, 0, 1, 1], [], []>} : vector<2x512xf32>, vector<512x1024xf32>, vector<2x1024xf32> -> vector<2x1024xf32>
    %c0_17 = arith.constant 0 : index
    %c0_18 = arith.constant 0 : index
    %31 = vector.load %arg6[%c0_17, %c0_18] : memref<1x1024xf32, #tpu.memory_space<vmem>>, vector<1x1024xf32>
    %32 = vector.broadcast %31 : vector<1x1024xf32> to vector<2x1024xf32>
    %33 = arith.addf %30, %32 : vector<2x1024xf32>
    %c0_19 = arith.constant 0 : index
    %c0_20 = arith.constant 0 : index
    %34 = vector.load %arg7[%c0_19, %c0_20] : memref<1x1024xf32, #tpu.memory_space<vmem>>, vector<1x1024xf32>
    %c0_21 = arith.constant 0 : index
    %c0_22 = arith.constant 0 : index
    %35 = vector.load %arg8[%c0_21, %c0_22] : memref<1x1024xf32, #tpu.memory_space<vmem>>, vector<1x1024xf32>
    %cst_23 = arith.constant dense<0.000000e+00> : vector<2xf32>
    %36 = vector.multi_reduction <add>, %33, %cst_23 [1] : vector<2x1024xf32> to vector<2xf32>
    %37 = vector.shape_cast %36 : vector<2xf32> to vector<2x1xf32>
    %cst_24 = arith.constant 1.024000e+03 : f32
    %38 = vector.broadcast %cst_24 : f32 to vector<2x1xf32>
    %39 = arith.divf %37, %38 : vector<2x1xf32>
    %40 = vector.broadcast %39 : vector<2x1xf32> to vector<2x1024xf32>
    %41 = arith.subf %33, %40 : vector<2x1024xf32>
    %42 = arith.mulf %41, %41 : vector<2x1024xf32>
    %cst_25 = arith.constant dense<0.000000e+00> : vector<2xf32>
    %43 = vector.multi_reduction <add>, %42, %cst_25 [1] : vector<2x1024xf32> to vector<2xf32>
    %44 = vector.shape_cast %43 : vector<2xf32> to vector<2x1xf32>
    %cst_26 = arith.constant 1.024000e+03 : f32
    %45 = vector.broadcast %cst_26 : f32 to vector<2x1xf32>
    %46 = arith.divf %44, %45 : vector<2x1xf32>
    %cst_27 = arith.constant 9.99999974E-6 : f32
    %47 = vector.broadcast %cst_27 : f32 to vector<2x1xf32>
    %48 = arith.addf %46, %47 : vector<2x1xf32>
    %49 = math.rsqrt %48 : vector<2x1xf32>
    %50 = vector.broadcast %49 : vector<2x1xf32> to vector<2x1024xf32>
    %51 = arith.mulf %41, %50 : vector<2x1024xf32>
    %52 = vector.broadcast %34 : vector<1x1024xf32> to vector<2x1024xf32>
    %53 = arith.mulf %51, %52 : vector<2x1024xf32>
    %54 = vector.broadcast %35 : vector<1x1024xf32> to vector<2x1024xf32>
    %55 = arith.addf %53, %54 : vector<2x1024xf32>
    %c0_28 = arith.constant 0 : index
    %c0_29 = arith.constant 0 : index
    %56 = vector.load %arg9[%c0_28, %c0_29] : memref<2x1024xf32, #tpu.memory_space<vmem>>, vector<2x1024xf32>
    tpu.vector_store %arg9[%c0_28, %c0_29], %55 {strides = array<i32>} : memref<2x1024xf32, #tpu.memory_space<vmem>>, vector<2x1024xf32>,
    return
  }
}

module attributes {stable_mosaic.version = 11 : i64} {
  func.func @_tmix_prep_kernel(%arg0: i32, %arg1: memref<1x16x64xf32, #tpu.memory_space<vmem>>, %arg2: memref<1x64xf32, #tpu.memory_space<vmem>>, %arg3: memref<1x64xf32, #tpu.memory_space<vmem>>, %arg4: memref<1x64xf32, #tpu.memory_space<vmem>>, %arg5: memref<6x64xf32, #tpu.memory_space<vmem>>, %arg6: memref<64x160xf32, #tpu.memory_space<vmem>>, %arg7: memref<5x32x64xf32, #tpu.memory_space<vmem>>, %arg8: memref<64x64xf32, #tpu.memory_space<vmem>>, %arg9: memref<64x64xf32, #tpu.memory_space<vmem>>, %arg10: memref<64x64xf32, #tpu.memory_space<vmem>>, %arg11: memref<64x64xf32, #tpu.memory_space<vmem>>, %arg12: memref<64x64xf32, #tpu.memory_space<vmem>>, %arg13: memref<64x64xf32, #tpu.memory_space<vmem>>, %arg14: memref<1x64xf32, #tpu.memory_space<vmem>>, %arg15: memref<1x16x64xf32, #tpu.memory_space<vmem>>, %arg16: memref<1x16x64xf32, #tpu.memory_space<vmem>>, %arg17: memref<1x16x64xf32, #tpu.memory_space<vmem>>, %arg18: memref<1x16x64xf32, #tpu.memory_space<vmem>>, %arg19: memref<1x16x64xf32, #tpu.memory_space<vmem>>) attributes {dimension_semantics = [#tpu.dimension_semantics<parallel>], iteration_bounds = array<i64: 2>, scalar_prefetch = 0 : i64, scratch_operands = 0 : i64, tpu.core_type = #tpu.core_type<tc>, window_params = [{transform_indices = @transform_0, window_bounds = array<i64: 1, 16, 64>}, {pipeline_mode = #tpu.pipeline_mode<synchronous>, transform_indices = @transform_1, window_bounds = array<i64: 1, 64>}, {pipeline_mode = #tpu.pipeline_mode<synchronous>, transform_indices = @transform_2, window_bounds = array<i64: 1, 64>}, {pipeline_mode = #tpu.pipeline_mode<synchronous>, transform_indices = @transform_3, window_bounds = array<i64: 1, 64>}, {pipeline_mode = #tpu.pipeline_mode<synchronous>, transform_indices = @transform_4, window_bounds = array<i64: 6, 64>}, {pipeline_mode = #tpu.pipeline_mode<synchronous>, transform_indices = @transform_5, window_bounds = array<i64: 64, 160>}, {pipeline_mode = #tpu.pipeline_mode<synchronous>, transform_indices = @transform_6, window_bounds = array<i64: 5, 32, 64>}, {pipeline_mode = #tpu.pipeline_mode<synchronous>, transform_indices = @transform_7, window_bounds = array<i64: 64, 64>}, {pipeline_mode = #tpu.pipeline_mode<synchronous>, transform_indices = @transform_8, window_bounds = array<i64: 64, 64>}, {pipeline_mode = #tpu.pipeline_mode<synchronous>, transform_indices = @transform_9, window_bounds = array<i64: 64, 64>}, {pipeline_mode = #tpu.pipeline_mode<synchronous>, transform_indices = @transform_10, window_bounds = array<i64: 64, 64>}, {pipeline_mode = #tpu.pipeline_mode<synchronous>, transform_indices = @transform_11, window_bounds = array<i64: 64, 64>}, {pipeline_mode = #tpu.pipeline_mode<synchronous>, transform_indices = @transform_12, window_bounds = array<i64: 64, 64>}, {pipeline_mode = #tpu.pipeline_mode<synchronous>, transform_indices = @transform_13, window_bounds = array<i64: 1, 64>}, {transform_indices = @transform_14, window_bounds = array<i64: 1, 16, 64>}, {transform_indices = @transform_15, window_bounds = array<i64: 1, 16, 64>}, {transform_indices = @transform_16, window_bounds = array<i64: 1, 16, 64>}, {transform_indices = @transform_17, window_bounds = array<i64: 1, 16, 64>}, {transform_indices = @transform_18, window_bounds = array<i64: 1, 16, 64>}]} {
    %c0 = arith.constant 0 : index
    %c0_0 = arith.constant 0 : index
    %c0_1 = arith.constant 0 : index
    %0 = vector.load %arg1[%c0, %c0_0, %c0_1] : memref<1x16x64xf32, #tpu.memory_space<vmem>>, vector<1x16x64xf32>
    %1 = vector.shape_cast %0 : vector<1x16x64xf32> to vector<16x64xf32>
    %c0_2 = arith.constant 0 : index
    %c0_3 = arith.constant 0 : index
    %2 = vector.load %arg2[%c0_2, %c0_3] : memref<1x64xf32, #tpu.memory_space<vmem>>, vector<1x64xf32>
    %c0_4 = arith.constant 0 : index
    %c0_5 = arith.constant 0 : index
    %3 = vector.load %arg3[%c0_4, %c0_5] : memref<1x64xf32, #tpu.memory_space<vmem>>, vector<1x64xf32>
    %cst = arith.constant dense<0.000000e+00> : vector<16xf32>
    %4 = vector.multi_reduction <add>, %1, %cst [1] : vector<16x64xf32> to vector<16xf32>
    %5 = vector.shape_cast %4 : vector<16xf32> to vector<16x1xf32>
    %cst_6 = arith.constant 6.400000e+01 : f32
    %6 = vector.broadcast %cst_6 : f32 to vector<16x1xf32>
    %7 = arith.divf %5, %6 : vector<16x1xf32>
    %8 = vector.broadcast %7 : vector<16x1xf32> to vector<16x64xf32>
    %9 = arith.subf %1, %8 : vector<16x64xf32>
    %10 = arith.mulf %9, %9 : vector<16x64xf32>
    %cst_7 = arith.constant dense<0.000000e+00> : vector<16xf32>
    %11 = vector.multi_reduction <add>, %10, %cst_7 [1] : vector<16x64xf32> to vector<16xf32>
    %12 = vector.shape_cast %11 : vector<16xf32> to vector<16x1xf32>
    %cst_8 = arith.constant 6.400000e+01 : f32
    %13 = vector.broadcast %cst_8 : f32 to vector<16x1xf32>
    %14 = arith.divf %12, %13 : vector<16x1xf32>
    %cst_9 = arith.constant 9.99999974E-6 : f32
    %15 = vector.broadcast %cst_9 : f32 to vector<16x1xf32>
    %16 = arith.addf %14, %15 : vector<16x1xf32>
    %17 = math.rsqrt %16 : vector<16x1xf32>
    %18 = vector.broadcast %17 : vector<16x1xf32> to vector<16x64xf32>
    %19 = arith.mulf %9, %18 : vector<16x64xf32>
    %20 = vector.broadcast %2 : vector<1x64xf32> to vector<16x64xf32>
    %21 = arith.mulf %19, %20 : vector<16x64xf32>
    %22 = vector.broadcast %3 : vector<1x64xf32> to vector<16x64xf32>
    %23 = arith.addf %21, %22 : vector<16x64xf32>
    %c0_10 = arith.constant 0 : index
    %c0_11 = arith.constant 0 : index
    %24 = vector.load %arg4[%c0_10, %c0_11] : memref<1x64xf32, #tpu.memory_space<vmem>>, vector<1x64xf32>
    %25 = vector.extract_strided_slice %23 {offsets = [0, 0], sizes = [15, 64], strides = [1, 1]} : vector<16x64xf32> to vector<15x64xf32>
    %26 = tpu.concatenate %24, %25 in 0 : vector<1x64xf32>, vector<15x64xf32> -> vector<16x64xf32>
    %27 = arith.subf %26, %23 : vector<16x64xf32>
    %c0_12 = arith.constant 0 : index
    %c0_13 = arith.constant 0 : index
    %28 = vector.load %arg5[%c0_12, %c0_13] : memref<6x64xf32, #tpu.memory_space<vmem>>, vector<6x64xf32>
    %29 = vector.extract_strided_slice %28 {offsets = [0, 0], sizes = [1, 64], strides = [1, 1]} : vector<6x64xf32> to vector<1x64xf32>
    %30 = vector.broadcast %29 : vector<1x64xf32> to vector<16x64xf32>
    %31 = arith.mulf %27, %30 : vector<16x64xf32>
    %32 = arith.addf %23, %31 : vector<16x64xf32>
    %c0_14 = arith.constant 0 : index
    %c0_15 = arith.constant 0 : index
    %33 = vector.load %arg6[%c0_14, %c0_15] : memref<64x160xf32, #tpu.memory_space<vmem>>, vector<64x160xf32>
    %34 = arith.truncf %32 : vector<16x64xf32> to vector<16x64xbf16>
    %35 = arith.truncf %33 : vector<64x160xf32> to vector<64x160xbf16>
    %cst_16 = arith.constant dense<0.000000e+00> : vector<16x160xf32>
    %36 = tpu.matmul %34, %35, %cst_16 {dimension_numbers = #tpu.dot_dimension_numbers<[1], [0], [0], [1], [0, 0, 1, 1], [], []>} : vector<16x64xbf16>, vector<64x160xbf16>, vector<16x160xf32> -> vector<16x160xf32>
    %37 = math.tanh %36 : vector<16x160xf32>
    %38 = vector.extract_strided_slice %37 {offsets = [0, 0], sizes = [16, 32], strides = [1, 1]} : vector<16x160xf32> to vector<16x32xf32>
    %c0_17 = arith.constant 0 : index
    %c0_18 = arith.constant 0 : index
    %c0_19 = arith.constant 0 : index
    %39 = vector.load %arg7[%c0_17, %c0_18, %c0_19] : memref<5x32x64xf32, #tpu.memory_space<vmem>>, vector<1x32x64xf32>
    %40 = vector.shape_cast %39 : vector<1x32x64xf32> to vector<32x64xf32>
    %41 = arith.truncf %38 : vector<16x32xf32> to vector<16x32xbf16>
    %42 = arith.truncf %40 : vector<32x64xf32> to vector<32x64xbf16>
    %cst_20 = arith.constant dense<0.000000e+00> : vector<16x64xf32>
    %43 = tpu.matmul %41, %42, %cst_20 {dimension_numbers = #tpu.dot_dimension_numbers<[1], [0], [0], [1], [0, 0, 1, 1], [], []>} : vector<16x32xbf16>, vector<32x64xbf16>, vector<16x64xf32> -> vector<16x64xf32>
    %44 = vector.extract_strided_slice %28 {offsets = [1, 0], sizes = [1, 64], strides = [1, 1]} : vector<6x64xf32> to vector<1x64xf32>
    %45 = vector.broadcast %44 : vector<1x64xf32> to vector<16x64xf32>
    %46 = arith.addf %45, %43 : vector<16x64xf32>
    %47 = arith.mulf %27, %46 : vector<16x64xf32>
    %48 = arith.addf %23, %47 : vector<16x64xf32>
    %49 = vector.extract_strided_slice %37 {offsets = [0, 32], sizes = [16, 32], strides = [1, 1]} : vector<16x160xf32> to vector<16x32xf32>
    %c1 = arith.constant 1 : index
    %c0_21 = arith.constant 0 : index
    %c0_22 = arith.constant 0 : index
    %50 = vector.load %arg7[%c1, %c0_21, %c0_22] : memref<5x32x64xf32, #tpu.memory_space<vmem>>, vector<1x32x64xf32>
    %51 = vector.shape_cast %50 : vector<1x32x64xf32> to vector<32x64xf32>
    %52 = arith.truncf %49 : vector<16x32xf32> to vector<16x32xbf16>
    %53 = arith.truncf %51 : vector<32x64xf32> to vector<32x64xbf16>
    %cst_23 = arith.constant dense<0.000000e+00> : vector<16x64xf32>
    %54 = tpu.matmul %52, %53, %cst_23 {dimension_numbers = #tpu.dot_dimension_numbers<[1], [0], [0], [1], [0, 0, 1, 1], [], []>} : vector<16x32xbf16>, vector<32x64xbf16>, vector<16x64xf32> -> vector<16x64xf32>
    %55 = vector.extract_strided_slice %28 {offsets = [2, 0], sizes = [1, 64], strides = [1, 1]} : vector<6x64xf32> to vector<1x64xf32>
    %56 = vector.broadcast %55 : vector<1x64xf32> to vector<16x64xf32>
    %57 = arith.addf %56, %54 : vector<16x64xf32>
    %58 = arith.mulf %27, %57 : vector<16x64xf32>
    %59 = arith.addf %23, %58 : vector<16x64xf32>
    %60 = vector.extract_strided_slice %37 {offsets = [0, 64], sizes = [16, 32], strides = [1, 1]} : vector<16x160xf32> to vector<16x32xf32>
    %c2 = arith.constant 2 : index
    %c0_24 = arith.constant 0 : index
    %c0_25 = arith.constant 0 : index
    %61 = vector.load %arg7[%c2, %c0_24, %c0_25] : memref<5x32x64xf32, #tpu.memory_space<vmem>>, vector<1x32x64xf32>
    %62 = vector.shape_cast %61 : vector<1x32x64xf32> to vector<32x64xf32>
    %63 = arith.truncf %60 : vector<16x32xf32> to vector<16x32xbf16>
    %64 = arith.truncf %62 : vector<32x64xf32> to vector<32x64xbf16>
    %cst_26 = arith.constant dense<0.000000e+00> : vector<16x64xf32>
    %65 = tpu.matmul %63, %64, %cst_26 {dimension_numbers = #tpu.dot_dimension_numbers<[1], [0], [0], [1], [0, 0, 1, 1], [], []>} : vector<16x32xbf16>, vector<32x64xbf16>, vector<16x64xf32> -> vector<16x64xf32>
    %66 = vector.extract_strided_slice %28 {offsets = [3, 0], sizes = [1, 64], strides = [1, 1]} : vector<6x64xf32> to vector<1x64xf32>
    %67 = vector.broadcast %66 : vector<1x64xf32> to vector<16x64xf32>
    %68 = arith.addf %67, %65 : vector<16x64xf32>
    %69 = arith.mulf %27, %68 : vector<16x64xf32>
    %70 = arith.addf %23, %69 : vector<16x64xf32>
    %71 = vector.extract_strided_slice %37 {offsets = [0, 96], sizes = [16, 32], strides = [1, 1]} : vector<16x160xf32> to vector<16x32xf32>
    %c3 = arith.constant 3 : index
    %c0_27 = arith.constant 0 : index
    %c0_28 = arith.constant 0 : index
    %72 = vector.load %arg7[%c3, %c0_27, %c0_28] : memref<5x32x64xf32, #tpu.memory_space<vmem>>, vector<1x32x64xf32>
    %73 = vector.shape_cast %72 : vector<1x32x64xf32> to vector<32x64xf32>
    %74 = arith.truncf %71 : vector<16x32xf32> to vector<16x32xbf16>
    %75 = arith.truncf %73 : vector<32x64xf32> to vector<32x64xbf16>
    %cst_29 = arith.constant dense<0.000000e+00> : vector<16x64xf32>
    %76 = tpu.matmul %74, %75, %cst_29 {dimension_numbers = #tpu.dot_dimension_numbers<[1], [0], [0], [1], [0, 0, 1, 1], [], []>} : vector<16x32xbf16>, vector<32x64xbf16>, vector<16x64xf32> -> vector<16x64xf32>
    %77 = vector.extract_strided_slice %28 {offsets = [4, 0], sizes = [1, 64], strides = [1, 1]} : vector<6x64xf32> to vector<1x64xf32>
    %78 = vector.broadcast %77 : vector<1x64xf32> to vector<16x64xf32>
    %79 = arith.addf %78, %76 : vector<16x64xf32>
    %80 = arith.mulf %27, %79 : vector<16x64xf32>
    %81 = arith.addf %23, %80 : vector<16x64xf32>
    %82 = vector.extract_strided_slice %37 {offsets = [0, 128], sizes = [16, 32], strides = [1, 1]} : vector<16x160xf32> to vector<16x32xf32>
    %c4 = arith.constant 4 : index
    %c0_30 = arith.constant 0 : index
    %c0_31 = arith.constant 0 : index
    %83 = vector.load %arg7[%c4, %c0_30, %c0_31] : memref<5x32x64xf32, #tpu.memory_space<vmem>>, vector<1x32x64xf32>
    %84 = vector.shape_cast %83 : vector<1x32x64xf32> to vector<32x64xf32>
    %85 = arith.truncf %82 : vector<16x32xf32> to vector<16x32xbf16>
    %86 = arith.truncf %84 : vector<32x64xf32> to vector<32x64xbf16>
    %cst_32 = arith.constant dense<0.000000e+00> : vector<16x64xf32>
    %87 = tpu.matmul %85, %86, %cst_32 {dimension_numbers = #tpu.dot_dimension_numbers<[1], [0], [0], [1], [0, 0, 1, 1], [], []>} : vector<16x32xbf16>, vector<32x64xbf16>, vector<16x64xf32> -> vector<16x64xf32>
    %88 = vector.extract_strided_slice %28 {offsets = [5, 0], sizes = [1, 64], strides = [1, 1]} : vector<6x64xf32> to vector<1x64xf32>
    %89 = vector.broadcast %88 : vector<1x64xf32> to vector<16x64xf32>
    %90 = arith.addf %89, %87 : vector<16x64xf32>
    %91 = arith.mulf %27, %90 : vector<16x64xf32>
    %92 = arith.addf %23, %91 : vector<16x64xf32>
    %c0_33 = arith.constant 0 : index
    %c0_34 = arith.constant 0 : index
    %93 = vector.load %arg8[%c0_33, %c0_34] : memref<64x64xf32, #tpu.memory_space<vmem>>, vector<64x64xf32>
    %94 = arith.truncf %81 : vector<16x64xf32> to vector<16x64xbf16>
    %95 = arith.truncf %93 : vector<64x64xf32> to vector<64x64xbf16>
    %cst_35 = arith.constant dense<0.000000e+00> : vector<16x64xf32>
    %96 = tpu.matmul %94, %95, %cst_35 {dimension_numbers = #tpu.dot_dimension_numbers<[1], [0], [0], [1], [0, 0, 1, 1], [], []>} : vector<16x64xbf16>, vector<64x64xbf16>, vector<16x64xf32> -> vector<16x64xf32>
    %c0_36 = arith.constant 0 : index
    %c0_37 = arith.constant 0 : index
    %c0_38 = arith.constant 0 : index
    %97 = vector.load %arg15[%c0_36, %c0_37, %c0_38] : memref<1x16x64xf32, #tpu.memory_space<vmem>>, vector<1x16x64xf32>
    %98 = vector.shape_cast %97 : vector<1x16x64xf32> to vector<16x64xf32>
    %99 = vector.shape_cast %96 : vector<16x64xf32> to vector<1x16x64xf32>
    tpu.vector_store %arg15[%c0_36, %c0_37, %c0_38], %99 {strides = array<i32>} : memref<1x16x64xf32, #tpu.memory_space<vmem>>, vector<1x16x64xf32>,
    %c0_39 = arith.constant 0 : index
    %c0_40 = arith.constant 0 : index
    %100 = vector.load %arg9[%c0_39, %c0_40] : memref<64x64xf32, #tpu.memory_space<vmem>>, vector<64x64xf32>
    %101 = arith.truncf %59 : vector<16x64xf32> to vector<16x64xbf16>
    %102 = arith.truncf %100 : vector<64x64xf32> to vector<64x64xbf16>
    %cst_41 = arith.constant dense<0.000000e+00> : vector<16x64xf32>
    %103 = tpu.matmul %101, %102, %cst_41 {dimension_numbers = #tpu.dot_dimension_numbers<[1], [0], [0], [1], [0, 0, 1, 1], [], []>} : vector<16x64xbf16>, vector<64x64xbf16>, vector<16x64xf32> -> vector<16x64xf32>
    %c0_42 = arith.constant 0 : index
    %c0_43 = arith.constant 0 : index
    %c0_44 = arith.constant 0 : index
    %104 = vector.load %arg16[%c0_42, %c0_43, %c0_44] : memref<1x16x64xf32, #tpu.memory_space<vmem>>, vector<1x16x64xf32>
    %105 = vector.shape_cast %104 : vector<1x16x64xf32> to vector<16x64xf32>
    %106 = vector.shape_cast %103 : vector<16x64xf32> to vector<1x16x64xf32>
    tpu.vector_store %arg16[%c0_42, %c0_43, %c0_44], %106 {strides = array<i32>} : memref<1x16x64xf32, #tpu.memory_space<vmem>>, vector<1x16x64xf32>,
    %c0_45 = arith.constant 0 : index
    %c0_46 = arith.constant 0 : index
    %107 = vector.load %arg10[%c0_45, %c0_46] : memref<64x64xf32, #tpu.memory_space<vmem>>, vector<64x64xf32>
    %108 = arith.truncf %70 : vector<16x64xf32> to vector<16x64xbf16>
    %109 = arith.truncf %107 : vector<64x64xf32> to vector<64x64xbf16>
    %cst_47 = arith.constant dense<0.000000e+00> : vector<16x64xf32>
    %110 = tpu.matmul %108, %109, %cst_47 {dimension_numbers = #tpu.dot_dimension_numbers<[1], [0], [0], [1], [0, 0, 1, 1], [], []>} : vector<16x64xbf16>, vector<64x64xbf16>, vector<16x64xf32> -> vector<16x64xf32>
    %c0_48 = arith.constant 0 : index
    %c0_49 = arith.constant 0 : index
    %c0_50 = arith.constant 0 : index
    %111 = vector.load %arg17[%c0_48, %c0_49, %c0_50] : memref<1x16x64xf32, #tpu.memory_space<vmem>>, vector<1x16x64xf32>
    %112 = vector.shape_cast %111 : vector<1x16x64xf32> to vector<16x64xf32>
    %113 = vector.shape_cast %110 : vector<16x64xf32> to vector<1x16x64xf32>
    tpu.vector_store %arg17[%c0_48, %c0_49, %c0_50], %113 {strides = array<i32>} : memref<1x16x64xf32, #tpu.memory_space<vmem>>, vector<1x16x64xf32>,
    %c0_51 = arith.constant 0 : index
    %c0_52 = arith.constant 0 : index
    %114 = vector.load %arg11[%c0_51, %c0_52] : memref<64x64xf32, #tpu.memory_space<vmem>>, vector<64x64xf32>
    %115 = arith.truncf %92 : vector<16x64xf32> to vector<16x64xbf16>
    %116 = arith.truncf %114 : vector<64x64xf32> to vector<64x64xbf16>
    %cst_53 = arith.constant dense<0.000000e+00> : vector<16x64xf32>
    %117 = tpu.matmul %115, %116, %cst_53 {dimension_numbers = #tpu.dot_dimension_numbers<[1], [0], [0], [1], [0, 0, 1, 1], [], []>} : vector<16x64xbf16>, vector<64x64xbf16>, vector<16x64xf32> -> vector<16x64xf32>
    %cst_54 = arith.constant 0.000000e+00 : f32
    %118 = vector.broadcast %cst_54 : f32 to vector<16x64xf32>
    %119 = arith.subf %118, %117 : vector<16x64xf32>
    %120 = math.exp %119 : vector<16x64xf32>
    %cst_55 = arith.constant 1.000000e+00 : f32
    %121 = vector.broadcast %cst_55 : f32 to vector<16x64xf32>
    %122 = arith.addf %121, %120 : vector<16x64xf32>
    %123 = tpu.reciprocal %122 {approx = true} : vector<16x64xf32> -> vector<16x64xf32>
    %124 = arith.mulf %117, %123 : vector<16x64xf32>
    %c0_56 = arith.constant 0 : index
    %c0_57 = arith.constant 0 : index
    %c0_58 = arith.constant 0 : index
    %125 = vector.load %arg18[%c0_56, %c0_57, %c0_58] : memref<1x16x64xf32, #tpu.memory_space<vmem>>, vector<1x16x64xf32>
    %126 = vector.shape_cast %125 : vector<1x16x64xf32> to vector<16x64xf32>
    %127 = vector.shape_cast %124 : vector<16x64xf32> to vector<1x16x64xf32>
    tpu.vector_store %arg18[%c0_56, %c0_57, %c0_58], %127 {strides = array<i32>} : memref<1x16x64xf32, #tpu.memory_space<vmem>>, vector<1x16x64xf32>,
    %c0_59 = arith.constant 0 : index
    %c0_60 = arith.constant 0 : index
    %128 = vector.load %arg12[%c0_59, %c0_60] : memref<64x64xf32, #tpu.memory_space<vmem>>, vector<64x64xf32>
    %cst_61 = arith.constant dense<0.000000e+00> : vector<16x64xf32>
    %129 = tpu.matmul %48, %128, %cst_61 {dimension_numbers = #tpu.dot_dimension_numbers<[1], [0], [0], [1], [0, 0, 1, 1], [], []>} : vector<16x64xf32>, vector<64x64xf32>, vector<16x64xf32> -> vector<16x64xf32>
    %130 = math.tanh %129 : vector<16x64xf32>
    %c0_62 = arith.constant 0 : index
    %c0_63 = arith.constant 0 : index
    %131 = vector.load %arg13[%c0_62, %c0_63] : memref<64x64xf32, #tpu.memory_space<vmem>>, vector<64x64xf32>
    %cst_64 = arith.constant dense<0.000000e+00> : vector<16x64xf32>
    %132 = tpu.matmul %130, %131, %cst_64 {dimension_numbers = #tpu.dot_dimension_numbers<[1], [0], [0], [1], [0, 0, 1, 1], [], []>} : vector<16x64xf32>, vector<64x64xf32>, vector<16x64xf32> -> vector<16x64xf32>
    %c0_65 = arith.constant 0 : index
    %c0_66 = arith.constant 0 : index
    %133 = vector.load %arg14[%c0_65, %c0_66] : memref<1x64xf32, #tpu.memory_space<vmem>>, vector<1x64xf32>
    %134 = vector.broadcast %133 : vector<1x64xf32> to vector<16x64xf32>
    %135 = arith.addf %134, %132 : vector<16x64xf32>
    %c0_67 = arith.constant 0 : index
    %c0_68 = arith.constant 0 : index
    %c0_69 = arith.constant 0 : index
    %136 = vector.load %arg19[%c0_67, %c0_68, %c0_69] : memref<1x16x64xf32, #tpu.memory_space<vmem>>, vector<1x16x64xf32>
    %137 = vector.shape_cast %136 : vector<1x16x64xf32> to vector<16x64xf32>
    %138 = vector.shape_cast %135 : vector<16x64xf32> to vector<1x16x64xf32>
    tpu.vector_store %arg19[%c0_67, %c0_68, %c0_69], %138 {strides = array<i32>} : memref<1x16x64xf32, #tpu.memory_space<vmem>>, vector<1x16x64xf32>,
    return
  }
  func.func @transform_0(%arg0: i32) -> (i32, i32, i32) {
    %c0_i32 = arith.constant 0 : i32
    %c0_i32_0 = arith.constant 0 : i32
    %c0_i32_1 = arith.constant 0 : i32
    return %arg0, %c0_i32, %c0_i32_0 : i32, i32, i32
  }
  func.func @transform_1(%arg0: i32) -> (i32, i32) {
    %c0_i32 = arith.constant 0 : i32
    %c0_i32_0 = arith.constant 0 : i32
    %c0_i32_1 = arith.constant 0 : i32
    return %c0_i32, %c0_i32_0 : i32, i32
  }
  func.func @transform_2(%arg0: i32) -> (i32, i32) {
    %c0_i32 = arith.constant 0 : i32
    %c0_i32_0 = arith.constant 0 : i32
    %c0_i32_1 = arith.constant 0 : i32
    return %c0_i32, %c0_i32_0 : i32, i32
  }
  func.func @transform_3(%arg0: i32) -> (i32, i32) {
    %c0_i32 = arith.constant 0 : i32
    %c0_i32_0 = arith.constant 0 : i32
    %c0_i32_1 = arith.constant 0 : i32
    return %c0_i32, %c0_i32_0 : i32, i32
  }
  func.func @transform_4(%arg0: i32) -> (i32, i32) {
    %c0_i32 = arith.constant 0 : i32
    %c0_i32_0 = arith.constant 0 : i32
    %c0_i32_1 = arith.constant 0 : i32
    return %c0_i32, %c0_i32_0 : i32, i32
  }
  func.func @transform_5(%arg0: i32) -> (i32, i32) {
    %c0_i32 = arith.constant 0 : i32
    %c0_i32_0 = arith.constant 0 : i32
    %c0_i32_1 = arith.constant 0 : i32
    return %c0_i32, %c0_i32_0 : i32, i32
  }
  func.func @transform_6(%arg0: i32) -> (i32, i32, i32) {
    %c0_i32 = arith.constant 0 : i32
    %c0_i32_0 = arith.constant 0 : i32
    %c0_i32_1 = arith.constant 0 : i32
    %c0_i32_2 = arith.constant 0 : i32
    return %c0_i32, %c0_i32_0, %c0_i32_1 : i32, i32, i32
  }
  func.func @transform_7(%arg0: i32) -> (i32, i32) {
    %c0_i32 = arith.constant 0 : i32
    %c0_i32_0 = arith.constant 0 : i32
    %c0_i32_1 = arith.constant 0 : i32
    return %c0_i32, %c0_i32_0 : i32, i32
  }
  func.func @transform_8(%arg0: i32) -> (i32, i32) {
    %c0_i32 = arith.constant 0 : i32
    %c0_i32_0 = arith.constant 0 : i32
    %c0_i32_1 = arith.constant 0 : i32
    return %c0_i32, %c0_i32_0 : i32, i32
  }
  func.func @transform_9(%arg0: i32) -> (i32, i32) {
    %c0_i32 = arith.constant 0 : i32
    %c0_i32_0 = arith.constant 0 : i32
    %c0_i32_1 = arith.constant 0 : i32
    return %c0_i32, %c0_i32_0 : i32, i32
  }
  func.func @transform_10(%arg0: i32) -> (i32, i32) {
    %c0_i32 = arith.constant 0 : i32
    %c0_i32_0 = arith.constant 0 : i32
    %c0_i32_1 = arith.constant 0 : i32
    return %c0_i32, %c0_i32_0 : i32, i32
  }
  func.func @transform_11(%arg0: i32) -> (i32, i32) {
    %c0_i32 = arith.constant 0 : i32
    %c0_i32_0 = arith.constant 0 : i32
    %c0_i32_1 = arith.constant 0 : i32
    return %c0_i32, %c0_i32_0 : i32, i32
  }
  func.func @transform_12(%arg0: i32) -> (i32, i32) {
    %c0_i32 = arith.constant 0 : i32
    %c0_i32_0 = arith.constant 0 : i32
    %c0_i32_1 = arith.constant 0 : i32
    return %c0_i32, %c0_i32_0 : i32, i32
  }
  func.func @transform_13(%arg0: i32) -> (i32, i32) {
    %c0_i32 = arith.constant 0 : i32
    %c0_i32_0 = arith.constant 0 : i32
    %c0_i32_1 = arith.constant 0 : i32
    return %c0_i32, %c0_i32_0 : i32, i32
  }
  func.func @transform_14(%arg0: i32) -> (i32, i32, i32) {
    %c0_i32 = arith.constant 0 : i32
    %c0_i32_0 = arith.constant 0 : i32
    %c0_i32_1 = arith.constant 0 : i32
    return %arg0, %c0_i32, %c0_i32_0 : i32, i32, i32
  }
  func.func @transform_15(%arg0: i32) -> (i32, i32, i32) {
    %c0_i32 = arith.constant 0 : i32
    %c0_i32_0 = arith.constant 0 : i32
    %c0_i32_1 = arith.constant 0 : i32
    return %arg0, %c0_i32, %c0_i32_0 : i32, i32, i32
  }
  func.func @transform_16(%arg0: i32) -> (i32, i32, i32) {
    %c0_i32 = arith.constant 0 : i32
    %c0_i32_0 = arith.constant 0 : i32
    %c0_i32_1 = arith.constant 0 : i32
    return %arg0, %c0_i32, %c0_i32_0 : i32, i32, i32
  }
  func.func @transform_17(%arg0: i32) -> (i32, i32, i32) {
    %c0_i32 = arith.constant 0 : i32
    %c0_i32_0 = arith.constant 0 : i32
    %c0_i32_1 = arith.constant 0 : i32
    return %arg0, %c0_i32, %c0_i32_0 : i32, i32, i32
  }
  func.func @transform_18(%arg0: i32) -> (i32, i32, i32) {
    %c0_i32 = arith.constant 0 : i32
    %c0_i32_0 = arith.constant 0 : i32
    %c0_i32_1 = arith.constant 0 : i32
    return %arg0, %c0_i32, %c0_i32_0 : i32, i32, i32
  }
}

module attributes {stable_mosaic.version = 11 : i64} {
  func.func @_wkv6_kernel(%arg0: i32, %arg1: memref<1x16x64xf32, #tpu.memory_space<vmem>>, %arg2: memref<1x16x64xf32, #tpu.memory_space<vmem>>, %arg3: memref<1x16x64xf32, #tpu.memory_space<vmem>>, %arg4: memref<1x16x64xf32, #tpu.memory_space<vmem>>, %arg5: memref<1x64xf32, #tpu.memory_space<vmem>>, %arg6: memref<2x32x32xf32, #tpu.memory_space<vmem>>, %arg7: memref<1x16x64xf32, #tpu.memory_space<vmem>>, %arg8: memref<2x32x32xf32, #tpu.memory_space<vmem>>) attributes {dimension_semantics = [#tpu.dimension_semantics<parallel>], iteration_bounds = array<i64: 2>, scalar_prefetch = 0 : i64, scratch_operands = 1 : i64, tpu.core_type = #tpu.core_type<tc>, window_params = [{transform_indices = @transform_0, window_bounds = array<i64: 1, 16, 64>}, {transform_indices = @transform_1, window_bounds = array<i64: 1, 16, 64>}, {transform_indices = @transform_2, window_bounds = array<i64: 1, 16, 64>}, {transform_indices = @transform_3, window_bounds = array<i64: 1, 16, 64>}, {pipeline_mode = #tpu.pipeline_mode<synchronous>, transform_indices = @transform_4, window_bounds = array<i64: 1, 64>}, {pipeline_mode = #tpu.pipeline_mode<synchronous>, transform_indices = @transform_5, window_bounds = array<i64: 2, 32, 32>}, {transform_indices = @transform_6, window_bounds = array<i64: 1, 16, 64>}]} {
    %c0 = arith.constant 0 : index
    %c0_0 = arith.constant 0 : index
    %0 = vector.load %arg5[%c0, %c0_0] : memref<1x64xf32, #tpu.memory_space<vmem>>, vector<1x64xf32>
    %c0_1 = arith.constant 0 : index
    %c0_2 = arith.constant 0 : index
    %c0_3 = arith.constant 0 : index
    %1 = vector.load %arg6[%c0_1, %c0_2, %c0_3] : memref<2x32x32xf32, #tpu.memory_space<vmem>>, vector<2x32x32xf32>
    %c0_4 = arith.constant 0 : index
    %c0_5 = arith.constant 0 : index
    %c0_6 = arith.constant 0 : index
    %2 = vector.load %arg8[%c0_4, %c0_5, %c0_6] : memref<2x32x32xf32, #tpu.memory_space<vmem>>, vector<2x32x32xf32>
    tpu.vector_store %arg8[%c0_4, %c0_5, %c0_6], %1 {strides = array<i32>} : memref<2x32x32xf32, #tpu.memory_space<vmem>>, vector<2x32x32xf32>,
    %3 = tpu.iota {dimensions = array<i32: 0>} : vector<16x16xi32>
    %4 = tpu.iota {dimensions = array<i32: 1>} : vector<16x16xi32>
    %5 = arith.cmpi sle, %4, %3 : vector<16x16xi32>
    %6 = arith.extui %5 : vector<16x16xi1> to vector<16x16xi32>
    %7 = arith.sitofp %6 : vector<16x16xi32> to vector<16x16xf32>
    %8 = arith.cmpi sgt, %3, %4 : vector<16x16xi32>
    %c0_i32 = arith.constant 0 : i32
    %c1_i32 = arith.constant 1 : i32
    %9 = arith.muli %c0_i32, %c1_i32 : i32
    %c0_i32_7 = arith.constant 0 : i32
    %10 = arith.addi %c0_i32_7, %9 : i32
    %c16_i32 = arith.constant 16 : i32
    %11 = arith.muli %10, %c16_i32 : i32
    %12 = tpu.assume_multiple %11, 16 : i32
    %c0_8 = arith.constant 0 : index
    %13 = arith.index_cast %12 : i32 to index
    %c0_9 = arith.constant 0 : index
    %14 = vector.load %arg1[%c0_8, %13, %c0_9] : memref<1x16x64xf32, #tpu.memory_space<vmem>>, vector<1x16x64xf32>
    %15 = vector.shape_cast %14 : vector<1x16x64xf32> to vector<16x64xf32>
    %c0_10 = arith.constant 0 : index
    %16 = arith.index_cast %12 : i32 to index
    %c0_11 = arith.constant 0 : index
    %17 = vector.load %arg2[%c0_10, %16, %c0_11] : memref<1x16x64xf32, #tpu.memory_space<vmem>>, vector<1x16x64xf32>
    %18 = vector.shape_cast %17 : vector<1x16x64xf32> to vector<16x64xf32>
    %c0_12 = arith.constant 0 : index
    %19 = arith.index_cast %12 : i32 to index
    %c0_13 = arith.constant 0 : index
    %20 = vector.load %arg3[%c0_12, %19, %c0_13] : memref<1x16x64xf32, #tpu.memory_space<vmem>>, vector<1x16x64xf32>
    %21 = vector.shape_cast %20 : vector<1x16x64xf32> to vector<16x64xf32>
    %c0_14 = arith.constant 0 : index
    %22 = arith.index_cast %12 : i32 to index
    %c0_15 = arith.constant 0 : index
    %23 = vector.load %arg4[%c0_14, %22, %c0_15] : memref<1x16x64xf32, #tpu.memory_space<vmem>>, vector<1x16x64xf32>
    %24 = vector.shape_cast %23 : vector<1x16x64xf32> to vector<16x64xf32>
    %25 = math.exp %24 : vector<16x64xf32>
    %cst = arith.constant 0.000000e+00 : f32
    %26 = vector.broadcast %cst : f32 to vector<16x64xf32>
    %27 = arith.subf %26, %25 : vector<16x64xf32>
    %cst_16 = arith.constant dense<0.000000e+00> : vector<16x64xf32>
    %28 = tpu.matmul %7, %27, %cst_16 {dimension_numbers = #tpu.dot_dimension_numbers<[1], [0], [0], [1], [0, 0, 1, 1], [], []>} : vector<16x16xf32>, vector<16x64xf32>, vector<16x64xf32> -> vector<16x64xf32>
    %29 = arith.subf %28, %27 : vector<16x64xf32>
    %30 = math.exp %29 : vector<16x64xf32>
    %31 = arith.mulf %15, %30 : vector<16x64xf32>
    %cst_17 = arith.constant 0.000000e+00 : f32
    %32 = vector.broadcast %cst_17 : f32 to vector<16x64xf32>
    %33 = arith.subf %32, %28 : vector<16x64xf32>
    %34 = math.exp %33 : vector<16x64xf32>
    %35 = arith.mulf %18, %34 : vector<16x64xf32>
    %36 = vector.extract_strided_slice %28 {offsets = [15, 0], sizes = [1, 64], strides = [1, 1]} : vector<16x64xf32> to vector<1x64xf32>
    %37 = math.exp %36 : vector<1x64xf32>
    %38 = vector.broadcast %0 : vector<1x64xf32> to vector<16x64xf32>
    %39 = arith.mulf %15, %38 : vector<16x64xf32>
    %40 = arith.mulf %39, %18 : vector<16x64xf32>
    %41 = vector.extract_strided_slice %31 {offsets = [0, 0], sizes = [16, 32], strides = [1, 1]} : vector<16x64xf32> to vector<16x32xf32>
    %42 = vector.extract_strided_slice %21 {offsets = [0, 0], sizes = [16, 32], strides = [1, 1]} : vector<16x64xf32> to vector<16x32xf32>
    %43 = vector.extract_strided_slice %35 {offsets = [0, 0], sizes = [16, 32], strides = [1, 1]} : vector<16x64xf32> to vector<16x32xf32>
    %44 = tpu.transpose %43, [1, 0] : vector<16x32xf32> -> vector<32x16xf32>
    %c0_18 = arith.constant 0 : index
    %c0_19 = arith.constant 0 : index
    %c0_20 = arith.constant 0 : index
    %45 = vector.load %arg8[%c0_18, %c0_19, %c0_20] : memref<2x32x32xf32, #tpu.memory_space<vmem>>, vector<1x32x32xf32>
    %46 = vector.shape_cast %45 : vector<1x32x32xf32> to vector<32x32xf32>
    %cst_21 = arith.constant dense<0.000000e+00> : vector<16x16xf32>
    %47 = tpu.matmul %41, %44, %cst_21 {dimension_numbers = #tpu.dot_dimension_numbers<[1], [0], [0], [1], [0, 0, 1, 1], [], []>} : vector<16x32xf32>, vector<32x16xf32>, vector<16x16xf32> -> vector<16x16xf32>
    %cst_22 = arith.constant 0.000000e+00 : f32
    %48 = vector.broadcast %cst_22 : f32 to vector<16x16xf32>
    %49 = arith.select %8, %47, %48 : vector<16x16xi1>, vector<16x16xf32>
    %50 = vector.extract_strided_slice %40 {offsets = [0, 0], sizes = [16, 32], strides = [1, 1]} : vector<16x64xf32> to vector<16x32xf32>
    %cst_23 = arith.constant dense<0.000000e+00> : vector<16xf32>
    %51 = vector.multi_reduction <add>, %50, %cst_23 [1] : vector<16x32xf32> to vector<16xf32>
    %52 = vector.shape_cast %51 : vector<16xf32> to vector<16x1xf32>
    %cst_24 = arith.constant dense<0.000000e+00> : vector<16x32xf32>
    %53 = tpu.matmul %41, %46, %cst_24 {dimension_numbers = #tpu.dot_dimension_numbers<[1], [0], [0], [1], [0, 0, 1, 1], [], []>} : vector<16x32xf32>, vector<32x32xf32>, vector<16x32xf32> -> vector<16x32xf32>
    %cst_25 = arith.constant dense<0.000000e+00> : vector<16x32xf32>
    %54 = tpu.matmul %49, %42, %cst_25 {dimension_numbers = #tpu.dot_dimension_numbers<[1], [0], [0], [1], [0, 0, 1, 1], [], []>} : vector<16x16xf32>, vector<16x32xf32>, vector<16x32xf32> -> vector<16x32xf32>
    %55 = arith.addf %53, %54 : vector<16x32xf32>
    %56 = vector.broadcast %52 : vector<16x1xf32> to vector<16x32xf32>
    %57 = arith.mulf %56, %42 : vector<16x32xf32>
    %58 = arith.addf %55, %57 : vector<16x32xf32>
    %c0_26 = arith.constant 0 : index
    %59 = arith.index_cast %12 : i32 to index
    %c0_27 = arith.constant 0 : index
    %60 = vector.load %arg7[%c0_26, %59, %c0_27] : memref<1x16x64xf32, #tpu.memory_space<vmem>>, vector<1x16x32xf32>
    %61 = vector.shape_cast %60 : vector<1x16x32xf32> to vector<16x32xf32>
    %62 = vector.shape_cast %58 : vector<16x32xf32> to vector<1x16x32xf32>
    tpu.vector_store %arg7[%c0_26, %59, %c0_27], %62 {strides = array<i32>} : memref<1x16x64xf32, #tpu.memory_space<vmem>>, vector<1x16x32xf32>,
    %63 = vector.extract_strided_slice %37 {offsets = [0, 0], sizes = [1, 32], strides = [1, 1]} : vector<1x64xf32> to vector<1x32xf32>
    %64 = vector.shape_cast %63 : vector<1x32xf32> to vector<1x32xf32>
    %65 = vector.broadcast %64 : vector<1x32xf32> to vector<32x32xf32>
    %66 = tpu.transpose %65, [1, 0] : vector<32x32xf32> -> vector<32x32xf32>
    %cst_28 = arith.constant dense<0.000000e+00> : vector<32x32xf32>
    %67 = tpu.matmul %44, %42, %cst_28 {dimension_numbers = #tpu.dot_dimension_numbers<[1], [0], [0], [1], [0, 0, 1, 1], [], []>} : vector<32x16xf32>, vector<16x32xf32>, vector<32x32xf32> -> vector<32x32xf32>
    %68 = arith.addf %46, %67 : vector<32x32xf32>
    %69 = arith.mulf %66, %68 : vector<32x32xf32>
    %c0_29 = arith.constant 0 : index
    %c0_30 = arith.constant 0 : index
    %c0_31 = arith.constant 0 : index
    %70 = vector.load %arg8[%c0_29, %c0_30, %c0_31] : memref<2x32x32xf32, #tpu.memory_space<vmem>>, vector<1x32x32xf32>
    %71 = vector.shape_cast %70 : vector<1x32x32xf32> to vector<32x32xf32>
    %72 = vector.shape_cast %69 : vector<32x32xf32> to vector<1x32x32xf32>
    tpu.vector_store %arg8[%c0_29, %c0_30, %c0_31], %72 {strides = array<i32>} : memref<2x32x32xf32, #tpu.memory_space<vmem>>, vector<1x32x32xf32>,
    %73 = vector.extract_strided_slice %31 {offsets = [0, 32], sizes = [16, 32], strides = [1, 1]} : vector<16x64xf32> to vector<16x32xf32>
    %74 = vector.extract_strided_slice %21 {offsets = [0, 32], sizes = [16, 32], strides = [1, 1]} : vector<16x64xf32> to vector<16x32xf32>
    %75 = vector.extract_strided_slice %35 {offsets = [0, 32], sizes = [16, 32], strides = [1, 1]} : vector<16x64xf32> to vector<16x32xf32>
    %76 = tpu.transpose %75, [1, 0] : vector<16x32xf32> -> vector<32x16xf32>
    %c1 = arith.constant 1 : index
    %c0_32 = arith.constant 0 : index
    %c0_33 = arith.constant 0 : index
    %77 = vector.load %arg8[%c1, %c0_32, %c0_33] : memref<2x32x32xf32, #tpu.memory_space<vmem>>, vector<1x32x32xf32>
    %78 = vector.shape_cast %77 : vector<1x32x32xf32> to vector<32x32xf32>
    %cst_34 = arith.constant dense<0.000000e+00> : vector<16x16xf32>
    %79 = tpu.matmul %73, %76, %cst_34 {dimension_numbers = #tpu.dot_dimension_numbers<[1], [0], [0], [1], [0, 0, 1, 1], [], []>} : vector<16x32xf32>, vector<32x16xf32>, vector<16x16xf32> -> vector<16x16xf32>
    %cst_35 = arith.constant 0.000000e+00 : f32
    %80 = vector.broadcast %cst_35 : f32 to vector<16x16xf32>
    %81 = arith.select %8, %79, %80 : vector<16x16xi1>, vector<16x16xf32>
    %82 = vector.extract_strided_slice %40 {offsets = [0, 32], sizes = [16, 32], strides = [1, 1]} : vector<16x64xf32> to vector<16x32xf32>
    %cst_36 = arith.constant dense<0.000000e+00> : vector<16xf32>
    %83 = vector.multi_reduction <add>, %82, %cst_36 [1] : vector<16x32xf32> to vector<16xf32>
    %84 = vector.shape_cast %83 : vector<16xf32> to vector<16x1xf32>
    %cst_37 = arith.constant dense<0.000000e+00> : vector<16x32xf32>
    %85 = tpu.matmul %73, %78, %cst_37 {dimension_numbers = #tpu.dot_dimension_numbers<[1], [0], [0], [1], [0, 0, 1, 1], [], []>} : vector<16x32xf32>, vector<32x32xf32>, vector<16x32xf32> -> vector<16x32xf32>
    %cst_38 = arith.constant dense<0.000000e+00> : vector<16x32xf32>
    %86 = tpu.matmul %81, %74, %cst_38 {dimension_numbers = #tpu.dot_dimension_numbers<[1], [0], [0], [1], [0, 0, 1, 1], [], []>} : vector<16x16xf32>, vector<16x32xf32>, vector<16x32xf32> -> vector<16x32xf32>
    %87 = arith.addf %85, %86 : vector<16x32xf32>
    %88 = vector.broadcast %84 : vector<16x1xf32> to vector<16x32xf32>
    %89 = arith.mulf %88, %74 : vector<16x32xf32>
    %90 = arith.addf %87, %89 : vector<16x32xf32>
    %c0_39 = arith.constant 0 : index
    %91 = arith.index_cast %12 : i32 to index
    %c32 = arith.constant 32 : index
    %92 = vector.load %arg7[%c0_39, %91, %c32] : memref<1x16x64xf32, #tpu.memory_space<vmem>>, vector<1x16x32xf32>
    %93 = vector.shape_cast %92 : vector<1x16x32xf32> to vector<16x32xf32>
    %94 = vector.shape_cast %90 : vector<16x32xf32> to vector<1x16x32xf32>
    tpu.vector_store %arg7[%c0_39, %91, %c32], %94 {strides = array<i32>} : memref<1x16x64xf32, #tpu.memory_space<vmem>>, vector<1x16x32xf32>,
    %95 = vector.extract_strided_slice %37 {offsets = [0, 32], sizes = [1, 32], strides = [1, 1]} : vector<1x64xf32> to vector<1x32xf32>
    %96 = vector.shape_cast %95 : vector<1x32xf32> to vector<1x32xf32>
    %97 = vector.broadcast %96 : vector<1x32xf32> to vector<32x32xf32>
    %98 = tpu.transpose %97, [1, 0] : vector<32x32xf32> -> vector<32x32xf32>
    %cst_40 = arith.constant dense<0.000000e+00> : vector<32x32xf32>
    %99 = tpu.matmul %76, %74, %cst_40 {dimension_numbers = #tpu.dot_dimension_numbers<[1], [0], [0], [1], [0, 0, 1, 1], [], []>} : vector<32x16xf32>, vector<16x32xf32>, vector<32x32xf32> -> vector<32x32xf32>
    %100 = arith.addf %78, %99 : vector<32x32xf32>
    %101 = arith.mulf %98, %100 : vector<32x32xf32>
    %c1_41 = arith.constant 1 : index
    %c0_42 = arith.constant 0 : index
    %c0_43 = arith.constant 0 : index
    %102 = vector.load %arg8[%c1_41, %c0_42, %c0_43] : memref<2x32x32xf32, #tpu.memory_space<vmem>>, vector<1x32x32xf32>
    %103 = vector.shape_cast %102 : vector<1x32x32xf32> to vector<32x32xf32>
    %104 = vector.shape_cast %101 : vector<32x32xf32> to vector<1x32x32xf32>
    tpu.vector_store %arg8[%c1_41, %c0_42, %c0_43], %104 {strides = array<i32>} : memref<2x32x32xf32, #tpu.memory_space<vmem>>, vector<1x32x32xf32>,
    %c1_i32_44 = arith.constant 1 : i32
    return
  }
  func.func @transform_0(%arg0: i32) -> (i32, i32, i32) {
    %c0_i32 = arith.constant 0 : i32
    %c0_i32_0 = arith.constant 0 : i32
    %c0_i32_1 = arith.constant 0 : i32
    return %arg0, %c0_i32, %c0_i32_0 : i32, i32, i32
  }
  func.func @transform_1(%arg0: i32) -> (i32, i32, i32) {
    %c0_i32 = arith.constant 0 : i32
    %c0_i32_0 = arith.constant 0 : i32
    %c0_i32_1 = arith.constant 0 : i32
    return %arg0, %c0_i32, %c0_i32_0 : i32, i32, i32
  }
  func.func @transform_2(%arg0: i32) -> (i32, i32, i32) {
    %c0_i32 = arith.constant 0 : i32
    %c0_i32_0 = arith.constant 0 : i32
    %c0_i32_1 = arith.constant 0 : i32
    return %arg0, %c0_i32, %c0_i32_0 : i32, i32, i32
  }
  func.func @transform_3(%arg0: i32) -> (i32, i32, i32) {
    %c0_i32 = arith.constant 0 : i32
    %c0_i32_0 = arith.constant 0 : i32
    %c0_i32_1 = arith.constant 0 : i32
    return %arg0, %c0_i32, %c0_i32_0 : i32, i32, i32
  }
  func.func @transform_4(%arg0: i32) -> (i32, i32) {
    %c0_i32 = arith.constant 0 : i32
    %c0_i32_0 = arith.constant 0 : i32
    %c0_i32_1 = arith.constant 0 : i32
    return %c0_i32, %c0_i32_0 : i32, i32
  }
  func.func @transform_5(%arg0: i32) -> (i32, i32, i32) {
    %c0_i32 = arith.constant 0 : i32
    %c0_i32_0 = arith.constant 0 : i32
    %c0_i32_1 = arith.constant 0 : i32
    %c0_i32_2 = arith.constant 0 : i32
    return %c0_i32, %c0_i32_0, %c0_i32_1 : i32, i32, i32
  }
  func.func @transform_6(%arg0: i32) -> (i32, i32, i32) {
    %c0_i32 = arith.constant 0 : i32
    %c0_i32_0 = arith.constant 0 : i32
    %c0_i32_1 = arith.constant 0 : i32
    return %arg0, %c0_i32, %c0_i32_0 : i32, i32, i32
  }
}

module attributes {stable_mosaic.version = 11 : i64} {
  func.func @_tmix_out_cmix_kernel(%arg0: i32, %arg1: memref<1x16x64xf32, #tpu.memory_space<vmem>>, %arg2: memref<1x16x64xf32, #tpu.memory_space<vmem>>, %arg3: memref<1x16x64xf32, #tpu.memory_space<vmem>>, %arg4: memref<1x64xf32, #tpu.memory_space<vmem>>, %arg5: memref<1x64xf32, #tpu.memory_space<vmem>>, %arg6: memref<64x64xf32, #tpu.memory_space<vmem>>, %arg7: memref<1x64xf32, #tpu.memory_space<vmem>>, %arg8: memref<1x64xf32, #tpu.memory_space<vmem>>, %arg9: memref<1x64xf32, #tpu.memory_space<vmem>>, %arg10: memref<1x64xf32, #tpu.memory_space<vmem>>, %arg11: memref<1x64xf32, #tpu.memory_space<vmem>>, %arg12: memref<64x128xf32, #tpu.memory_space<vmem>>, %arg13: memref<128x64xf32, #tpu.memory_space<vmem>>, %arg14: memref<64x64xf32, #tpu.memory_space<vmem>>, %arg15: memref<1x16x64xf32, #tpu.memory_space<vmem>>) attributes {dimension_semantics = [#tpu.dimension_semantics<parallel>], iteration_bounds = array<i64: 2>, scalar_prefetch = 0 : i64, scratch_operands = 0 : i64, tpu.core_type = #tpu.core_type<tc>, window_params = [{transform_indices = @transform_0, window_bounds = array<i64: 1, 16, 64>}, {transform_indices = @transform_1, window_bounds = array<i64: 1, 16, 64>}, {transform_indices = @transform_2, window_bounds = array<i64: 1, 16, 64>}, {pipeline_mode = #tpu.pipeline_mode<synchronous>, transform_indices = @transform_3, window_bounds = array<i64: 1, 64>}, {pipeline_mode = #tpu.pipeline_mode<synchronous>, transform_indices = @transform_4, window_bounds = array<i64: 1, 64>}, {pipeline_mode = #tpu.pipeline_mode<synchronous>, transform_indices = @transform_5, window_bounds = array<i64: 64, 64>}, {pipeline_mode = #tpu.pipeline_mode<synchronous>, transform_indices = @transform_6, window_bounds = array<i64: 1, 64>}, {pipeline_mode = #tpu.pipeline_mode<synchronous>, transform_indices = @transform_7, window_bounds = array<i64: 1, 64>}, {pipeline_mode = #tpu.pipeline_mode<synchronous>, transform_indices = @transform_8, window_bounds = array<i64: 1, 64>}, {pipeline_mode = #tpu.pipeline_mode<synchronous>, transform_indices = @transform_9, window_bounds = array<i64: 1, 64>}, {pipeline_mode = #tpu.pipeline_mode<synchronous>, transform_indices = @transform_10, window_bounds = array<i64: 1, 64>}, {pipeline_mode = #tpu.pipeline_mode<synchronous>, transform_indices = @transform_11, window_bounds = array<i64: 64, 128>}, {pipeline_mode = #tpu.pipeline_mode<synchronous>, transform_indices = @transform_12, window_bounds = array<i64: 128, 64>}, {pipeline_mode = #tpu.pipeline_mode<synchronous>, transform_indices = @transform_13, window_bounds = array<i64: 64, 64>}, {transform_indices = @transform_14, window_bounds = array<i64: 1, 16, 64>}]} {
    %c0 = arith.constant 0 : index
    %c0_0 = arith.constant 0 : index
    %c0_1 = arith.constant 0 : index
    %0 = vector.load %arg1[%c0, %c0_0, %c0_1] : memref<1x16x64xf32, #tpu.memory_space<vmem>>, vector<1x16x64xf32>
    %1 = vector.shape_cast %0 : vector<1x16x64xf32> to vector<16x64xf32>
    %2 = vector.extract_strided_slice %1 {offsets = [0, 0], sizes = [16, 32], strides = [1, 1]} : vector<16x64xf32> to vector<16x32xf32>
    %cst = arith.constant dense<0.000000e+00> : vector<16xf32>
    %3 = vector.multi_reduction <add>, %2, %cst [1] : vector<16x32xf32> to vector<16xf32>
    %4 = vector.shape_cast %3 : vector<16xf32> to vector<16x1xf32>
    %cst_2 = arith.constant 3.200000e+01 : f32
    %5 = vector.broadcast %cst_2 : f32 to vector<16x1xf32>
    %6 = arith.divf %4, %5 : vector<16x1xf32>
    %7 = vector.broadcast %6 : vector<16x1xf32> to vector<16x32xf32>
    %8 = arith.subf %2, %7 : vector<16x32xf32>
    %9 = arith.mulf %8, %8 : vector<16x32xf32>
    %cst_3 = arith.constant dense<0.000000e+00> : vector<16xf32>
    %10 = vector.multi_reduction <add>, %9, %cst_3 [1] : vector<16x32xf32> to vector<16xf32>
    %11 = vector.shape_cast %10 : vector<16xf32> to vector<16x1xf32>
    %cst_4 = arith.constant 3.200000e+01 : f32
    %12 = vector.broadcast %cst_4 : f32 to vector<16x1xf32>
    %13 = arith.divf %11, %12 : vector<16x1xf32>
    %cst_5 = arith.constant 6.400000e-04 : f32
    %14 = vector.broadcast %cst_5 : f32 to vector<16x1xf32>
    %15 = arith.addf %13, %14 : vector<16x1xf32>
    %16 = math.rsqrt %15 : vector<16x1xf32>
    %17 = vector.broadcast %16 : vector<16x1xf32> to vector<16x32xf32>
    %18 = arith.mulf %8, %17 : vector<16x32xf32>
    %19 = vector.extract_strided_slice %1 {offsets = [0, 32], sizes = [16, 32], strides = [1, 1]} : vector<16x64xf32> to vector<16x32xf32>
    %cst_6 = arith.constant dense<0.000000e+00> : vector<16xf32>
    %20 = vector.multi_reduction <add>, %19, %cst_6 [1] : vector<16x32xf32> to vector<16xf32>
    %21 = vector.shape_cast %20 : vector<16xf32> to vector<16x1xf32>
    %cst_7 = arith.constant 3.200000e+01 : f32
    %22 = vector.broadcast %cst_7 : f32 to vector<16x1xf32>
    %23 = arith.divf %21, %22 : vector<16x1xf32>
    %24 = vector.broadcast %23 : vector<16x1xf32> to vector<16x32xf32>
    %25 = arith.subf %19, %24 : vector<16x32xf32>
    %26 = arith.mulf %25, %25 : vector<16x32xf32>
    %cst_8 = arith.constant dense<0.000000e+00> : vector<16xf32>
    %27 = vector.multi_reduction <add>, %26, %cst_8 [1] : vector<16x32xf32> to vector<16xf32>
    %28 = vector.shape_cast %27 : vector<16xf32> to vector<16x1xf32>
    %cst_9 = arith.constant 3.200000e+01 : f32
    %29 = vector.broadcast %cst_9 : f32 to vector<16x1xf32>
    %30 = arith.divf %28, %29 : vector<16x1xf32>
    %cst_10 = arith.constant 6.400000e-04 : f32
    %31 = vector.broadcast %cst_10 : f32 to vector<16x1xf32>
    %32 = arith.addf %30, %31 : vector<16x1xf32>
    %33 = math.rsqrt %32 : vector<16x1xf32>
    %34 = vector.broadcast %33 : vector<16x1xf32> to vector<16x32xf32>
    %35 = arith.mulf %25, %34 : vector<16x32xf32>
    %36 = tpu.concatenate %18, %35 in 1 : vector<16x32xf32>, vector<16x32xf32> -> vector<16x64xf32>
    %c0_11 = arith.constant 0 : index
    %c0_12 = arith.constant 0 : index
    %37 = vector.load %arg4[%c0_11, %c0_12] : memref<1x64xf32, #tpu.memory_space<vmem>>, vector<1x64xf32>
    %38 = vector.broadcast %37 : vector<1x64xf32> to vector<16x64xf32>
    %39 = arith.mulf %36, %38 : vector<16x64xf32>
    %c0_13 = arith.constant 0 : index
    %c0_14 = arith.constant 0 : index
    %40 = vector.load %arg5[%c0_13, %c0_14] : memref<1x64xf32, #tpu.memory_space<vmem>>, vector<1x64xf32>
    %41 = vector.broadcast %40 : vector<1x64xf32> to vector<16x64xf32>
    %42 = arith.addf %39, %41 : vector<16x64xf32>
    %c0_15 = arith.constant 0 : index
    %c0_16 = arith.constant 0 : index
    %c0_17 = arith.constant 0 : index
    %43 = vector.load %arg3[%c0_15, %c0_16, %c0_17] : memref<1x16x64xf32, #tpu.memory_space<vmem>>, vector<1x16x64xf32>
    %44 = vector.shape_cast %43 : vector<1x16x64xf32> to vector<16x64xf32>
    %c0_18 = arith.constant 0 : index
    %c0_19 = arith.constant 0 : index
    %c0_20 = arith.constant 0 : index
    %45 = vector.load %arg2[%c0_18, %c0_19, %c0_20] : memref<1x16x64xf32, #tpu.memory_space<vmem>>, vector<1x16x64xf32>
    %46 = vector.shape_cast %45 : vector<1x16x64xf32> to vector<16x64xf32>
    %47 = arith.mulf %42, %46 : vector<16x64xf32>
    %c0_21 = arith.constant 0 : index
    %c0_22 = arith.constant 0 : index
    %48 = vector.load %arg6[%c0_21, %c0_22] : memref<64x64xf32, #tpu.memory_space<vmem>>, vector<64x64xf32>
    %49 = arith.truncf %47 : vector<16x64xf32> to vector<16x64xbf16>
    %50 = arith.truncf %48 : vector<64x64xf32> to vector<64x64xbf16>
    %cst_23 = arith.constant dense<0.000000e+00> : vector<16x64xf32>
    %51 = tpu.matmul %49, %50, %cst_23 {dimension_numbers = #tpu.dot_dimension_numbers<[1], [0], [0], [1], [0, 0, 1, 1], [], []>} : vector<16x64xbf16>, vector<64x64xbf16>, vector<16x64xf32> -> vector<16x64xf32>
    %52 = arith.addf %44, %51 : vector<16x64xf32>
    %c0_24 = arith.constant 0 : index
    %c0_25 = arith.constant 0 : index
    %53 = vector.load %arg7[%c0_24, %c0_25] : memref<1x64xf32, #tpu.memory_space<vmem>>, vector<1x64xf32>
    %c0_26 = arith.constant 0 : index
    %c0_27 = arith.constant 0 : index
    %54 = vector.load %arg8[%c0_26, %c0_27] : memref<1x64xf32, #tpu.memory_space<vmem>>, vector<1x64xf32>
    %cst_28 = arith.constant dense<0.000000e+00> : vector<16xf32>
    %55 = vector.multi_reduction <add>, %52, %cst_28 [1] : vector<16x64xf32> to vector<16xf32>
    %56 = vector.shape_cast %55 : vector<16xf32> to vector<16x1xf32>
    %cst_29 = arith.constant 6.400000e+01 : f32
    %57 = vector.broadcast %cst_29 : f32 to vector<16x1xf32>
    %58 = arith.divf %56, %57 : vector<16x1xf32>
    %59 = vector.broadcast %58 : vector<16x1xf32> to vector<16x64xf32>
    %60 = arith.subf %52, %59 : vector<16x64xf32>
    %61 = arith.mulf %60, %60 : vector<16x64xf32>
    %cst_30 = arith.constant dense<0.000000e+00> : vector<16xf32>
    %62 = vector.multi_reduction <add>, %61, %cst_30 [1] : vector<16x64xf32> to vector<16xf32>
    %63 = vector.shape_cast %62 : vector<16xf32> to vector<16x1xf32>
    %cst_31 = arith.constant 6.400000e+01 : f32
    %64 = vector.broadcast %cst_31 : f32 to vector<16x1xf32>
    %65 = arith.divf %63, %64 : vector<16x1xf32>
    %cst_32 = arith.constant 9.99999974E-6 : f32
    %66 = vector.broadcast %cst_32 : f32 to vector<16x1xf32>
    %67 = arith.addf %65, %66 : vector<16x1xf32>
    %68 = math.rsqrt %67 : vector<16x1xf32>
    %69 = vector.broadcast %68 : vector<16x1xf32> to vector<16x64xf32>
    %70 = arith.mulf %60, %69 : vector<16x64xf32>
    %71 = vector.broadcast %53 : vector<1x64xf32> to vector<16x64xf32>
    %72 = arith.mulf %70, %71 : vector<16x64xf32>
    %73 = vector.broadcast %54 : vector<1x64xf32> to vector<16x64xf32>
    %74 = arith.addf %72, %73 : vector<16x64xf32>
    %c0_33 = arith.constant 0 : index
    %c0_34 = arith.constant 0 : index
    %75 = vector.load %arg9[%c0_33, %c0_34] : memref<1x64xf32, #tpu.memory_space<vmem>>, vector<1x64xf32>
    %76 = vector.extract_strided_slice %74 {offsets = [0, 0], sizes = [15, 64], strides = [1, 1]} : vector<16x64xf32> to vector<15x64xf32>
    %77 = tpu.concatenate %75, %76 in 0 : vector<1x64xf32>, vector<15x64xf32> -> vector<16x64xf32>
    %78 = arith.subf %77, %74 : vector<16x64xf32>
    %c0_35 = arith.constant 0 : index
    %c0_36 = arith.constant 0 : index
    %79 = vector.load %arg10[%c0_35, %c0_36] : memref<1x64xf32, #tpu.memory_space<vmem>>, vector<1x64xf32>
    %80 = vector.broadcast %79 : vector<1x64xf32> to vector<16x64xf32>
    %81 = arith.mulf %78, %80 : vector<16x64xf32>
    %82 = arith.addf %74, %81 : vector<16x64xf32>
    %c0_37 = arith.constant 0 : index
    %c0_38 = arith.constant 0 : index
    %83 = vector.load %arg11[%c0_37, %c0_38] : memref<1x64xf32, #tpu.memory_space<vmem>>, vector<1x64xf32>
    %84 = vector.broadcast %83 : vector<1x64xf32> to vector<16x64xf32>
    %85 = arith.mulf %78, %84 : vector<16x64xf32>
    %86 = arith.addf %74, %85 : vector<16x64xf32>
    %c0_39 = arith.constant 0 : index
    %c0_40 = arith.constant 0 : index
    %87 = vector.load %arg12[%c0_39, %c0_40] : memref<64x128xf32, #tpu.memory_space<vmem>>, vector<64x128xf32>
    %88 = arith.truncf %82 : vector<16x64xf32> to vector<16x64xbf16>
    %89 = arith.truncf %87 : vector<64x128xf32> to vector<64x128xbf16>
    %cst_41 = arith.constant dense<0.000000e+00> : vector<16x128xf32>
    %90 = tpu.matmul %88, %89, %cst_41 {dimension_numbers = #tpu.dot_dimension_numbers<[1], [0], [0], [1], [0, 0, 1, 1], [], []>} : vector<16x64xbf16>, vector<64x128xbf16>, vector<16x128xf32> -> vector<16x128xf32>
    %cst_42 = arith.constant 0.000000e+00 : f32
    %91 = vector.broadcast %cst_42 : f32 to vector<16x128xf32>
    %92 = arith.maximumf %90, %91 : vector<16x128xf32>
    %93 = arith.mulf %92, %92 : vector<16x128xf32>
    %c0_43 = arith.constant 0 : index
    %c0_44 = arith.constant 0 : index
    %94 = vector.load %arg13[%c0_43, %c0_44] : memref<128x64xf32, #tpu.memory_space<vmem>>, vector<128x64xf32>
    %95 = arith.truncf %93 : vector<16x128xf32> to vector<16x128xbf16>
    %96 = arith.truncf %94 : vector<128x64xf32> to vector<128x64xbf16>
    %cst_45 = arith.constant dense<0.000000e+00> : vector<16x64xf32>
    %97 = tpu.matmul %95, %96, %cst_45 {dimension_numbers = #tpu.dot_dimension_numbers<[1], [0], [0], [1], [0, 0, 1, 1], [], []>} : vector<16x128xbf16>, vector<128x64xbf16>, vector<16x64xf32> -> vector<16x64xf32>
    %c0_46 = arith.constant 0 : index
    %c0_47 = arith.constant 0 : index
    %98 = vector.load %arg14[%c0_46, %c0_47] : memref<64x64xf32, #tpu.memory_space<vmem>>, vector<64x64xf32>
    %99 = arith.truncf %86 : vector<16x64xf32> to vector<16x64xbf16>
    %100 = arith.truncf %98 : vector<64x64xf32> to vector<64x64xbf16>
    %cst_48 = arith.constant dense<0.000000e+00> : vector<16x64xf32>
    %101 = tpu.matmul %99, %100, %cst_48 {dimension_numbers = #tpu.dot_dimension_numbers<[1], [0], [0], [1], [0, 0, 1, 1], [], []>} : vector<16x64xbf16>, vector<64x64xbf16>, vector<16x64xf32> -> vector<16x64xf32>
    %cst_49 = arith.constant 0.000000e+00 : f32
    %102 = vector.broadcast %cst_49 : f32 to vector<16x64xf32>
    %103 = arith.subf %102, %101 : vector<16x64xf32>
    %104 = math.exp %103 : vector<16x64xf32>
    %cst_50 = arith.constant 1.000000e+00 : f32
    %105 = vector.broadcast %cst_50 : f32 to vector<16x64xf32>
    %106 = arith.addf %105, %104 : vector<16x64xf32>
    %107 = tpu.reciprocal %106 {approx = true} : vector<16x64xf32> -> vector<16x64xf32>
    %108 = arith.mulf %107, %97 : vector<16x64xf32>
    %109 = arith.addf %52, %108 : vector<16x64xf32>
    %c0_51 = arith.constant 0 : index
    %c0_52 = arith.constant 0 : index
    %c0_53 = arith.constant 0 : index
    %110 = vector.load %arg15[%c0_51, %c0_52, %c0_53] : memref<1x16x64xf32, #tpu.memory_space<vmem>>, vector<1x16x64xf32>
    %111 = vector.shape_cast %110 : vector<1x16x64xf32> to vector<16x64xf32>
    %112 = vector.shape_cast %109 : vector<16x64xf32> to vector<1x16x64xf32>
    tpu.vector_store %arg15[%c0_51, %c0_52, %c0_53], %112 {strides = array<i32>} : memref<1x16x64xf32, #tpu.memory_space<vmem>>, vector<1x16x64xf32>,
    return
  }
  func.func @transform_0(%arg0: i32) -> (i32, i32, i32) {
    %c0_i32 = arith.constant 0 : i32
    %c0_i32_0 = arith.constant 0 : i32
    %c0_i32_1 = arith.constant 0 : i32
    return %arg0, %c0_i32, %c0_i32_0 : i32, i32, i32
  }
  func.func @transform_1(%arg0: i32) -> (i32, i32, i32) {
    %c0_i32 = arith.constant 0 : i32
    %c0_i32_0 = arith.constant 0 : i32
    %c0_i32_1 = arith.constant 0 : i32
    return %arg0, %c0_i32, %c0_i32_0 : i32, i32, i32
  }
  func.func @transform_2(%arg0: i32) -> (i32, i32, i32) {
    %c0_i32 = arith.constant 0 : i32
    %c0_i32_0 = arith.constant 0 : i32
    %c0_i32_1 = arith.constant 0 : i32
    return %arg0, %c0_i32, %c0_i32_0 : i32, i32, i32
  }
  func.func @transform_3(%arg0: i32) -> (i32, i32) {
    %c0_i32 = arith.constant 0 : i32
    %c0_i32_0 = arith.constant 0 : i32
    %c0_i32_1 = arith.constant 0 : i32
    return %c0_i32, %c0_i32_0 : i32, i32
  }
  func.func @transform_4(%arg0: i32) -> (i32, i32) {
    %c0_i32 = arith.constant 0 : i32
    %c0_i32_0 = arith.constant 0 : i32
    %c0_i32_1 = arith.constant 0 : i32
    return %c0_i32, %c0_i32_0 : i32, i32
  }
  func.func @transform_5(%arg0: i32) -> (i32, i32) {
    %c0_i32 = arith.constant 0 : i32
    %c0_i32_0 = arith.constant 0 : i32
    %c0_i32_1 = arith.constant 0 : i32
    return %c0_i32, %c0_i32_0 : i32, i32
  }
  func.func @transform_6(%arg0: i32) -> (i32, i32) {
    %c0_i32 = arith.constant 0 : i32
    %c0_i32_0 = arith.constant 0 : i32
    %c0_i32_1 = arith.constant 0 : i32
    return %c0_i32, %c0_i32_0 : i32, i32
  }
  func.func @transform_7(%arg0: i32) -> (i32, i32) {
    %c0_i32 = arith.constant 0 : i32
    %c0_i32_0 = arith.constant 0 : i32
    %c0_i32_1 = arith.constant 0 : i32
    return %c0_i32, %c0_i32_0 : i32, i32
  }
  func.func @transform_8(%arg0: i32) -> (i32, i32) {
    %c0_i32 = arith.constant 0 : i32
    %c0_i32_0 = arith.constant 0 : i32
    %c0_i32_1 = arith.constant 0 : i32
    return %c0_i32, %c0_i32_0 : i32, i32
  }
  func.func @transform_9(%arg0: i32) -> (i32, i32) {
    %c0_i32 = arith.constant 0 : i32
    %c0_i32_0 = arith.constant 0 : i32
    %c0_i32_1 = arith.constant 0 : i32
    return %c0_i32, %c0_i32_0 : i32, i32
  }
  func.func @transform_10(%arg0: i32) -> (i32, i32) {
    %c0_i32 = arith.constant 0 : i32
    %c0_i32_0 = arith.constant 0 : i32
    %c0_i32_1 = arith.constant 0 : i32
    return %c0_i32, %c0_i32_0 : i32, i32
  }
  func.func @transform_11(%arg0: i32) -> (i32, i32) {
    %c0_i32 = arith.constant 0 : i32
    %c0_i32_0 = arith.constant 0 : i32
    %c0_i32_1 = arith.constant 0 : i32
    return %c0_i32, %c0_i32_0 : i32, i32
  }
  func.func @transform_12(%arg0: i32) -> (i32, i32) {
    %c0_i32 = arith.constant 0 : i32
    %c0_i32_0 = arith.constant 0 : i32
    %c0_i32_1 = arith.constant 0 : i32
    return %c0_i32, %c0_i32_0 : i32, i32
  }
  func.func @transform_13(%arg0: i32) -> (i32, i32) {
    %c0_i32 = arith.constant 0 : i32
    %c0_i32_0 = arith.constant 0 : i32
    %c0_i32_1 = arith.constant 0 : i32
    return %c0_i32, %c0_i32_0 : i32, i32
  }
  func.func @transform_14(%arg0: i32) -> (i32, i32, i32) {
    %c0_i32 = arith.constant 0 : i32
    %c0_i32_0 = arith.constant 0 : i32
    %c0_i32_1 = arith.constant 0 : i32
    return %arg0, %c0_i32, %c0_i32_0 : i32, i32, i32
  }
}

</mosaic_0001>

<bundles_post_ra>
// kernel: _lambda_.5
= control target key start
LH: loop header
LB: loop body
LE: loop exit
PB: predicated region body
PF: predicated region fallthrough
CT: control target
= control target key end

     0   :  { %8 = vsyncpa [#allocation3], 0  ;;  %s351_s0 = inlined_call_operand.hbm [shape: f32[32,64], index: 0, kind: input, shape index: {}]   ;;  %s352_s1 = inlined_call_operand.hbm [shape: f32[1,64], index: 1, kind: input, shape index: {}]   ;;  %s353_s2 = inlined_call_operand.hbm [shape: f32[1,64], index: 2, kind: input, shape index: {}]   ;;  %s354_s3 = inlined_call_operand.vmem [shape: f32[32,64], index: 3, kind: output, shape index: {}]  }
   0x1   :  { %9 = vsyncpa [#allocation5], 0  ;;  %s28_s14 = sshll.u32 %s352_s1, 4  ;;  %s277_s15 = smov [#allocation4]   ;;  %s29_s14 = int_to_ptr.hbm [resolvable:$true] %s28_s14 }
   0x2   :  { %s30_s16 = sshll.u32 %s277_s15, 4  ;;  %s14_s19 = sshll.u32 %s351_s0, 4  ;;  %s31_s16 = int_to_ptr.vmem [resolvable:$true] %s30_s16  ;;  %s15_s19 = int_to_ptr.hbm [resolvable:$true] %s14_s19 }
   0x3   :  { %33 = dma.hbm_to_vmem [thread:$0]  %s29_s14, 16, %s31_s16, [#allocation5]  }
   0x4   :  { %s278_s20 = smov [#allocation2]   ;;  %s279_s22 = smov 128  }
   0x5   :  { %s16_s21 = sshll.u32 %s278_s20, 4  ;;  %s280_s23 = smov 8   ;;  %s17_s21 = int_to_ptr.vmem [resolvable:$true] %s16_s21 }
   0x6   :  { %22 = dma.hbm_to_vmem [thread:$0]  %s15_s19, 512, %s17_s21, [#allocation3], %s279_s22, %s279_s22, %s280_s23  }
   0x7   :  { %s39_s1 = sshll.u32 %s353_s2, 4  ;;  %s281_s26 = smov [#allocation6]   ;;  %s40_s1 = int_to_ptr.hbm [resolvable:$true] %s39_s1 }
   0x8   :  { %s41_s27 = sshll.u32 %s281_s26, 4  ;;  %s42_s27 = int_to_ptr.vmem [resolvable:$true] %s41_s27 }
   0x9   :  { %44 = dma.hbm_to_vmem [thread:$0]  %s40_s1, 16, %s42_s27, [#allocation5]  }
   0xa   :  { %273 = dma.done.wait [#allocation3], 512  }
   0xb   :  { %274 = vsyncadd [#allocation3], 4294966784 }
   0xc   :  { %275 = dma.done.wait [#allocation5], 32  }
   0xd   :  { %276 = vsyncadd [#allocation5], 4294967264  ;;  %vm63_vm0 = vcmask 523264   ;;  %v59_v0 = vld [vmem:[#allocation2 + $0x10] sm:$0xff]  ;;  %v57_v1 = vld [vmem:[#allocation2] sm:$0xff]  ;;  %v282_v8 = vmov 64.0  }
   0xe   :  { %v70_v2 = vsel %vm63_vm0, %v59_v0, 0.0  ;;  %v64_v3 = vsel %vm63_vm0, %v57_v1, 0.0  ;;  %v60_v4 = vld [vmem:[#allocation2 + $0x18] sm:$0xff]  ;;  %v58_v5 = vld [vmem:[#allocation2 + $0x8] sm:$0xff]  ;;  %191 = vrcp.f32 %v282_v8  ;;  %v189_v61 = vld [vmem:[#allocation4] ss:$0 sm:$0xff] }
   0xf   :  { %71 = vadd.xlane.f32.xlu1 %v70_v2  ;;  %65 = vadd.xlane.f32.xlu0 %v64_v3  ;;  %v73_v6 = vsel %vm63_vm0, %v60_v4, 0.0  ;;  %v67_v7 = vsel %vm63_vm0, %v58_v5, 0.0  ;;  %v190_v2 = vld [vmem:[#allocation6] ss:$0 sm:$0xff] }
  0x14   :  { %v192_v9 = vpop.eup %191 }
  0x15   :  { %v77_v10 = vmul.f32 64.0, %v192_v9  ;;  %vm81_vm1 = vweird.f32 %v192_v9 }
  0x17   :  { %74 = vadd.xlane.f32.xlu1 %v73_v6  ;;  %68 = vadd.xlane.f32.xlu0 %v67_v7  ;;  %v78_v11 = vsub.f32 1.0, %v77_v10 }
  0x19   :  { %v79_v12 = vmul.f32 %v192_v9, %v78_v11 }
  0x1b   :  { %v80_v13 = vadd.f32 %v192_v9, %v79_v12 }
  0x1d   :  { %v82_v14 = vsel %vm81_vm1, %v192_v9, %v80_v13 }
  0x82   :  { %v72_v15 = vpop.xlane.xlu1 %71  ;;  %v66_v16 = vpop.xlane.xlu0 %65 }
  0x83   :  { %v85_v17 = vmul.f32 %v82_v14, %v72_v15  ;;  %v83_v18 = vmul.f32 %v82_v14, %v66_v16 }
  0x85   :  { %v316_v19 = vsub.f32 %v59_v0, %v85_v17  ;;  %v87_v20 = vsub.f32 %v57_v1, %v83_v18 }
  0x87   :  { %v93_v21 = vmul.f32 %v316_v19, %v316_v19  ;;  %v91_v22 = vmul.f32 %v87_v20, %v87_v20 }
  0x89   :  { %v101_v23 = vsel %vm63_vm0, %v93_v21, 0.0  ;;  %v95_v24 = vsel %vm63_vm0, %v91_v22, 0.0 }
  0x8a   :  { %v75_v25 = vpop.xlane.xlu1 %74  ;;  %102 = vadd.xlane.f32.xlu0 %v101_v23  ;;  %96 = vadd.xlane.f32.xlu2 %v95_v24  ;;  %v69_v26 = vpop.xlane.xlu0 %68 }
  0x8b   :  { %v86_v27 = vmul.f32 %v82_v14, %v75_v25  ;;  %v84_v28 = vmul.f32 %v82_v14, %v69_v26 }
  0x8d   :  { %v322_v29 = vsub.f32 %v60_v4, %v86_v27  ;;  %v324_v30 = vsub.f32 %v58_v5, %v84_v28 }
  0x8f   :  { %v94_v31 = vmul.f32 %v322_v29, %v322_v29  ;;  %v92_v32 = vmul.f32 %v324_v30, %v324_v30 }
  0x91   :  { %v104_v33 = vsel %vm63_vm0, %v94_v31, 0.0  ;;  %v98_v34 = vsel %vm63_vm0, %v92_v32, 0.0 }
  0x92   :  { %105 = vadd.xlane.f32.xlu1 %v104_v33  ;;  %99 = vadd.xlane.f32.xlu2 %v98_v34 }
  0xfd   :  { %v97_v35 = vpop.xlane.xlu2 %96  ;;  %v103_v36 = vpop.xlane.xlu0 %102 }
  0xfe   :  { %v107_v37 = vmul.f32 %v97_v35, %v82_v14  ;;  %v109_v38 = vmul.f32 %v103_v36, %v82_v14 }
 0x100   :  { %v111_v39 = vadd.f32 1e-05, %v107_v37  ;;  %v113_v40 = vadd.f32 1e-05, %v109_v38 }
 0x102   :  { %193 = vrsqrt.f32 %v111_v39  ;;  %vm121_vm4 = vweird.f32 %v111_v39  ;;  %vm141_vm6 = vweird.f32 %v113_v40 }
 0x103   :  { %195 = vrsqrt.f32 %v113_v40 }
 0x105   :  { %v106_v41 = vpop.xlane.xlu1 %105  ;;  %v100_v42 = vpop.xlane.xlu2 %99 }
 0x106   :  { %v110_v43 = vmul.f32 %v106_v41, %v82_v14  ;;  %v108_v44 = vmul.f32 %v100_v42, %v82_v14 }
 0x108   :  { %v194_v45 = vpop.eup %193  ;;  %v114_v46 = vadd.f32 1e-05, %v110_v43  ;;  %v112_v47 = vadd.f32 1e-05, %v108_v44 }
 0x109   :  { %v196_v48 = vpop.eup %195  ;;  %v116_v49 = vmul.f32 %v194_v45, %v111_v39  ;;  %vm122_vm2 = vweird.f32 %v194_v45 }
 0x10a   :  { %v136_v50 = vmul.f32 %v196_v48, %v113_v40  ;;  %197 = vrsqrt.f32 %v114_v46  ;;  %vm142_vm3 = vweird.f32 %v196_v48  ;;  %vm123_vm5 = vmor %vm121_vm4, %vm122_vm2  ;;  %vm151_vm10 = vweird.f32 %v114_v46 }
 0x10b   :  { %v117_v51 = vmul.f32 %v194_v45, %v116_v49  ;;  %199 = vrsqrt.f32 %v112_v47  ;;  %vm143_vm7 = vmor %vm141_vm6, %vm142_vm3  ;;  %vm131_vm12 = vweird.f32 %v112_v47 }
 0x10c   :  { %v137_v52 = vmul.f32 %v196_v48, %v136_v50 }
 0x10d   :  { %v118_v53 = vmul.f32 0.5, %v117_v51 }
 0x10e   :  { %v138_v54 = vmul.f32 0.5, %v137_v52 }
 0x10f   :  { %v119_v55 = vsub.f32 1.5, %v118_v53 }
 0x110   :  { %v198_v56 = vpop.eup %197  ;;  %v139_v57 = vsub.f32 1.5, %v138_v54 }
 0x111   :  { %v200_v58 = vpop.eup %199  ;;  %v120_v59 = vmul.f32 %v194_v45, %v119_v55  ;;  %v146_v60 = vmul.f32 %v198_v56, %v114_v46  ;;  %vm152_vm8 = vweird.f32 %v198_v56 }
 0x112   :  { %v140_v62 = vmul.f32 %v196_v48, %v139_v57  ;;  %v126_v63 = vmul.f32 %v200_v58, %v112_v47  ;;  %vm132_vm9 = vweird.f32 %v200_v58  ;;  %vm153_vm11 = vmor %vm151_vm10, %vm152_vm8 }
 0x113   :  { %v124_v0 = vsel %vm123_vm5, %v194_v45, %v120_v59  ;;  %v147_v1 = vmul.f32 %v198_v56, %v146_v60  ;;  %vm133_vm13 = vmor %vm131_vm12, %vm132_vm9 }
 0x114   :  { %v155_v3 = vmul.f32 %v124_v0, %v87_v20  ;;  %v144_v4 = vsel %vm143_vm7, %v196_v48, %v140_v62  ;;  %v127_v5 = vmul.f32 %v200_v58, %v126_v63 }
 0x115   :  { %v157_v6 = vmul.f32 %v144_v4, %v316_v19  ;;  %v148_v7 = vmul.f32 0.5, %v147_v1 }
 0x116   :  { %v162_v8 = vmul.f32 %v189_v61, %v155_v3  ;;  %v128_v9 = vmul.f32 0.5, %v127_v5 }
 0x117   :  { %v164_v10 = vmul.f32 %v189_v61, %v157_v6  ;;  %v149_v11 = vsub.f32 1.5, %v148_v7 }
 0x118   :  { %v169_v12 = vadd.f32 %v190_v2, %v162_v8  ;;  %v129_v13 = vsub.f32 1.5, %v128_v9 }
 0x119   :  { %v171_v14 = vadd.f32 %v190_v2, %v164_v10  ;;  %v150_v15 = vmul.f32 %v198_v56, %v149_v11 }
 0x11a   :  { %173 = vst.msk [vmem:[%s354_s3] sm:$0xff] %vm63_vm0, %v169_v12  ;;  %v130_v16 = vmul.f32 %v200_v58, %v129_v13 }
 0x11b   :  { %175 = vst.msk [vmem:[%s354_s3 + $0x10] sm:$0xff] %vm63_vm0, %v171_v14  ;;  %v154_v17 = vsel %vm153_vm11, %v198_v56, %v150_v15 }
 0x11c   :  { %v158_v18 = vmul.f32 %v154_v17, %v322_v29  ;;  %v134_v19 = vsel %vm133_vm13, %v200_v58, %v130_v16 }
 0x11d   :  { %v156_v20 = vmul.f32 %v134_v19, %v324_v30 }
 0x11e   :  { %v165_v21 = vmul.f32 %v189_v61, %v158_v18 }
 0x11f   :  { %v163_v22 = vmul.f32 %v189_v61, %v156_v20 }
 0x120   :  { %v172_v23 = vadd.f32 %v190_v2, %v165_v21 }
 0x121   :  { %v170_v24 = vadd.f32 %v190_v2, %v163_v22 }
 0x122   :  { %176 = vst.msk [vmem:[%s354_s3 + $0x18] sm:$0xff] %vm63_vm0, %v172_v23 }
 0x123   :  { %174 = vst.msk [vmem:[%s354_s3 + $0x8] sm:$0xff] %vm63_vm0, %v170_v24 }
 0x124   :  { %181 = vsyncpa [#allocation3], 1 }
 0x125   :  { %182 = vsyncpa [#allocation5], 1 }

// kernel: _lambda_.6
= control target key start
LH: loop header
LB: loop body
LE: loop exit
PB: predicated region body
PF: predicated region fallthrough
CT: control target
= control target key end

     0   :  { %s2653_s0 = inlined_call_operand.vmem [shape: f32[2,16,64], index: 0, kind: input, shape index: {}]   ;;  %s2654_s1 = inlined_call_operand.hbm [shape: f32[1,64], index: 1, kind: input, shape index: {}]   ;;  %s2655_s2 = inlined_call_operand.hbm [shape: f32[1,64], index: 2, kind: input, shape index: {}]   ;;  %s2656_s3 = inlined_call_operand.hbm [shape: f32[1,64], index: 3, kind: input, shape index: {}]   ;;  %s2657_s4 = inlined_call_operand.vmem [shape: f32[6,64], index: 4, kind: input, shape index: {}]   ;;  %s2658_s5 = inlined_call_operand.hbm [shape: f32[64,160], index: 5, kind: input, shape index: {}]   ;;  %s2659_s6 = inlined_call_operand.hbm [shape: f32[5,32,64], index: 6, kind: input, shape index: {}]   ;;  %s2660_s7 = inlined_call_operand.hbm [shape: f32[64,64], index: 7, kind: input, shape index: {}]   ;;  %s2661_s8 = inlined_call_operand.hbm [shape: f32[64,64], index: 8, kind: input, shape index: {}]   ;;  %s2662_s9 = inlined_call_operand.hbm [shape: f32[64,64], index: 9, kind: input, shape index: {}]   ;;  %s2663_s10 = inlined_call_operand.hbm [shape: f32[64,64], index: 10, kind: input, shape index: {}]   ;;  %s2664_s11 = inlined_call_operand.hbm [shape: f32[64,64], index: 11, kind: input, shape index: {}]   ;;  %s2665_s12 = inlined_call_operand.hbm [shape: f32[64,64], index: 12, kind: input, shape index: {}]   ;;  %s2666_s13 = inlined_call_operand.hbm [shape: f32[1,64], index: 13, kind: input, shape index: {}]   ;;  %s2667_s14 = inlined_call_operand.vmem [shape: f32[2,16,64], index: 14, kind: output, shape index: {0}]   ;;  %s2668_s15 = inlined_call_operand.vmem [shape: f32[2,16,64], index: 15, kind: output, shape index: {1}]   ;;  %s2669_s16 = inlined_call_operand.vmem [shape: f32[2,16,64], index: 16, kind: output, shape index: {2}]   ;;  %s2670_s17 = inlined_call_operand.vmem [shape: f32[2,16,64], index: 17, kind: output, shape index: {3}]   ;;  %s2671_s18 = inlined_call_operand.vmem [shape: f32[2,16,64], index: 18, kind: output, shape index: {4}]  }
   0x1   :  { %2673 = sst [smem:[#allocation29_spill]] %s2653_s0 }
   0x2   :  { %2674 = sst [smem:[#allocation30_spill]] %s2654_s1 }
   0x3   :  { %2675 = sst [smem:[#allocation31_spill]] %s2655_s2 }
   0x4   :  { %2676 = sst [smem:[#allocation32_spill]] %s2658_s5 }
   0x5   :  { %2677 = sst [smem:[#allocation33_spill]] %s2669_s16 }
   0x6   :  { %2678 = sst [smem:[#allocation34_spill]] %s2671_s18 }
   0x7   :  { %24 = vsyncpa [#allocation3], 0 }
   0x8   :  { %25 = vsyncpa [#allocation5], 0 }
   0x9   :  { %26 = vsyncpa [#allocation8], 0 }
   0xa   :  { %27 = vsyncpa [#allocation11], 0 }
   0xb   :  { %28 = vsyncpa [#allocation14], 0 }
   0xc   :  { %29 = vsyncpa [#allocation17], 0 }
   0xd   :  { %30 = vsyncpa [#allocation20], 0  ;;  %s2402_s27 = smov 0  }
   0xe LB: > { %2679 = sst [smem:[#allocation28_spill]] %s2285_s27  ;;  %s2411_s19 = sadd.s32 4294967295, %s2285_s27   ;;  %s2285_s27 = sphi %s2402_s27, %s36_s27  }
   0xf   : > { %s2680_s30 = sld [smem:[#allocation31_spill]]  ;;  %p1655_p0 = scmp.ge.s32.totalorder %s2285_s27, 1 }
  0x10   : > { %p470_p1 = scmp.lt.s32.totalorder %s2285_s27, 3  ;;  %p1810_p2 = scmp.eq.s32.totalorder %s2411_s19, 0 }
  0x11   : > { %s2287_s20 = smov [#allocation4]   ;;  %s2682_s5 = sld [smem:[#allocation32_spill]] }
  0x12   : > { %p2416_p3 = pnand %p1655_p0, %p470_p1  ;;  %s496_s21 = sshll.u32 %s2287_s20, 4  ;;  %s497_s21 = int_to_ptr.vmem [resolvable:$true] %s496_s21 }
  0x13   : > { %s2288_s25 = smov [#allocation7]   ;;  %s2289_s28 = smov 256  }
  0x14   : > { %p1773_p4 = pneg %p2416_p3  ;;  %s522_s26 = sshll.u32 %s2288_s25, 4  ;;  %s523_s26 = int_to_ptr.vmem [resolvable:$true] %s522_s26 }
  0x15   : > { %s494_s0 = sshll.u32 %s2680_s30, 4  ;;  %s2290_s29 = smov 16   ;;  %s495_s0 = int_to_ptr.hbm [resolvable:$true] %s494_s0 }
  0x16   : > { %p2427_p5 = pnand %p1810_p2, %p1773_p4  ;;  %s548_s22 = sshll.u32 %s2660_s7, 4  ;;  %s549_s22 = int_to_ptr.hbm [resolvable:$true] %s548_s22 }
  0x17   : > { %s520_s23 = sshll.u32 %s2682_s5, 4  ;;  %s2291_s2 = smov [#allocation10]   ;;  %s521_s23 = int_to_ptr.hbm [resolvable:$true] %s520_s23 }
  0x18   : > { %1779 = dma.hbm_to_vmem [thread:$0]  (!%p2427_p5), %s495_s0, 16, %s497_s21, [#allocation5]  }
  0x19   : > { %1785 = dma.hbm_to_vmem [thread:$0]  (!%p2427_p5), %s521_s23, 2048, %s523_s26, [#allocation8], %s2289_s28, %s2289_s28, %s2290_s29  }
  0x1a   : > { %s550_s5 = sshll.u32 %s2291_s2, 4  ;;  %s576_s16 = sshll.u32 %s2662_s9, 4  ;;  %s551_s5 = int_to_ptr.vmem [resolvable:$true] %s550_s5  ;;  %s577_s16 = int_to_ptr.hbm [resolvable:$true] %s576_s16 }
  0x1b   : > { %s2292_s0 = smov 128   ;;  %s2293_s21 = smov 8  }
  0x1c   : > { %1791 = dma.hbm_to_vmem [thread:$0]  (!%p2427_p5), %s549_s22, 1024, %s551_s5, [#allocation11], %s2292_s0, %s2292_s0, %s2293_s21  }
  0x1d   : > { %s604_s26 = sshll.u32 %s2664_s11, 4  ;;  %s2294_s28 = smov [#allocation13]   ;;  %s605_s26 = int_to_ptr.hbm [resolvable:$true] %s604_s26 }
  0x1e   : > { %s578_s29 = sshll.u32 %s2294_s28, 4  ;;  %s2295_s18 = smov [#allocation16]   ;;  %s579_s29 = int_to_ptr.vmem [resolvable:$true] %s578_s29 }
  0x1f   : > { %1797 = dma.hbm_to_vmem [thread:$0]  (!%p2427_p5), %s577_s16, 1024, %s579_s29, [#allocation14], %s2292_s0, %s2292_s0, %s2293_s21  }
  0x20   : > { %s606_s27 = sshll.u32 %s2295_s18, 4  ;;  %s2684_s2 = sld [smem:[#allocation30_spill]]  ;;  %s607_s27 = int_to_ptr.vmem [resolvable:$true] %s606_s27 }
  0x21   : > { %1803 = dma.hbm_to_vmem [thread:$0]  (!%p2427_p5), %s605_s26, 1024, %s607_s27, [#allocation17], %s2292_s0, %s2292_s0, %s2293_s21  }
  0x22   : > { %s506_s25 = sshll.u32 %s2656_s3, 4  ;;  %s2296_s28 = smov [#allocation2]   ;;  %s507_s25 = int_to_ptr.hbm [resolvable:$true] %s506_s25 }
  0x23   : > { %s484_s16 = sshll.u32 %s2296_s28, 4  ;;  %s2297_s29 = smov [#allocation6]   ;;  %s485_s16 = int_to_ptr.vmem [resolvable:$true] %s484_s16 }
  0x24   : > { %s508_s18 = sshll.u32 %s2297_s29, 4  ;;  %s562_s22 = sshll.u32 %s2661_s8, 4  ;;  %s509_s18 = int_to_ptr.vmem [resolvable:$true] %s508_s18  ;;  %s563_s22 = int_to_ptr.hbm [resolvable:$true] %s562_s22 }
  0x25   : > { %1782 = dma.hbm_to_vmem [thread:$0]  (!%p2427_p5), %s507_s25, 16, %s509_s18, [#allocation5]  }
  0x26   : > { %s482_s5 = sshll.u32 %s2684_s2, 4  ;;  %s534_s2 = sshll.u32 %s2659_s6, 4  ;;  %s483_s5 = int_to_ptr.hbm [resolvable:$true] %s482_s5  ;;  %s535_s2 = int_to_ptr.hbm [resolvable:$true] %s534_s2 }
  0x27   : > { %1776 = dma.hbm_to_vmem [thread:$0]  (!%p2427_p5), %s483_s5, 16, %s485_s16, [#allocation3]  }
  0x28   : > { %s2298_s23 = smov [#allocation9]   ;;  %s2299_s5 = smov [#allocation12]  }
  0x29   : > { %s536_s28 = sshll.u32 %s2298_s23, 4  ;;  %s564_s16 = sshll.u32 %s2299_s5, 4  ;;  %s537_s28 = int_to_ptr.vmem [resolvable:$true] %s536_s28  ;;  %s565_s16 = int_to_ptr.vmem [resolvable:$true] %s564_s16 }
  0x2a   : > { %1788 = dma.hbm_to_vmem [thread:$0]  (!%p2427_p5), %s535_s2, 2560, %s537_s28, [#allocation8], %s2292_s0, %s2292_s0, %s2293_s21  }
  0x2b   : > { %s590_s25 = sshll.u32 %s2663_s10, 4  ;;  %s618_s26 = sshll.u32 %s2665_s12, 4  ;;  %s591_s25 = int_to_ptr.hbm [resolvable:$true] %s590_s25  ;;  %s619_s26 = int_to_ptr.hbm [resolvable:$true] %s618_s26 }
  0x2c   : > { %1794 = dma.hbm_to_vmem [thread:$0]  (!%p2427_p5), %s563_s22, 1024, %s565_s16, [#allocation11], %s2292_s0, %s2292_s0, %s2293_s21  }
  0x2d   : > { %s2300_s2 = smov [#allocation15]   ;;  %s2301_s23 = smov [#allocation18]  }
  0x2e   : > { %s592_s27 = sshll.u32 %s2300_s2, 4  ;;  %s620_s28 = sshll.u32 %s2301_s23, 4  ;;  %s593_s27 = int_to_ptr.vmem [resolvable:$true] %s592_s27  ;;  %s621_s28 = int_to_ptr.vmem [resolvable:$true] %s620_s28 }
  0x2f   : > { %1800 = dma.hbm_to_vmem [thread:$0]  (!%p2427_p5), %s591_s25, 1024, %s593_s27, [#allocation14], %s2292_s0, %s2292_s0, %s2293_s21  }
  0x30   : > { %s633_s22 = sshll.u32 %s2666_s13, 4  ;;  %s2302_s16 = smov [#allocation19]   ;;  %s634_s22 = int_to_ptr.hbm [resolvable:$true] %s633_s22 }
  0x31   : > { %1806 = dma.hbm_to_vmem [thread:$0]  (!%p2427_p5), %s619_s26, 1024, %s621_s28, [#allocation17], %s2292_s0, %s2292_s0, %s2293_s21  }
  0x32   : > { %s635_s30 = sshll.u32 %s2302_s16, 4  ;;  %656 = sbr.rel (%p2416_p3) target bundleno = 1053 (0x41d), region = 76  ;;  %s636_s30 = int_to_ptr.vmem [resolvable:$true] %s635_s30 }
  0x33   : > { %1809 = dma.hbm_to_vmem [thread:$0]  (!%p2427_p5), %s634_s22, 16, %s636_s30, [#allocation20]  }
  0x37   : > { %2256 = dma.done.wait (%p1810_p2), [#allocation3], 16  }
  0x38   : > { %2258 = vsyncadd (%p1810_p2), [#allocation3], 4294967280 }
  0x39   : > { %2260 = dma.done.wait (%p1810_p2), [#allocation5], 32  }
  0x3a   : > { %2262 = vsyncadd (%p1810_p2), [#allocation5], 4294967264 }
  0x3b   : > { %2264 = dma.done.wait (%p1810_p2), [#allocation8], 4608  }
  0x3c   : > { %2266 = vsyncadd (%p1810_p2), [#allocation8], 4294962688 }
  0x3d   : > { %2268 = dma.done.wait (%p1810_p2), [#allocation11], 2048  }
  0x3e   : > { %2270 = vsyncadd (%p1810_p2), [#allocation11], 4294965248 }
  0x3f   : > { %2272 = dma.done.wait (%p1810_p2), [#allocation14], 2048  }
  0x40   : > { %2274 = vsyncadd (%p1810_p2), [#allocation14], 4294965248 }
  0x41   : > { %2276 = dma.done.wait (%p1810_p2), [#allocation17], 2048  }
  0x42   : > { %2278 = vsyncadd (%p1810_p2), [#allocation17], 4294965248 }
  0x43   : > { %2280 = dma.done.wait (%p1810_p2), [#allocation20], 16  }
  0x44   : > { %2282 = vsyncadd (%p1810_p2), [#allocation20], 4294967280  ;;  %p786_p6 = scmp.lt.s32.totalorder %s2411_s19, 1  ;;  %s2685_s21 = sld [smem:[#allocation29_spill]]  ;;  %vm821_vm0 = vcmask 523264   ;;  %v2303_v4 = vmov 64.0  }
  0x45   : > { %1865 = vrcp.f32 %v2303_v4  ;;  %v913_v21 = vld [vmem:[#allocation7 + $0x60] sm:$0xff]  ;;  %v915_v22 = vld [vmem:[#allocation7 + $0x70] sm:$0xff]  ;;  %v914_v23 = vld [vmem:[#allocation7 + $0x68] sm:$0xff]  ;;  %vm886_vm8 = vcmask 1040384   ;;  %vm968_vm9 = vcmask 261120   ;;  %s2304_s20 = smov 64  }
  0x46   : > { %s2690_s19 = smov (!%p786_p6, %s2411_s19), 1  ;;  %v924_v24 = vpack.c.bf16 %v915_v22, %v913_v21  ;;  %v916_v25 = vld [vmem:[#allocation7 + $0x78] sm:$0xff]  ;;  %v909_v29 = vld [vmem:[#allocation7 + $0x40] sm:$0xff]  ;;  %v911_v30 = vld [vmem:[#allocation7 + $0x50] sm:$0xff]  ;;  %s2305_s26 = smov 96  }
  0x47   : > { %s2538_s1 = sshll.u32 %s2690_s19, 4  ;;  %v925_v27 = vpack.c.bf16 %v916_v25, %v914_v23  ;;  %v910_v31 = vld [vmem:[#allocation7 + $0x48] sm:$0xff]  ;;  %v922_v33 = vpack.c.bf16 %v911_v30, %v909_v29  ;;  %v912_v34 = vld [vmem:[#allocation7 + $0x58] sm:$0xff]  ;;  %v905_v35 = vld [vmem:[#allocation7 + $0x20] sm:$0xff]  ;;  %s2306_s2 = smov 32  }
  0x48   : > { %933 = vmatpush.bf16.msra.mxu0 %v924_v24  ;;  %v907_v36 = vld [vmem:[#allocation7 + $0x30] sm:$0xff]  ;;  %v923_v37 = vpack.c.bf16 %v912_v34, %v910_v31  ;;  %v906_v38 = vld [vmem:[#allocation7 + $0x28] sm:$0xff]  ;;  %v908_v39 = vld [vmem:[#allocation7 + $0x38] sm:$0xff]  ;;  %s810_s28 = scalar_lea.vmem %s2670_s17, %s2538_s1  ;;  %s800_s22 = scalar_lea.vmem %s2668_s15, %s2538_s1 }
  0x49   : > { %947 = vmatpush.bf16.msra.mxu1 %v925_v27  ;;  %v920_v40 = vpack.c.bf16 %v907_v36, %v905_v35  ;;  %v921_v41 = vpack.c.bf16 %v908_v39, %v906_v38  ;;  %v901_v42 = vld [vmem:[#allocation7] sm:$0xff]  ;;  %v903_v43 = vld [vmem:[#allocation7 + $0x10] sm:$0xff]  ;;  %v902_v44 = vld [vmem:[#allocation7 + $0x8] sm:$0xff]  ;;  %s795_s24 = scalar_lea.vmem %s2667_s14, %s2538_s1 }
  0x4a   : > { %s790_s25 = scalar_lea.vmem %s2685_s21, %s2538_s1  ;;  %v904_v45 = vld [vmem:[#allocation7 + $0x18] sm:$0xff]  ;;  %v918_v48 = vpack.c.bf16 %v903_v43, %v901_v42  ;;  %v963_v23 = vld [vmem:[#allocation9 + $0x10] sm:$0xff]  ;;  %v962_v29 = vld [vmem:[#allocation9 + $0x8] sm:$0xff] }
  0x4b   : > { %v817_v0 = vld [vmem:[%s790_s25] sm:$0xff]  ;;  %v818_v2 = vld [vmem:[%s790_s25 + $0x8] sm:$0xff]  ;;  %v1866_v5 = vpop.eup %1865  ;;  %v919_v49 = vpack.c.bf16 %v904_v45, %v902_v44  ;;  %v1096_v25 = vld [vmem:[#allocation9 + $0x90] sm:$0xff]  ;;  %s2686_s25 = sld [smem:[#allocation33_spill]] }
  0x4c   : > { %v822_v1 = vsel %vm821_vm0, %v817_v0, 0.0  ;;  %v825_v3 = vsel %vm821_vm0, %v818_v2, 0.0  ;;  %v829_v6 = vmul.f32 64.0, %v1866_v5  ;;  %vm833_vm1 = vweird.f32 %v1866_v5  ;;  %934 = vmatpush.bf16.msra.mxu0 %v922_v33  ;;  %v1862_v59 = vld [vmem:[#allocation2] ss:$0 sm:$0xff]  ;;  %v1094_v31 = vld [vmem:[#allocation9 + $0x80] sm:$0xff] }
  0x4d   : > { %823 = vadd.xlane.f32.xlu0 %v822_v1  ;;  %948 = vmatpush.bf16.msra.mxu1 %v923_v37  ;;  %v1863_v62 = vld [vmem:[#allocation4] ss:$0 sm:$0xff]  ;;  %v996_v35 = vld [vmem:[#allocation9 + $0x30] sm:$0xff]  ;;  %v994_v37 = vld [vmem:[#allocation9 + $0x20] sm:$0xff] }
  0x4e   : > { %v830_v7 = vsub.f32 1.0, %v829_v6  ;;  %v964_v24 = vld [vmem:[#allocation9 + $0x18] sm:$0xff]  ;;  %v995_v39 = vld [vmem:[#allocation9 + $0x28] sm:$0xff] }
  0x4f   : > { %v1097_v27 = vld [vmem:[#allocation9 + $0x98] sm:$0xff] }
  0x50   : > { %v831_v8 = vmul.f32 %v1866_v5, %v830_v7  ;;  %935 = vmatpush.bf16.msra.mxu0 %v920_v40  ;;  %v883_v7 = vld [vmem:[#allocation6] sm:$0x1]  ;;  %v1100_v30 = vpack.c.bf16 %v1097_v27, %v1096_v25  ;;  %v998_v40 = vpack.c.bf16 %v995_v39, %v994_v37  ;;  %v1158_v39 = vld [vmem:[#allocation12 + $0x8] sm:$0xff] }
  0x51   : > { %949 = vmatpush.bf16.msra.mxu1 %v921_v41  ;;  %v997_v36 = vld [vmem:[#allocation9 + $0x38] sm:$0xff]  ;;  %s805_s19 = scalar_lea.vmem %s2686_s25, %s2538_s1 }
  0x52   : > { %v832_v9 = vadd.f32 %v1866_v5, %v831_v8  ;;  %v999_v38 = vpack.c.bf16 %v997_v36, %v996_v35  ;;  %v1159_v35 = vld [vmem:[#allocation12 + $0x10] sm:$0xff]  ;;  %v1160_v36 = vld [vmem:[#allocation12 + $0x18] sm:$0xff] }
  0x53   : > { %v1167_v37 = vpack.c.bf16 %v1160_v36, %v1159_v35 }
  0x54   : > { %v834_v10 = vsel %vm833_vm1, %v1866_v5, %v832_v9  ;;  %936 = vmatpush.bf16.msra.mxu0 %v918_v48  ;;  %1012 = vmatpush.bf16.msra.mxu3 %v999_v38  ;;  %v1157_v38 = vld [vmem:[#allocation12] sm:$0xff] }
  0x55   : > { %826 = vadd.xlane.f32.xlu0 %v825_v3  ;;  %950 = vmatpush.bf16.msra.mxu1 %v919_v49 }
  0x58   : > { %1110 = vmatpush.bf16.msrb.mxu0 %v1100_v30  ;;  %1013 = vmatpush.bf16.msra.mxu3 %v998_v40  ;;  %v1164_v30 = vld [vmem:[#allocation12 + $0x38] sm:$0xff]  ;;  %v1166_v40 = vpack.c.bf16 %v1158_v39, %v1157_v38 }
  0xc0   : > { %v824_v11 = vpop.xlane.xlu0 %823 }
  0xc1   : > { %v835_v12 = vmul.f32 %v834_v10, %v824_v11  ;;  %v2564_v11 = vld [vmem:[%s2657_s4] sm:$0x3f] }
  0xc3   : > { %v2546_v13 = vsub.f32 %v817_v0, %v835_v12 }
  0xc5   : > { %v839_v14 = vmul.f32 %v2546_v13, %v2546_v13 }
  0xc7   : > { %v841_v15 = vsel %vm821_vm0, %v839_v14, 0.0  ;;  %v896_v14 = vperm.slane %v2564_v11, 0 }
  0xc8   : > { %842 = vadd.xlane.f32.xlu1 %v841_v15  ;;  %v827_v16 = vpop.xlane.xlu0 %826 }
  0xc9   : > { %v836_v17 = vmul.f32 %v834_v10, %v827_v16 }
  0xcb   : > { %v2551_v18 = vsub.f32 %v818_v2, %v836_v17 }
  0xcd   : > { %v840_v19 = vmul.f32 %v2551_v18, %v2551_v18 }
  0xcf   : > { %v844_v20 = vsel %vm821_vm0, %v840_v19, 0.0 }
  0xd0   : > { %845 = vadd.xlane.f32.xlu1 %v844_v20 }
 0x13b   : > { %v843_v26 = vpop.xlane.xlu1 %842 }
 0x13c   : > { %v847_v28 = vmul.f32 %v843_v26, %v834_v10  ;;  %v967_v26 = vpack.c.bf16 %v964_v24, %v963_v23 }
 0x13e   : > { %v849_v32 = vadd.f32 1e-05, %v847_v28  ;;  %v961_v28 = vld [vmem:[#allocation9] sm:$0xff]  ;;  %978 = vmatpush.bf16.msra.mxu2 %v967_v26 }
 0x13f   : > { %v966_v33 = vpack.c.bf16 %v962_v29, %v961_v28  ;;  %v1163_v29 = vld [vmem:[#allocation12 + $0x30] sm:$0xff] }
 0x140   : > { %1867 = vrsqrt.f32 %v849_v32  ;;  %vm857_vm3 = vweird.f32 %v849_v32 }
 0x142   : > { %979 = vmatpush.bf16.msra.mxu2 %v966_v33  ;;  %v1162_v33 = vld [vmem:[#allocation12 + $0x28] sm:$0xff] }
 0x143   : > { %v846_v46 = vpop.xlane.xlu1 %845 }
 0x144   : > { %v848_v47 = vmul.f32 %v846_v46, %v834_v10 }
 0x146   : > { %v1868_v50 = vpop.eup %1867  ;;  %v850_v51 = vadd.f32 1e-05, %v848_v47 }
 0x147   : > { %v852_v52 = vmul.f32 %v1868_v50, %v849_v32  ;;  %vm858_vm2 = vweird.f32 %v1868_v50  ;;  %v1095_v32 = vld [vmem:[#allocation9 + $0x88] sm:$0xff] }
 0x148   : > { %1869 = vrsqrt.f32 %v850_v51  ;;  %vm859_vm4 = vmor %vm857_vm3, %vm858_vm2  ;;  %vm867_vm6 = vweird.f32 %v850_v51  ;;  %v1099_v34 = vpack.c.bf16 %v1095_v32, %v1094_v31  ;;  %v1169_v31 = vpack.c.bf16 %v1164_v30, %v1163_v29  ;;  %v1161_v32 = vld [vmem:[#allocation12 + $0x20] sm:$0xff] }
 0x149   : > { %v853_v53 = vmul.f32 %v1868_v50, %v852_v52  ;;  %v1064_v52 = vld [vmem:[#allocation9 + $0x78] sm:$0xff] }
 0x14a   : > { %1111 = vmatpush.bf16.msrb.mxu0 %v1099_v34  ;;  %v1168_v34 = vpack.c.bf16 %v1162_v33, %v1161_v32  ;;  %v1053_v32 = vperm.slane %v2564_v11, 3 }
 0x14b   : > { %v854_v54 = vmul.f32 0.5, %v853_v53 }
 0x14d   : > { %v855_v55 = vsub.f32 1.5, %v854_v54  ;;  %v1061_v54 = vld [vmem:[#allocation9 + $0x60] sm:$0xff] }
 0x14e   : > { %v1870_v56 = vpop.eup %1869 }
 0x14f   : > { %v856_v57 = vmul.f32 %v1868_v50, %v855_v55  ;;  %v862_v58 = vmul.f32 %v1870_v56, %v850_v51  ;;  %vm868_vm5 = vweird.f32 %v1870_v56  ;;  %v1063_v51 = vld [vmem:[#allocation9 + $0x70] sm:$0xff]  ;;  %v1062_v55 = vld [vmem:[#allocation9 + $0x68] sm:$0xff] }
 0x150   : > { %vm869_vm7 = vmor %vm867_vm6, %vm868_vm5  ;;  %v1066_v53 = vpack.c.bf16 %v1064_v52, %v1063_v51  ;;  %v1196_v51 = vld [vmem:[#allocation13 + $0x38] sm:$0xff] }
 0x151   : > { %v860_v60 = vsel %vm859_vm4, %v1868_v50, %v856_v57  ;;  %v863_v61 = vmul.f32 %v1870_v56, %v862_v58  ;;  %v1030_v57 = vld [vmem:[#allocation9 + $0x50] sm:$0xff]  ;;  %v1031_v58 = vld [vmem:[#allocation9 + $0x58] sm:$0xff] }
 0x152   : > { %v871_v63 = vmul.f32 %v860_v60, %v2546_v13  ;;  %1078 = vmatpush.bf16.msrb.mxu3 %v1066_v53  ;;  %v1028_v60 = vld [vmem:[#allocation9 + $0x40] sm:$0xff] }
 0x153   : > { %v864_v0 = vmul.f32 0.5, %v863_v61  ;;  %v1029_v61 = vld [vmem:[#allocation9 + $0x48] sm:$0xff]  ;;  %v1125_v53 = vld [vmem:[#allocation10] sm:$0xff] }
 0x154   : > { %v876_v1 = vmul.f32 %v1862_v59, %v871_v63 }
 0x155   : > { %v865_v2 = vsub.f32 1.5, %v864_v0  ;;  %v1227_v0 = vld [vmem:[#allocation15 + $0x30] sm:$0xff] }
 0x156   : > { %v2557_v3 = vadd.f32 %v1863_v62, %v876_v1  ;;  %v1228_v1 = vld [vmem:[#allocation15 + $0x38] sm:$0xff] }
 0x157   : > { %v866_v4 = vmul.f32 %v1870_v56, %v865_v2  ;;  %v1233_v2 = vpack.c.bf16 %v1228_v1, %v1227_v0  ;;  %v1272_v0 = vld [vmem:[#allocation16 + $0x38] sm:$0xff]  ;;  %v1271_v1 = vld [vmem:[#allocation16 + $0x30] sm:$0xff] }
 0x158   : > { %v887_v5 = vrot.slane %v2557_v3, 7 }
 0x159   : > { %v870_v6 = vsel %vm869_vm7, %v1870_v56, %v866_v4  ;;  %v1065_v56 = vpack.c.bf16 %v1062_v55, %v1061_v54  ;;  %v1225_v4 = vld [vmem:[#allocation15 + $0x20] sm:$0xff]  ;;  %v1126_v54 = vld [vmem:[#allocation10 + $0x8] sm:$0xff] }
 0x15a   : > { %v872_v8 = vmul.f32 %v870_v6, %v2551_v18  ;;  %v892_v10 = vsel %vm886_vm8, %v883_v7, %v887_v5  ;;  %v1223_v7 = vld [vmem:[#allocation15 + $0x10] sm:$0xff]  ;;  %v1193_v55 = vld [vmem:[#allocation13 + $0x20] sm:$0xff] }
 0x15b   : > { %v2569_v13 = vsub.f32 %v892_v10, %v2557_v3  ;;  %1079 = vmatpush.bf16.msrb.mxu3 %v1065_v56  ;;  %v1221_v10 = vld [vmem:[#allocation15] sm:$0xff]  ;;  %v1134_v56 = vpack.c.bf16 %v1126_v54, %v1125_v53 }
 0x15c   : > { %v877_v9 = vmul.f32 %v1862_v59, %v872_v8  ;;  %v1033_v59 = vpack.c.bf16 %v1031_v58, %v1030_v57  ;;  %v1224_v8 = vld [vmem:[#allocation15 + $0x18] sm:$0xff]  ;;  %v1194_v57 = vld [vmem:[#allocation13 + $0x28] sm:$0xff] }
 0x15d   : > { %v897_v18 = vmul.f32 %v896_v14, %v2569_v13  ;;  %v1200_v58 = vpack.c.bf16 %v1194_v57, %v1193_v55 }
 0x15e   : > { %v2566_v12 = vadd.f32 %v1863_v62, %v877_v9  ;;  %1045 = vmatpush.bf16.msrb.mxu2 %v1033_v59  ;;  %v1032_v62 = vpack.c.bf16 %v1029_v61, %v1028_v60  ;;  %v1231_v9 = vpack.c.bf16 %v1224_v8, %v1223_v7  ;;  %v1191_v60 = vld [vmem:[#allocation13 + $0x10] sm:$0xff]  ;;  %v1192_v61 = vld [vmem:[#allocation13 + $0x18] sm:$0xff]  ;;  %v1270_v8 = vld [vmem:[#allocation16 + $0x28] sm:$0xff] }
 0x15f   : > { %v899_v20 = vadd.f32 %v897_v18, %v2557_v3 }
 0x160   : > { %v888_v15 = vrot.slane %v2566_v12, 7 }
 0x162   : > { %v889_v16 = vsel %vm886_vm8, %v887_v5, %v888_v15  ;;  %1046 = vmatpush.bf16.msrb.mxu2 %v1032_v62  ;;  %v1226_v5 = vld [vmem:[#allocation15 + $0x28] sm:$0xff]  ;;  %v1020_v62 = vperm.slane %v2564_v11, 2 }
 0x163   : > { %v2574_v17 = vsub.f32 %v889_v16, %v2566_v12  ;;  %v1232_v6 = vpack.c.bf16 %v1226_v5, %v1225_v4  ;;  %v1190_v4 = vld [vmem:[#allocation13 + $0x8] sm:$0xff] }
 0x165   : > { %v898_v19 = vmul.f32 %v896_v14, %v2574_v17  ;;  %v1222_v14 = vld [vmem:[#allocation15 + $0x8] sm:$0xff] }
 0x166   : > { %v1230_v16 = vpack.c.bf16 %v1222_v14, %v1221_v10 }
 0x167   : > { %v900_v21 = vadd.f32 %v898_v19, %v2566_v12 }
 0x169   : > { %v917_v22 = vpack.c.bf16 %v900_v21, %v899_v20  ;;  %v1118_v20 = vperm.slane %v2564_v11, 5 }
 0x16b   : > { %1694 = vmatmul.msk.bf16.vlgmr.msra.gmra.mxu0 %vm821_vm0, %v917_v22  ;;  %1695 = vmatmul.msk.bf16.vlgmr.msra.gmra.mxu1 %vm821_vm0, %v917_v22 }
 0x16c   : > { %1241 = vmatpush.bf16.msra.mxu0 %v1233_v2  ;;  %v1189_v2 = vld [vmem:[#allocation13] sm:$0xff] }
 0x170   : > { %1242 = vmatpush.bf16.msra.mxu0 %v1232_v6  ;;  %v1198_v6 = vpack.c.bf16 %v1190_v4, %v1189_v2  ;;  %v1307_v2 = vld [vmem:[#allocation18 + $0x18] sm:$0xff]  ;;  %v1306_v4 = vld [vmem:[#allocation18 + $0x10] sm:$0xff] }
 0x174   : > { %1243 = vmatpush.bf16.msra.mxu0 %v1231_v9  ;;  %v1269_v9 = vld [vmem:[#allocation16 + $0x20] sm:$0xff] }
 0x178   : > { %1244 = vmatpush.bf16.msra.mxu0 %v1230_v16  ;;  %v1268_v16 = vld [vmem:[#allocation16 + $0x18] sm:$0xff] }
 0x1e8   : > { %v938_v41 = vpop.f32.mrf.mxu0  ;;  %v952_v42 = vpop.f32.mrf.mxu1 }
 0x1e9   : > { %1871 = vtanh.f32 %v938_v41  ;;  %v1131_v41 = vld [vmem:[#allocation10 + $0x30] sm:$0xff] }
 0x1ea   : > { %1873 = vtanh.f32 %v952_v42  ;;  %v1132_v42 = vld [vmem:[#allocation10 + $0x38] sm:$0xff] }
 0x1ef   : > { %v1872_v45 = vpop.eup %1871 }
 0x1f0   : > { %v940_v43 = vpop.f32.mrf.mxu0  ;;  %v954_v44 = vpop.f32.mrf.mxu1 }
 0x1f1   : > { %1875 = vtanh.f32 %v940_v43  ;;  %v1874_v46 = vpop.eup %1873  ;;  %v1137_v43 = vpack.c.bf16 %v1132_v42, %v1131_v41  ;;  %v986_v42 = vperm.slane %v2564_v11, 1 }
 0x1f2   : > { %1877 = vtanh.f32 %v954_v44  ;;  %v1129_v44 = vld [vmem:[#allocation10 + $0x20] sm:$0xff] }
 0x1f3   : > { %1145 = vmatpush.bf16.msrb.mxu1 %v1137_v43 }
 0x1f7   : > { %v1876_v47 = vpop.eup %1875 }
 0x1f8   : > { %v1878_v48 = vpop.eup %1877  ;;  %v965_v49 = vpack.c.bf16 %v1876_v47, %v1872_v45  ;;  %v1130_v45 = vld [vmem:[#allocation10 + $0x28] sm:$0xff]  ;;  %v1127_v47 = vld [vmem:[#allocation10 + $0x10] sm:$0xff] }
 0x1f9   : > { %v1098_v50 = vpack.c.bf16 %v1878_v48, %v1874_v46  ;;  %v1136_v46 = vpack.c.bf16 %v1130_v45, %v1129_v44  ;;  %v1128_v48 = vld [vmem:[#allocation10 + $0x18] sm:$0xff] }
 0x1fa   : > { %1034 = vrot.lane.b32.xlu0 %v965_v49, %s2304_s20  ;;  %1001 = vrot.lane.b32.xlu2 %v965_v49, %s2305_s26  ;;  %s2687_s26 = sld [smem:[#allocation34_spill]] }
 0x1fb   : > { %1700 = vmatmul.msk.bf16.vlgmr.msrb.gmra.mxu0 %vm968_vm9, %v1098_v50  ;;  %1696 = vmatmul.msk.bf16.vlgmr.msra.gmra.mxu2 %vm968_vm9, %v965_v49  ;;  %v1135_v50 = vpack.c.bf16 %v1128_v48, %v1127_v47 }
 0x1fc   : > { %1177 = vmatpush.bf16.msra.mxu2 %v1169_v31  ;;  %1146 = vmatpush.bf16.msrb.mxu1 %v1136_v46 }
 0x200   : > { %1178 = vmatpush.bf16.msra.mxu2 %v1168_v34  ;;  %1147 = vmatpush.bf16.msrb.mxu1 %v1135_v50 }
 0x202   : > { %1067 = vrot.lane.b32.xlu2 %v965_v49, %s2306_s2  ;;  %v1195_v49 = vld [vmem:[#allocation13 + $0x30] sm:$0xff]  ;;  %s815_s2 = scalar_lea.vmem %s2687_s26, %s2538_s1 }
 0x203   : > { %v1201_v52 = vpack.c.bf16 %v1196_v51, %v1195_v49 }
 0x204   : > { %1179 = vmatpush.bf16.msra.mxu2 %v1167_v37  ;;  %1148 = vmatpush.bf16.msrb.mxu1 %v1134_v56 }
 0x208   : > { %1180 = vmatpush.bf16.msra.mxu2 %v1166_v40  ;;  %1287 = vmatpush.msra.mxu1 %v1272_v0  ;;  %v1309_v0 = vld [vmem:[#allocation18 + $0x28] sm:$0xff] }
 0x20a   : > { %1288 = vmatpush.msra.mxu1 %v1271_v1  ;;  %v1308_v1 = vld [vmem:[#allocation18 + $0x20] sm:$0xff] }
 0x20c   : > { %1289 = vmatpush.msra.mxu1 %v1270_v8 }
 0x20e   : > { %1290 = vmatpush.msra.mxu1 %v1269_v9 }
 0x210   : > { %1291 = vmatpush.msra.mxu1 %v1268_v16 }
 0x254   : > { %v1002_v63 = vpop.permute.xlu2 %1001 }
 0x255   : > { %1697 = vmatmul.msk.bf16.vlgmr.msra.gmra.mxu3 %vm968_vm9, %v1002_v63  ;;  %v1199_v63 = vpack.c.bf16 %v1192_v61, %v1191_v60 }
 0x256   : > { %1209 = vmatpush.bf16.msra.mxu3 %v1201_v52 }
 0x25a   : > { %1210 = vmatpush.bf16.msra.mxu3 %v1200_v58 }
 0x25c   : > { %v1068_v15 = vpop.permute.xlu2 %1067 }
 0x25e   : > { %1211 = vmatpush.bf16.msra.mxu3 %v1199_v63  ;;  %v1310_v63 = vld [vmem:[#allocation18 + $0x30] sm:$0xff] }
 0x262   : > { %1212 = vmatpush.bf16.msra.mxu3 %v1198_v6 }
 0x265   : > { %1699 = vmatmul.msk.bf16.vlgmr.msrb.gmra.mxu3 %vm968_vm9, %v1068_v15 }
 0x26c   : > { %v1035_v18 = vpop.permute.xlu0 %1034 }
 0x26d   : > { %1698 = vmatmul.msk.bf16.vlgmr.msrb.gmra.mxu2 %vm968_vm9, %v1035_v18  ;;  %v1267_v18 = vld [vmem:[#allocation16 + $0x10] sm:$0xff] }
 0x26e   : > { %1292 = vmatpush.msra.mxu1 %v1267_v18 }
 0x278   : > { %v1113_v19 = vpop.f32.mrf.mxu0 }
 0x279   : > { %v1119_v21 = vadd.f32 %v1118_v20, %v1113_v19 }
 0x27b   : > { %v1121_v23 = vmul.f32 %v1119_v21, %v2569_v13 }
 0x27d   : > { %v1123_v26 = vadd.f32 %v1121_v23, %v2557_v3 }
 0x27e   : > { %v981_v7 = vpop.f32.mrf.mxu2 }
 0x27f   : > { %v987_v46 = vadd.f32 %v986_v42, %v981_v7  ;;  %v1304_v7 = vld [vmem:[#allocation18] sm:$0xff] }
 0x280   : > { %v1115_v22 = vpop.f32.mrf.mxu0 }
 0x281   : > { %v1120_v24 = vadd.f32 %v1118_v20, %v1115_v22  ;;  %v1266_v22 = vld [vmem:[#allocation16 + $0x8] sm:$0xff]  ;;  %v989_v48 = vmul.f32 %v987_v46, %v2569_v13 }
 0x282   : > { %1293 = vmatpush.msra.mxu1 %v1266_v22 }
 0x283   : > { %v1122_v25 = vmul.f32 %v1120_v24, %v2574_v17  ;;  %v991_v50 = vadd.f32 %v989_v48, %v2557_v3 }
 0x285   : > { %v1124_v27 = vadd.f32 %v1122_v25, %v2566_v12 }
 0x286   : > { %v983_v24 = vpop.f32.mrf.mxu2 }
 0x287   : > { %v1229_v28 = vpack.c.bf16 %v1124_v27, %v1123_v26  ;;  %v1265_v26 = vld [vmem:[#allocation16] sm:$0xff]  ;;  %v1086_v27 = vperm.slane %v2564_v11, 4  ;;  %v988_v51 = vadd.f32 %v986_v42, %v983_v24 }
 0x288   : > { %1294 = vmatpush.msra.mxu1 %v1265_v26 }
 0x289   : > { %1704 = vmatmul.msk.bf16.vlgmr.msra.gmra.mxu0 %vm821_vm0, %v1229_v28  ;;  %v990_v11 = vmul.f32 %v988_v51, %v2574_v17 }
 0x28b   : > { %v992_v56 = vadd.f32 %v990_v11, %v2566_v12 }
 0x2d8   : > { %v1015_v59 = vpop.f32.mrf.mxu3 }
 0x2d9   : > { %v1021_v5 = vadd.f32 %v1020_v62, %v1015_v59 }
 0x2db   : > { %v1023_v14 = vmul.f32 %v1021_v5, %v2569_v13  ;;  %v1305_v5 = vld [vmem:[#allocation18 + $0x8] sm:$0xff] }
 0x2dd   : > { %v1025_v20 = vadd.f32 %v1023_v14, %v2557_v3 }
 0x2e0   : > { %v1017_v10 = vpop.f32.mrf.mxu3 }
 0x2e1   : > { %v1022_v15 = vadd.f32 %v1020_v62, %v1017_v10  ;;  %v1311_v62 = vld [vmem:[#allocation18 + $0x38] sm:$0xff] }
 0x2e2   : > { %1326 = vmatpush.msrb.mxu2 %v1311_v62  ;;  %1717 = vmatpush.msrb.mxu3 %v1311_v62 }
 0x2e3   : > { %v1024_v19 = vmul.f32 %v1022_v15, %v2574_v17 }
 0x2e4   : > { %1327 = vmatpush.msrb.mxu2 %v1310_v63  ;;  %1718 = vmatpush.msrb.mxu3 %v1310_v63 }
 0x2e5   : > { %v1026_v21 = vadd.f32 %v1024_v19, %v2566_v12 }
 0x2e6   : > { %1328 = vmatpush.msrb.mxu2 %v1309_v0  ;;  %1719 = vmatpush.msrb.mxu3 %v1309_v0 }
 0x2e7   : > { %v1165_v23 = vpack.c.bf16 %v1026_v21, %v1025_v20  ;;  %v1864_v21 = vld [vmem:[#allocation19] ss:$0 sm:$0xff] }
 0x2e8   : > { %v1081_v25 = vpop.f32.mrf.mxu3  ;;  %1329 = vmatpush.msrb.mxu2 %v1308_v1  ;;  %1720 = vmatpush.msrb.mxu3 %v1308_v1 }
 0x2e9   : > { %1702 = vmatmul.msk.bf16.vlgmr.msra.gmra.mxu2 %vm821_vm0, %v1165_v23  ;;  %v1087_v28 = vadd.f32 %v1086_v27, %v1081_v25 }
 0x2ea   : > { %1330 = vmatpush.msrb.mxu2 %v1307_v2  ;;  %1721 = vmatpush.msrb.mxu3 %v1307_v2 }
 0x2eb   : > { %v1089_v31 = vmul.f32 %v1087_v28, %v2569_v13 }
 0x2ec   : > { %1331 = vmatpush.msrb.mxu2 %v1306_v4  ;;  %1722 = vmatpush.msrb.mxu3 %v1306_v4 }
 0x2ed   : > { %v1091_v35 = vadd.f32 %v1089_v31, %v2557_v3 }
 0x2ee   : > { %1332 = vmatpush.msrb.mxu2 %v1305_v5  ;;  %1723 = vmatpush.msrb.mxu3 %v1305_v5 }
 0x2f0   : > { %v1048_v29 = vpop.f32.mrf.mxu2  ;;  %v1083_v30 = vpop.f32.mrf.mxu3  ;;  %1333 = vmatpush.msrb.mxu2 %v1304_v7  ;;  %1724 = vmatpush.msrb.mxu3 %v1304_v7 }
 0x2f1   : > { %v1088_v33 = vadd.f32 %v1086_v27, %v1083_v30  ;;  %v1054_v36 = vadd.f32 %v1053_v32, %v1048_v29 }
 0x2f3   : > { %v1090_v34 = vmul.f32 %v1088_v33, %v2574_v17  ;;  %v1056_v40 = vmul.f32 %v1054_v36, %v2569_v13 }
 0x2f5   : > { %v1092_v37 = vadd.f32 %v1090_v34, %v2566_v12  ;;  %v1058_v44 = vadd.f32 %v1056_v40, %v2557_v3 }
 0x2f7   : > { %v1133_v38 = vpack.c.bf16 %v1092_v37, %v1091_v35 }
 0x2f8   : > { %v1050_v39 = vpop.f32.mrf.mxu2 }
 0x2f9   : > { %v1055_v41 = vadd.f32 %v1053_v32, %v1050_v39  ;;  %1701 = vmatmul.msk.bf16.vlgmr.msrb.gmra.mxu1 %vm821_vm0, %v1133_v38 }
 0x2fb   : > { %v1057_v43 = vmul.f32 %v1055_v41, %v2574_v17 }
 0x2fd   : > { %v1059_v45 = vadd.f32 %v1057_v43, %v2566_v12 }
 0x2ff   : > { %v1197_v47 = vpack.c.bf16 %v1059_v45, %v1058_v44 }
 0x301   : > { %1703 = vmatmul.msk.bf16.vlgmr.msra.gmra.mxu3 %vm821_vm0, %v1197_v47 }
 0x306   : > { %v1246_v49 = vpop.f32.mrf.mxu0 }
 0x307   : > { %v1251_v52 = vsub.f32 0.0, %v1246_v49 }
 0x309   : > { %v1253_v53 = vmul.f32 1.442695, %v1251_v52  ;;  %1705 = vmatmul.msk.f32.vlgmr.msra.gmra.mxu1 %vm821_vm0, %v991_v50 }
 0x30b   : > { %1879 = vpow2.f32 %v1253_v53 }
 0x30e   : > { %v1248_v54 = vpop.f32.mrf.mxu0 }
 0x30f   : > { %v1252_v55 = vsub.f32 0.0, %v1248_v54 }
 0x311   : > { %v1880_v57 = vpop.eup %1879  ;;  %v1255_v58 = vmul.f32 1.442695, %v1252_v55  ;;  %1706 = vmatmul.msk.f32.gmra.mxu1 %vm821_vm0, %v992_v56 }
 0x312   : > { %v1257_v13 = vadd.f32 1.0, %v1880_v57 }
 0x313   : > { %1881 = vpow2.f32 %v1255_v58 }
 0x314   : > { %1883 = vrcp.f32 %v1257_v13 }
 0x319   : > { %v1882_v3 = vpop.eup %1881 }
 0x31a   : > { %v1884_v59 = vpop.eup %1883  ;;  %v1258_v60 = vadd.f32 1.0, %v1882_v3 }
 0x31b   : > { %v1261_v17 = vmul.f32 %v1884_v59, %v1246_v49 }
 0x31c   : > { %1885 = vrcp.f32 %v1258_v60 }
 0x31d   : > { %1263 = vst.msk [vmem:[%s810_s28] sm:$0xff] %vm821_vm0, %v1261_v17 }
 0x322   : > { %v1886_v61 = vpop.eup %1885 }
 0x323   : > { %v1262_v12 = vmul.f32 %v1886_v61, %v1248_v54 }
 0x325   : > { %1264 = vst.msk [vmem:[%s810_s28 + $0x8] sm:$0xff] %vm821_vm0, %v1262_v12 }
 0x36c   : > { %v1182_v6 = vpop.f32.mrf.mxu2 }
 0x36d   : > { %1187 = vst.msk [vmem:[%s800_s22] sm:$0xff] %vm821_vm0, %v1182_v6 }
 0x374   : > { %v1184_v8 = vpop.f32.mrf.mxu2 }
 0x375   : > { %1188 = vst.msk [vmem:[%s800_s22 + $0x8] sm:$0xff] %vm821_vm0, %v1184_v8 }
 0x376   : > { %v1150_v9 = vpop.f32.mrf.mxu1 }
 0x377   : > { %1155 = vst.msk [vmem:[%s795_s24] sm:$0xff] %vm821_vm0, %v1150_v9 }
 0x37e   : > { %v1152_v10 = vpop.f32.mrf.mxu1 }
 0x37f   : > { %1156 = vst.msk [vmem:[%s795_s24 + $0x8] sm:$0xff] %vm821_vm0, %v1152_v10 }
 0x384   : > { %v1214_v14 = vpop.f32.mrf.mxu3 }
 0x385   : > { %1219 = vst.msk [vmem:[%s805_s19] sm:$0xff] %vm821_vm0, %v1214_v14 }
 0x386   : > { %v1296_v15 = vpop.f32.mrf.mxu1 }
 0x387   : > { %1887 = vtanh.f32 %v1296_v15 }
 0x38c   : > { %v1216_v16 = vpop.f32.mrf.mxu3 }
 0x38d   : > { %v1888_v18 = vpop.eup %1887  ;;  %1220 = vst.msk [vmem:[%s805_s19 + $0x8] sm:$0xff] %vm821_vm0, %v1216_v16 }
 0x38e   : > { %v1299_v19 = vpop.f32.mrf.mxu1  ;;  %1707 = vmatmul.msk.f32.vlgmr.msrb.gmra.mxu2 %vm821_vm0, %v1888_v18 }
 0x38f   : > { %1889 = vtanh.f32 %v1299_v19 }
 0x395   : > { %v1890_v20 = vpop.eup %1889 }
 0x396   : > { %1708 = vmatmul.msk.f32.vlgmr.msrb.gmra.mxu3 %vm821_vm0, %v1890_v20 }
 0x411   : > { %v1335_v22 = vpop.f32.mrf.mxu2 }
 0x412   : > { %v1345_v23 = vadd.f32 %v1864_v21, %v1335_v22 }
 0x414   : > { %1347 = vst.msk [vmem:[%s815_s2] sm:$0xff] %vm821_vm0, %v1345_v23 }
 0x419   : > { %v1338_v24 = vpop.f32.mrf.mxu3 }
 0x41a   : > { %v1346_v25 = vadd.f32 %v1864_v21, %v1338_v24 }
 0x41c   : > { %1348 = vst.msk [vmem:[%s815_s2 + $0x8] sm:$0xff] %vm821_vm0, %v1346_v25 }
 0x41d PF: > { %s2688_s27 = sld [smem:[#allocation28_spill]] }
 0x423   : > { %s36_s27 = sadd.s32 1, %s2688_s27  }
 0x424   : > { %p33_p7 = scmp.ge.s32.totalorder %s36_s27, 4  }
 0x426   :  { %35 = sbr.rel (!%p33_p7) target bundleno = 14 (0xe), region = 207 }
 0x42b   :  { %1434 = vsyncpa [#allocation3], 1 }
 0x42c   :  { %1436 = vsyncpa [#allocation3 + $0x1], 1 }
 0x42d   :  { %1437 = vsyncpa [#allocation5], 1 }
 0x42e   :  { %1438 = vsyncpa [#allocation8], 1 }
 0x42f   :  { %1439 = vsyncpa [#allocation11], 1 }
 0x430   :  { %1440 = vsyncpa [#allocation14], 1 }
 0x431   :  { %1441 = vsyncpa [#allocation17], 1 }
 0x432   :  { %1442 = vsyncpa [#allocation20], 1 }

// kernel: _lambda_.8
= control target key start
LH: loop header
LB: loop body
LE: loop exit
PB: predicated region body
PF: predicated region fallthrough
CT: control target
= control target key end

     0   :  { %s1111_s21 = smov 0   ;;  %s1326_s0 = inlined_call_operand.vmem [shape: f32[2,16,64], index: 0, kind: input, shape index: {}]   ;;  %s1327_s1 = inlined_call_operand.vmem [shape: f32[2,16,64], index: 1, kind: input, shape index: {}]   ;;  %s1328_s2 = inlined_call_operand.vmem [shape: f32[2,16,64], index: 2, kind: input, shape index: {}]   ;;  %s1329_s3 = inlined_call_operand.vmem [shape: f32[2,16,64], index: 3, kind: input, shape index: {}]   ;;  %s1330_s4 = inlined_call_operand.vmem [shape: f32[1,64], index: 4, kind: input, shape index: {}]   ;;  %s1331_s5 = inlined_call_operand.vmem [shape: f32[2,32,32], index: 5, kind: input, shape index: {}]   ;;  %s1332_s6 = inlined_call_operand.vmem [shape: f32[2,16,64], index: 6, kind: output, shape index: {}]  }
   0x1 LB: > { %s984_s22 = sadd.s32 4294967295, %s1071_s21   ;;  %p988_p0 = scmp.ge.s32.totalorder %s1071_s21, 1  ;;  %s1071_s21 = sphi %s1111_s21, %s16_s21  }
   0x2   : > { %p242_p1 = scmp.lt.s32.totalorder %s1071_s21, 3 }
   0x4   : > { %p243_p2 = pnand %p988_p0, %p242_p1 }
   0x5   : > { %p287_p3 = scmp.lt.s32.totalorder (!%p243_p2), %s984_s22, 1  ;;  %s1074_s9 = smov (!%p243_p2), 96  }
   0x6   : > { %246 = sbr.rel (%p243_p2) target bundleno = 985 (0x3d9), region = 44 }
   0xb   : > { %s1334_s22 = smov (!%p287_p3, %s984_s22), 1  ;;  %v330_v4 = vlaneseq  ;;  %v1073_v11 = vmov 0.0   ;;  %vm357_vm1 = vcmask 130048   ;;  %v1050_v36 = vld [vmem:[%s1330_s4] ss:$0 sm:$0xff]  ;;  %vm321_vm3 = vcmask 261120  }
   0xc   : > { %s1119_s23 = sshll.u32 %s1334_s22, 4  ;;  %v316_v49 = vld [vmem:[%s1331_s5 + $0x18] sm:$0xff]  ;;  %v315_v50 = vld [vmem:[%s1331_s5 + $0x10] sm:$0xff]  ;;  %v314_v51 = vld [vmem:[%s1331_s5 + $0x8] sm:$0xff]  ;;  %vm801_vm6 = vcmask 523520  }
   0xd   : > { %s306_s26 = scalar_lea.vmem %s1329_s3, %s1119_s23  ;;  %v1125_v5 = vshrl.u32 %v330_v4, 7  ;;  %v1127_v6 = vand.u32 127, %v330_v4  ;;  %s291_s29 = scalar_lea.vmem %s1326_s0, %s1119_s23  ;;  %325 = vst.msk [vmem:[#allocation2 + $0x18] sm:$0xff] %vm321_vm3, %v316_v49  ;;  %v313_v55 = vld [vmem:[%s1331_s5] sm:$0xff]  ;;  %v320_v58 = vld [vmem:[%s1331_s5 + $0x38] sm:$0xff]  ;;  %v319_v59 = vld [vmem:[%s1331_s5 + $0x30] sm:$0xff] }
   0xe   : > { %v350_v0 = vld [vmem:[%s306_s26 + $0x8] sm:$0xff]  ;;  %v349_v1 = vld [vmem:[%s306_s26] sm:$0xff]  ;;  %s296_s8 = scalar_lea.vmem %s1327_s1, %s1119_s23  ;;  %s301_s16 = scalar_lea.vmem %s1328_s2, %s1119_s23  ;;  %324 = vst.msk [vmem:[#allocation2 + $0x10] sm:$0xff] %vm321_vm3, %v315_v50 }
   0xf   : > { %v353_v2 = vmul.f32 1.442695, %v350_v0  ;;  %v351_v3 = vmul.f32 1.442695, %v349_v1  ;;  %vm335_vm0 = vcmp.le.s32.totalorder %v1127_v6, %v1125_v5  ;;  %v1132_v13 = vadd.s32 8, %v1125_v5  ;;  %v343_v22 = vld [vmem:[%s291_s29] sm:$0xff]  ;;  %s1306_s11 = scalar_lea.vmem %s1332_s6, %s1119_s23 }
  0x10   : > { %v999_v12 = vsel %vm335_vm0, 1.0, %v1073_v11  ;;  %v345_v23 = vld [vmem:[%s296_s8] sm:$0xff]  ;;  %v346_v31 = vld [vmem:[%s296_s8 + $0x8] sm:$0xff]  ;;  %v408_v38 = vmul.f32 %v1050_v36, %v343_v22  ;;  %323 = vst.msk [vmem:[#allocation2 + $0x8] sm:$0xff] %vm321_vm3, %v314_v51  ;;  %vm341_vm4 = vcmp.gt.s32.totalorder %v1125_v5, %v1127_v6  ;;  %s1075_s23 = smov 32  }
  0x11   : > { %1051 = vpow2.f32 %v353_v2  ;;  %vm336_vm2 = vcmp.le.s32.totalorder %v1127_v6, %v1132_v13  ;;  %v344_v35 = vld [vmem:[%s291_s29 + $0x8] sm:$0xff]  ;;  %v1185_v52 = vld [vmem:[%s301_s16] sm:$0xff]  ;;  %322 = vst.msk [vmem:[#allocation2] sm:$0xff] %vm321_vm3, %v313_v55  ;;  %vm342_vm5 = vcmp.gt.s32.totalorder %v1132_v13, %v1127_v6 }
  0x12   : > { %1053 = vpow2.f32 %v351_v3  ;;  %v1000_v14 = vsel %vm336_vm2, 1.0, %v1073_v11  ;;  %v410_v39 = vmul.f32 %v408_v38, %v345_v23  ;;  %v409_v40 = vmul.f32 %v1050_v36, %v344_v35  ;;  %v1187_v53 = vld [vmem:[%s301_s16 + $0x8] sm:$0xff]  ;;  %329 = vst.msk [vmem:[#allocation2 + $0x38] sm:$0xff] %vm321_vm3, %v320_v58  ;;  %v317_v61 = vld [vmem:[%s1331_s5 + $0x20] sm:$0xff] }
  0x13   : > { %v1045_v54 = vpack.i.bf16 %v1185_v52, %v1187_v53  ;;  %328 = vst.msk [vmem:[#allocation2 + $0x30] sm:$0xff] %vm321_vm3, %v319_v59  ;;  %v318_v60 = vld [vmem:[%s1331_s5 + $0x28] sm:$0xff] }
  0x14   : > { %v411_v41 = vmul.f32 %v409_v40, %v346_v31  ;;  %v479_v47 = vsel %vm321_vm3, %v410_v39, 0.0  ;;  %327 = vst.msk [vmem:[#allocation2 + $0x28] sm:$0xff] %vm321_vm3, %v318_v60  ;;  %v1220_v2 = vld [vmem:[#allocation2 + $0x18] sm:$0xff] }
  0x15   : > { %326 = vst.msk [vmem:[#allocation2 + $0x20] sm:$0xff] %vm321_vm3, %v317_v61  ;;  %v1228_v4 = vld [vmem:[#allocation2 + $0x10] sm:$0xff] }
  0x16   : > { %v482_v48 = vsel %vm321_vm3, %v411_v41, 0.0 }
  0x17   : > { %v1052_v7 = vpop.eup %1051 }
  0x18   : > { %v1054_v8 = vpop.eup %1053  ;;  %v356_v9 = vsub.f32 0.0, %v1052_v7  ;;  %v1232_v7 = vld [vmem:[#allocation2 + $0x8] sm:$0xff] }
  0x19   : > { %v355_v10 = vsub.f32 0.0, %v1054_v8  ;;  %v444_v8 = vld [vmem:[#allocation2] sm:$0xff] }
  0x1a   : > { %378 = vmatpush.msra.mxu0 %v356_v9 }
  0x1b   : > { %v1246_v11 = vld [vmem:[#allocation2 + $0x28] sm:$0xff] }
  0x1c   : > { %379 = vmatpush.msra.mxu0 %v355_v10 }
  0x1d   : > { %1001 = vmatmul.msk.f32.vlgmr.msra.gmra.mxu0 %vm357_vm1, %v999_v12  ;;  %v1249_v12 = vld [vmem:[#allocation2 + $0x20] sm:$0xff] }
  0x1e   : > { %602 = vmatpush.msrb.mxu0 %v1187_v53 }
  0x20   : > { %603 = vmatpush.msrb.mxu0 %v1185_v52 }
  0x25   : > { %1002 = vmatmul.msk.f32.gmra.mxu0 %vm357_vm1, %v1000_v14 }
  0x9a   : > { %v381_v15 = vpop.f32.mrf.mxu0 }
  0x9b   : > { %v387_v16 = vsub.f32 %v381_v15, %v355_v10  ;;  %v395_v17 = vsub.f32 0.0, %v381_v15  ;;  %v1242_v10 = vld [vmem:[#allocation2 + $0x30] sm:$0xff] }
  0x9d   : > { %v389_v18 = vmul.f32 1.442695, %v387_v16  ;;  %v397_v19 = vmul.f32 1.442695, %v395_v17 }
  0x9f   : > { %1055 = vpow2.f32 %v389_v18 }
  0xa0   : > { %1057 = vpow2.f32 %v397_v19 }
  0xa2   : > { %v1146_v20 = vpop.f32.mrf.mxu0 }
  0xa3   : > { %v396_v21 = vsub.f32 0.0, %v1146_v20  ;;  %v388_v27 = vsub.f32 %v1146_v20, %v356_v9  ;;  %v403_v63 = vmul.f32 1.442695, %v1146_v20  ;;  %v1238_v9 = vld [vmem:[#allocation2 + $0x38] sm:$0xff] }
  0xa5   : > { %v1056_v24 = vpop.eup %1055  ;;  %v399_v25 = vmul.f32 1.442695, %v396_v21  ;;  %v391_v30 = vmul.f32 1.442695, %v388_v27 }
  0xa6   : > { %v1058_v26 = vpop.eup %1057  ;;  %v1150_v28 = vmul.f32 %v1056_v24, %v343_v22 }
  0xa7   : > { %v401_v29 = vmul.f32 %v1058_v26, %v345_v23  ;;  %1059 = vpow2.f32 %v399_v25 }
  0xa8   : > { %674 = vrot.lane.b32.xlu2 %v1150_v28, %s1074_s9  ;;  %1061 = vpow2.f32 %v391_v30 }
  0xa9   : > { %412 = vxpose.xlu1.b32.start [1/2] (short) (narrow) %v401_v29, 32  ;;  %631 = vrot.lane.b32.xlu0 %v401_v29, %s1074_s9  ;;  %1063 = vpow2.f32 %v403_v63 }
  0xad   : > { %v1060_v32 = vpop.eup %1059 }
  0xae   : > { %v402_v33 = vmul.f32 %v1060_v32, %v346_v31  ;;  %v1062_v34 = vpop.eup %1061 }
  0xaf   : > { %v1159_v37 = vmul.f32 %v1062_v34, %v344_v35  ;;  %v1064_v1 = vpop.eup %1063 }
  0xb0   : > { %v1222_v3 = vperm.slane %v1064_v1, 7 }
  0xb1   : > { %413 = vxpose.xlu1.b32.end [2/2] (short) (narrow) %v402_v33, 32  ;;  %633 = vrot.lane.b32.xlu0 %v402_v33, %s1074_s9 }
  0xb9   : > { %676 = vrot.lane.b32.xlu0 %v1159_v37, %s1074_s9 }
  0xc1   : > { %709 = vrot.lane.b32.xlu0 %v410_v39, %s1074_s9 }
  0xc9   : > { %711 = vrot.lane.b32.xlu0 %v411_v41, %s1074_s9 }
 0x102   : > { %v675_v14 = vpop.permute.xlu2 %674 }
 0x11b   : > { %v632_v42 = vpop.permute.xlu0 %631  ;;  %1046 = vrot.lane.b32.xlu1 %v1045_v54, %s1074_s9 }
 0x11c   : > { %637 = vxpose.xlu2.b32.start [1/2] (short) (narrow) %v632_v42, 32 }
 0x123   : > { %v634_v43 = vpop.permute.xlu0 %633 }
 0x124   : > { %638 = vxpose.xlu2.b32.end [2/2] (short) (narrow) %v634_v43, 32 }
 0x12b   : > { %v1165_v44 = vpop.permute.xlu0 %676 }
 0x133   : > { %v710_v45 = vpop.permute.xlu0 %709 }
 0x134   : > { %v715_v46 = vsel %vm321_vm3, %v710_v45, 0.0 }
 0x135   : > { %716 = vadd.xlane.f32.xlu0 %v715_v46 }
 0x13b   : > { %v712_v15 = vpop.permute.xlu0 %711 }
 0x13c   : > { %v718_v16 = vsel %vm321_vm3, %v712_v15, 0.0 }
 0x13d   : > { %480 = vadd.xlane.f32.xlu0 %v479_v47 }
 0x145   : > { %483 = vadd.xlane.f32.xlu0 %v482_v48 }
 0x14d   : > { %v428_v56 = vpop.trf.xlu1 }
 0x14e   : > { %1009 = vmatmul.msk.f32.vlgmr.msrb.gmra.mxu0 %vm357_vm1, %v428_v56 }
 0x155   : > { %v429_v57 = vpop.trf.xlu1 }
 0x156   : > { %1010 = vmatmul.msk.f32.gmra.mxu0 %vm357_vm1, %v429_v57 }
 0x15d   : > { %v430_v62 = vpop.trf.xlu1 }
 0x15e   : > { %1011 = vmatmul.msk.f32.gmra.mxu0 %vm357_vm1, %v430_v62 }
 0x165   : > { %v431_v0 = vpop.trf.xlu1 }
 0x166   : > { %466 = vmatpush.msra.mxu1 %v431_v0  ;;  %1030 = vmatpush.msra.mxu3 %v431_v0 }
 0x167   : > { %1012 = vmatmul.msk.f32.gmra.mxu0 %vm357_vm1, %v431_v0 }
 0x168   : > { %467 = vmatpush.msra.mxu1 %v430_v62  ;;  %1031 = vmatpush.msra.mxu3 %v430_v62 }
 0x16a   : > { %468 = vmatpush.msra.mxu1 %v429_v57  ;;  %1032 = vmatpush.msra.mxu3 %v429_v57 }
 0x16c   : > { %469 = vmatpush.msra.mxu1 %v428_v56  ;;  %1033 = vmatpush.msra.mxu3 %v428_v56 }
 0x16d   : > { %1003 = vmatmul.msk.f32.vlgmr.msra.gmra.mxu1 %vm321_vm3, %v1150_v28  ;;  %1004 = vmatmul.msk.f32.vlgmr.msra.gmra.mxu3 %vm321_vm3, %v1159_v37 }
 0x16e   : > { %526 = vmatpush.msrb.mxu3 %v1220_v2  ;;  %544 = vxpose.xlu0.b32.start [1/4] (short) (narrow) %v1222_v3, 32 }
 0x16f   : > { %505 = vmatpush.msrb.mxu1 %v1187_v53 }
 0x170   : > { %527 = vmatpush.msrb.mxu3 %v1228_v4 }
 0x171   : > { %506 = vmatpush.msrb.mxu1 %v1185_v52 }
 0x172   : > { %528 = vmatpush.msrb.mxu3 %v1232_v7 }
 0x174   : > { %529 = vmatpush.msrb.mxu3 %v444_v8 }
 0x175   : > { %1007 = vmatmul.msk.f32.vlgmr.msrb.gmra.mxu3 %vm321_vm3, %v1150_v28 }
 0x176   : > { %545 = vxpose.xlu0.b32.cont [2/4] (short) (narrow) %v1222_v3, 32  ;;  %770 = vmatpush.msra.mxu3 %v1238_v9 }
 0x178   : > { %771 = vmatpush.msra.mxu3 %v1242_v10 }
 0x17a   : > { %772 = vmatpush.msra.mxu3 %v1246_v11 }
 0x17c   : > { %773 = vmatpush.msra.mxu3 %v1249_v12 }
 0x17d   : > { %1008 = vmatmul.msk.f32.gmra.mxu3 %vm321_vm3, %v1159_v37 }
 0x17e   : > { %546 = vxpose.xlu0.b32.cont [3/4] (short) (narrow) %v1222_v3, 32 }
 0x185   : > { %1017 = vmatmul.msk.f32.vlgmr.msra.gmra.mxu3 %vm321_vm3, %v675_v14 }
 0x186   : > { %547 = vxpose.xlu0.b32.end [4/4] (short) (narrow) %v1222_v3, 32 }
 0x18d   : > { %1018 = vmatmul.msk.f32.gmra.mxu3 %vm321_vm3, %v1165_v44  ;;  %v1047_v19 = vpop.permute.xlu1 %1046 }
 0x18e   : > { %v1048_v20 = vunpack.i.l.bf16 %v1047_v19  ;;  %v1049_v21 = vunpack.i.h.bf16 %v1047_v19 }
 0x190   : > { %749 = vmatpush.msra.mxu1 %v1048_v20 }
 0x192   : > { %750 = vmatpush.msra.mxu1 %v1049_v21 }
 0x1a5   : > { %719 = vadd.xlane.f32.xlu2 %v718_v16 }
 0x1a8   : > { %v717_v24 = vpop.xlane.xlu0 %716 }
 0x1a9   : > { %v781_v25 = vmul.f32 %v717_v24, %v1185_v52 }
 0x1ab   : > { %785 = vrot.lane.b32.xlu1 %v781_v25, %s1074_s9 }
 0x1b0   : > { %v481_v30 = vpop.xlane.xlu0 %480 }
 0x1b1   : > { %v537_v57 = vmul.f32 %v481_v30, %v1185_v52 }
 0x1b5   : > { %v653_v17 = vpop.trf.xlu2 }
 0x1b8   : > { %v484_v32 = vpop.xlane.xlu0 %483 }
 0x1b9   : > { %v538_v6 = vmul.f32 %v484_v32, %v1187_v53 }
 0x1bd   : > { %v654_v18 = vpop.trf.xlu2 }
 0x1c5   : > { %v655_v22 = vpop.trf.xlu2 }
 0x1cb   : > { %v605_v31 = vpop.f32.mrf.mxu0 }
 0x1cc   : > { %v617_v33 = vadd.f32 %v605_v31, %v444_v8 }
 0x1cd   : > { %v656_v23 = vpop.trf.xlu2 }
 0x1ce   : > { %694 = vmatpush.msra.mxu2 %v656_v23 }
 0x1d0   : > { %695 = vmatpush.msra.mxu2 %v655_v22 }
 0x1d2   : > { %696 = vmatpush.msra.mxu2 %v654_v18 }
 0x1d3   : > { %v608_v34 = vpop.f32.mrf.mxu0 }
 0x1d4   : > { %697 = vmatpush.msra.mxu2 %v653_v17  ;;  %v618_v37 = vadd.f32 %v608_v34, %v1232_v7 }
 0x1d5   : > { %1013 = vmatmul.msk.f32.vlgmr.msra.gmra.mxu2 %vm321_vm3, %v675_v14 }
 0x1d6   : > { %866 = vmatpush.msrb.mxu2 %v1048_v20 }
 0x1d8   : > { %867 = vmatpush.msrb.mxu2 %v1049_v21 }
 0x1db   : > { %v611_v41 = vpop.f32.mrf.mxu0 }
 0x1dc   : > { %v619_v43 = vadd.f32 %v611_v41, %v1228_v4 }
 0x1dd   : > { %1014 = vmatmul.msk.f32.gmra.mxu2 %vm321_vm3, %v1165_v44 }
 0x1e4   : > { %v614_v46 = vpop.f32.mrf.mxu0 }
 0x1e5   : > { %1019 = vmatmul.msk.f32.vlgmr.msrb.gmra.mxu2 %vm357_vm1, %v653_v17  ;;  %v620_v47 = vadd.f32 %v614_v46, %v1220_v2 }
 0x1ea   : > { %v471_v26 = vpop.f32.mrf.mxu1 }
 0x1eb   : > { %v477_v27 = vsel %vm341_vm4, %v471_v26, 0.0 }
 0x1ec   : > { %1005 = vmatmul.msk.f32.vlgmr.msrb.gmra.mxu1 %vm357_vm1, %v477_v27 }
 0x1ed   : > { %1020 = vmatmul.msk.f32.gmra.mxu2 %vm357_vm1, %v654_v18 }
 0x1f0   : > { %v474_v28 = vpop.f32.mrf.mxu3 }
 0x1f1   : > { %v478_v29 = vsel %vm342_vm5, %v474_v28, 0.0 }
 0x1f4   : > { %1006 = vmatmul.msk.f32.gmra.mxu1 %vm357_vm1, %v478_v29 }
 0x1f5   : > { %1021 = vmatmul.msk.f32.gmra.mxu2 %vm357_vm1, %v655_v22 }
 0x1f8   : > { %v531_v56 = vpop.f32.mrf.mxu3 }
 0x1fd   : > { %1022 = vmatmul.msk.f32.gmra.mxu2 %vm357_vm1, %v656_v23 }
 0x200   : > { %v534_v13 = vpop.f32.mrf.mxu3 }
 0x208   : > { %v775_v52 = vpop.f32.mrf.mxu3 }
 0x212   : > { %v560_v35 = vpop.trf.xlu0 }
 0x213   : > { %v621_v36 = vmul.f32 %v617_v33, %v560_v35 }
 0x215   : > { %625 = vst.msk [vmem:[#allocation2] sm:$0xff] %vm321_vm3, %v621_v36 }
 0x218   : > { %v720_v38 = vpop.xlane.xlu2 %719 }
 0x219   : > { %v782_v39 = vmul.f32 %v720_v38, %v1187_v53 }
 0x21a   : > { %v561_v40 = vpop.trf.xlu0 }
 0x21b   : > { %787 = vrot.lane.b32.xlu1 %v782_v39, %s1074_s9  ;;  %v622_v42 = vmul.f32 %v618_v37, %v561_v40 }
 0x21d   : > { %626 = vst.msk [vmem:[#allocation2 + $0x8] sm:$0xff] %vm321_vm3, %v622_v42  ;;  %v786_v63 = vpop.permute.xlu1 %785 }
 0x222   : > { %v562_v44 = vpop.trf.xlu0 }
 0x223   : > { %805 = vrot.lane.b32.xlu1 %v1222_v3, %s1074_s9  ;;  %v623_v45 = vmul.f32 %v619_v43, %v562_v44  ;;  %v778_v3 = vpop.f32.mrf.mxu3 }
 0x225   : > { %627 = vst.msk [vmem:[#allocation2 + $0x10] sm:$0xff] %vm321_vm3, %v623_v45 }
 0x22a   : > { %v563_v48 = vpop.trf.xlu0 }
 0x22b   : > { %v624_v49 = vmul.f32 %v620_v47, %v563_v48 }
 0x22d   : > { %628 = vst.msk [vmem:[#allocation2 + $0x18] sm:$0xff] %vm321_vm3, %v624_v49 }
 0x258   : > { %v699_v50 = vpop.f32.mrf.mxu2 }
 0x259   : > { %v705_v51 = vsel %vm341_vm4, %v699_v50, 0.0 }
 0x25a   : > { %1015 = vmatmul.msk.f32.vlgmr.msra.gmra.mxu1 %vm357_vm1, %v705_v51 }
 0x260   : > { %v702_v54 = vpop.f32.mrf.mxu2 }
 0x261   : > { %v706_v55 = vsel %vm342_vm5, %v702_v54, 0.0 }
 0x262   : > { %1016 = vmatmul.msk.f32.gmra.mxu1 %vm357_vm1, %v706_v55 }
 0x268   : > { %v869_v17 = vpop.f32.mrf.mxu2 }
 0x269   : > { %v508_v58 = vpop.f32.mrf.mxu1  ;;  %v881_v18 = vadd.f32 %v869_v17, %v1249_v12 }
 0x26a   : > { %v532_v59 = vadd.f32 %v531_v56, %v508_v58 }
 0x26c   : > { %v539_v5 = vadd.f32 %v537_v57, %v532_v59 }
 0x26e   : > { %541 = vst.msk [vmem:[%s1306_s11] sm:$0xff] %vm321_vm3, %v539_v5 }
 0x270   : > { %v872_v19 = vpop.f32.mrf.mxu2 }
 0x271   : > { %v511_v60 = vpop.f32.mrf.mxu1  ;;  %v882_v22 = vadd.f32 %v872_v19, %v1246_v11 }
 0x272   : > { %v535_v61 = vadd.f32 %v534_v13, %v511_v60 }
 0x274   : > { %v540_v62 = vadd.f32 %v538_v6, %v535_v61 }
 0x276   : > { %542 = vst.msk [vmem:[%s1306_s11 + $0x8] sm:$0xff] %vm321_vm3, %v540_v62 }
 0x278   : > { %v875_v25 = vpop.f32.mrf.mxu2 }
 0x279   : > { %v883_v26 = vadd.f32 %v875_v25, %v1242_v10 }
 0x280   : > { %v878_v29 = vpop.f32.mrf.mxu2 }
 0x281   : > { %v884_v12 = vadd.f32 %v878_v29, %v1238_v9 }
 0x28d   : > { %v788_v8 = vpop.permute.xlu1 %787 }
 0x295   : > { %v806_v14 = vpop.permute.xlu1 %805 }
 0x2d7   : > { %v752_v0 = vpop.f32.mrf.mxu1 }
 0x2d8   : > { %v776_v1 = vadd.f32 %v775_v52, %v752_v0 }
 0x2da   : > { %v791_v2 = vadd.f32 %v786_v63, %v776_v1 }
 0x2dc   : > { %795 = vrot.lane.b32.xlu1 %v791_v2, %s1075_s23 }
 0x2df   : > { %v755_v4 = vpop.f32.mrf.mxu1 }
 0x2e0   : > { %v779_v7 = vadd.f32 %v778_v3, %v755_v4 }
 0x2e2   : > { %v792_v53 = vadd.f32 %v788_v8, %v779_v7 }
 0x2e4   : > { %797 = vrot.lane.b32.xlu1 %v792_v53, %s1075_s23 }
 0x319   : > { %808 = vxpose.xlu1.b32.start [1/4] (short) (narrow) %v806_v14, 32 }
 0x321   : > { %809 = vxpose.xlu1.b32.cont [2/4] (short) (narrow) %v806_v14, 32 }
 0x329   : > { %810 = vxpose.xlu1.b32.cont [3/4] (short) (narrow) %v806_v14, 32 }
 0x331   : > { %811 = vxpose.xlu1.b32.end [4/4] (short) (narrow) %v806_v14, 32 }
 0x34e   : > { %v796_v15 = vpop.permute.xlu1 %795 }
 0x34f   : > { %802 = vst.msk [vmem:[%s1306_s11] sm:$0xff] %vm801_vm6, %v796_v15 }
 0x356   : > { %v798_v16 = vpop.permute.xlu1 %797 }
 0x357   : > { %803 = vst.msk [vmem:[%s1306_s11 + $0x8] sm:$0xff] %vm801_vm6, %v798_v16 }
 0x3bd   : > { %v824_v20 = vpop.trf.xlu1 }
 0x3be   : > { %v885_v21 = vmul.f32 %v881_v18, %v824_v20 }
 0x3c0   : > { %889 = vst.msk [vmem:[#allocation2 + $0x20] sm:$0xff] %vm321_vm3, %v885_v21 }
 0x3c5   : > { %v825_v23 = vpop.trf.xlu1 }
 0x3c6   : > { %v886_v24 = vmul.f32 %v882_v22, %v825_v23 }
 0x3c8   : > { %890 = vst.msk [vmem:[#allocation2 + $0x28] sm:$0xff] %vm321_vm3, %v886_v24 }
 0x3cd   : > { %v826_v27 = vpop.trf.xlu1 }
 0x3ce   : > { %v887_v28 = vmul.f32 %v883_v26, %v826_v27 }
 0x3d0   : > { %891 = vst.msk [vmem:[#allocation2 + $0x30] sm:$0xff] %vm321_vm3, %v887_v28 }
 0x3d5   : > { %v827_v30 = vpop.trf.xlu1 }
 0x3d6   : > { %v888_v31 = vmul.f32 %v884_v12, %v827_v30 }
 0x3d8   : > { %892 = vst.msk [vmem:[#allocation2 + $0x38] sm:$0xff] %vm321_vm3, %v888_v31 }
 0x3d9 PF: > { %s16_s21 = sadd.s32 1, %s1071_s21  }
 0x3da   : > { %p13_p4 = scmp.ge.s32.totalorder %s16_s21, 4  }
 0x3dc   :  { %15 = sbr.rel (!%p13_p4) target bundleno = 1 (0x1), region = 84 }

// kernel: _lambda_.7
= control target key start
LH: loop header
LB: loop body
LE: loop exit
PB: predicated region body
PF: predicated region fallthrough
CT: control target
= control target key end

     0   :  { %14 = vsyncpa [#allocation3], 0  ;;  %s2204_s0 = inlined_call_operand.hbm [shape: f32[2,64], index: 0, kind: input, shape index: {}]   ;;  %s2205_s1 = inlined_call_operand.hbm [shape: f32[64,512], index: 1, kind: input, shape index: {}]   ;;  %s2206_s2 = inlined_call_operand.hbm [shape: f32[1,512], index: 2, kind: input, shape index: {}]   ;;  %s2207_s3 = inlined_call_operand.hbm [shape: f32[1,512], index: 3, kind: input, shape index: {}]   ;;  %s2208_s4 = inlined_call_operand.hbm [shape: f32[1,512], index: 4, kind: input, shape index: {}]   ;;  %s2209_s5 = inlined_call_operand.hbm [shape: f32[512,1024], index: 5, kind: input, shape index: {}]   ;;  %s2210_s6 = inlined_call_operand.hbm [shape: f32[1,1024], index: 6, kind: input, shape index: {}]   ;;  %s2211_s7 = inlined_call_operand.hbm [shape: f32[1,1024], index: 7, kind: input, shape index: {}]   ;;  %s2212_s8 = inlined_call_operand.hbm [shape: f32[1,1024], index: 8, kind: input, shape index: {}]   ;;  %s2213_s9 = inlined_call_operand.vmem [shape: f32[2,1024], index: 9, kind: output, shape index: {}]  }
   0x1   :  { %15 = vsyncpa [#allocation5], 0 }
   0x2   :  { %16 = vsyncpa [#allocation8], 0 }
   0x3   :  { %17 = vsyncpa [#allocation11], 0  ;;  %s34_s11 = sshll.u32 %s2205_s1, 4  ;;  %s35_s11 = int_to_ptr.hbm [resolvable:$true] %s34_s11 }
   0x4   :  { %18 = vsyncpa [#allocation14], 0  ;;  %s1964_s12 = smov [#allocation4]   ;;  %s59_s16 = sshll.u32 %s2207_s3, 4  ;;  %s60_s16 = int_to_ptr.hbm [resolvable:$true] %s59_s16 }
   0x5   :  { %s36_s13 = sshll.u32 %s1964_s12, 4  ;;  %s1965_s17 = smov 512   ;;  %s37_s13 = int_to_ptr.vmem [resolvable:$true] %s36_s13 }
   0x6   :  { %s1966_s18 = smov 32   ;;  %s1967_s19 = smov [#allocation7]  }
   0x7   :  { %42 = dma.hbm_to_vmem [thread:$0]  %s35_s11, 4096, %s37_s13, [#allocation5], %s1965_s17, %s1965_s17, %s1966_s18  }
   0x8   :  { %s61_s20 = sshll.u32 %s1967_s19, 4  ;;  %s80_s23 = sshll.u32 %s2209_s5, 4  ;;  %s62_s20 = int_to_ptr.vmem [resolvable:$true] %s61_s20  ;;  %s81_s23 = int_to_ptr.hbm [resolvable:$true] %s80_s23 }
   0x9   :  { %64 = dma.hbm_to_vmem [thread:$0]  %s60_s16, 64, %s62_s20, [#allocation8]  }
   0xa   :  { %s1968_s1 = smov [#allocation10]   ;;  %s105_s3 = sshll.u32 %s2211_s7, 4  ;;  %s106_s3 = int_to_ptr.hbm [resolvable:$true] %s105_s3 }
   0xb   :  { %s82_s24 = sshll.u32 %s1968_s1, 4  ;;  %s1969_s27 = smov 1024   ;;  %s83_s24 = int_to_ptr.vmem [resolvable:$true] %s82_s24 }
   0xc   :  { %s1970_s28 = smov 64   ;;  %s1971_s29 = smov [#allocation13]  }
   0xd   :  { %88 = dma.hbm_to_vmem [thread:$0]  %s81_s23, 65536, %s83_s24, [#allocation11], %s1969_s27, %s1969_s27, %s1970_s28  }
   0xe   :  { %s107_s30 = sshll.u32 %s1971_s29, 4  ;;  %s24_s5 = sshll.u32 %s2204_s0, 4  ;;  %s108_s30 = int_to_ptr.vmem [resolvable:$true] %s107_s30  ;;  %s25_s5 = int_to_ptr.hbm [resolvable:$true] %s24_s5 }
   0xf   :  { %110 = dma.hbm_to_vmem [thread:$0]  %s106_s3, 128, %s108_s30, [#allocation14]  }
  0x10   :  { %s48_s14 = sshll.u32 %s2206_s2, 4  ;;  %s1972_s15 = smov [#allocation2]   ;;  %s49_s14 = int_to_ptr.hbm [resolvable:$true] %s48_s14 }
  0x11   :  { %s26_s16 = sshll.u32 %s1972_s15, 4  ;;  %s1973_s7 = smov [#allocation6]   ;;  %s27_s16 = int_to_ptr.vmem [resolvable:$true] %s26_s16 }
  0x12   :  { %29 = dma.hbm_to_vmem [thread:$0]  %s25_s5, 32, %s27_s16, [#allocation3]  }
  0x13   :  { %s50_s17 = sshll.u32 %s1973_s7, 4  ;;  %s70_s20 = sshll.u32 %s2208_s4, 4  ;;  %s51_s17 = int_to_ptr.vmem [resolvable:$true] %s50_s17  ;;  %s71_s20 = int_to_ptr.hbm [resolvable:$true] %s70_s20 }
  0x14   :  { %53 = dma.hbm_to_vmem [thread:$0]  %s49_s14, 64, %s51_s17, [#allocation5]  }
  0x15   :  { %s94_s22 = sshll.u32 %s2210_s6, 4  ;;  %s1974_s23 = smov [#allocation9]   ;;  %s95_s22 = int_to_ptr.hbm [resolvable:$true] %s94_s22 }
  0x16   :  { %s72_s2 = sshll.u32 %s1974_s23, 4  ;;  %s1975_s1 = smov [#allocation12]   ;;  %s73_s2 = int_to_ptr.vmem [resolvable:$true] %s72_s2 }
  0x17   :  { %75 = dma.hbm_to_vmem [thread:$0]  %s71_s20, 64, %s73_s2, [#allocation8]  }
  0x18   :  { %s96_s24 = sshll.u32 %s1975_s1, 4  ;;  %s116_s3 = sshll.u32 %s2212_s8, 4  ;;  %s97_s24 = int_to_ptr.vmem [resolvable:$true] %s96_s24  ;;  %s117_s3 = int_to_ptr.hbm [resolvable:$true] %s116_s3 }
  0x19   :  { %99 = dma.hbm_to_vmem [thread:$0]  %s95_s22, 128, %s97_s24, [#allocation11]  }
  0x1a   :  { %s1976_s4 = smov [#allocation15]  }
  0x1b   :  { %s118_s27 = sshll.u32 %s1976_s4, 4  ;;  %s119_s27 = int_to_ptr.vmem [resolvable:$true] %s118_s27 }
  0x1c   :  { %121 = dma.hbm_to_vmem [thread:$0]  %s117_s3, 128, %s119_s27, [#allocation14]  }
  0x1d   :  { %1954 = dma.done.wait [#allocation3], 32  }
  0x1e   :  { %1955 = vsyncadd [#allocation3], 4294967264 }
  0x1f   :  { %1956 = dma.done.wait [#allocation5], 4160  }
  0x20   :  { %1957 = vsyncadd [#allocation5], 4294963136 }
  0x21   :  { %1958 = dma.done.wait [#allocation8], 128  }
  0x22   :  { %1959 = vsyncadd [#allocation8], 4294967168 }
  0x23   :  { %1960 = dma.done.wait [#allocation11], 65664  }
  0x24   :  { %1961 = vsyncadd [#allocation11], 4294901632 }
  0x25   :  { %1962 = dma.done.wait [#allocation14], 256  }
  0x26   :  { %1963 = vsyncadd [#allocation14], 4294967040  ;;  %v189_v0 = vld [vmem:[#allocation4 + $0xf0] sm:$0xff]  ;;  %v190_v2 = vld [vmem:[#allocation4 + $0xf8] sm:$0xff]  ;;  %vm201_vm0 = vcmask 523264   ;;  %vm287_vm1 = vcmask 1041408  }
  0x27   :  { %v185_v1 = vld [vmem:[#allocation4 + $0xd0] sm:$0xff]  ;;  %253 = vmatpush.msra.mxu2 %v189_v0  ;;  %273 = vmatpush.msra.mxu3 %v190_v2  ;;  %v187_v3 = vld [vmem:[#allocation4 + $0xe0] sm:$0xff]  ;;  %v188_v4 = vld [vmem:[#allocation4 + $0xe8] sm:$0xff]  ;;  %v1977_v53 = vmov 512.0   ;;  %vm1683_vm10 = vcmask 1045508   ;;  %vm1685_vm11 = vcmask 1043456  }
  0x28   :  { %v181_v5 = vld [vmem:[#allocation4 + $0xb0] sm:$0xff]  ;;  %213 = vmatpush.msra.mxu0 %v187_v3  ;;  %233 = vmatpush.msra.mxu1 %v188_v4  ;;  %v186_v6 = vld [vmem:[#allocation4 + $0xd8] sm:$0xff]  ;;  %v183_v7 = vld [vmem:[#allocation4 + $0xc0] sm:$0xff]  ;;  %1722 = vrcp.f32 %v1977_v53 }
  0x29   :  { %v184_v8 = vld [vmem:[#allocation4 + $0xc8] sm:$0xff]  ;;  %254 = vmatpush.msra.mxu2 %v185_v1  ;;  %274 = vmatpush.msra.mxu3 %v186_v6  ;;  %v182_v9 = vld [vmem:[#allocation4 + $0xb8] sm:$0xff]  ;;  %v179_v10 = vld [vmem:[#allocation4 + $0xa0] sm:$0xff] }
  0x2a   :  { %214 = vmatpush.msra.mxu0 %v183_v7  ;;  %234 = vmatpush.msra.mxu1 %v184_v8  ;;  %v177_v11 = vld [vmem:[#allocation4 + $0x90] sm:$0xff]  ;;  %v180_v12 = vld [vmem:[#allocation4 + $0xa8] sm:$0xff]  ;;  %v178_v13 = vld [vmem:[#allocation4 + $0x98] sm:$0xff] }
  0x2b   :  { %255 = vmatpush.msra.mxu2 %v181_v5  ;;  %275 = vmatpush.msra.mxu3 %v182_v9  ;;  %v175_v14 = vld [vmem:[#allocation4 + $0x80] sm:$0xff]  ;;  %v176_v15 = vld [vmem:[#allocation4 + $0x88] sm:$0xff]  ;;  %v173_v16 = vld [vmem:[#allocation4 + $0x70] sm:$0xff] }
  0x2c   :  { %215 = vmatpush.msra.mxu0 %v179_v10  ;;  %235 = vmatpush.msra.mxu1 %v180_v12  ;;  %v174_v17 = vld [vmem:[#allocation4 + $0x78] sm:$0xff]  ;;  %v171_v18 = vld [vmem:[#allocation4 + $0x60] sm:$0xff]  ;;  %v172_v19 = vld [vmem:[#allocation4 + $0x68] sm:$0xff] }
  0x2d   :  { %256 = vmatpush.msra.mxu2 %v177_v11  ;;  %276 = vmatpush.msra.mxu3 %v178_v13  ;;  %v169_v20 = vld [vmem:[#allocation4 + $0x50] sm:$0xff]  ;;  %v170_v21 = vld [vmem:[#allocation4 + $0x58] sm:$0xff]  ;;  %v167_v22 = vld [vmem:[#allocation4 + $0x40] sm:$0xff] }
  0x2e   :  { %216 = vmatpush.msra.mxu0 %v175_v14  ;;  %236 = vmatpush.msra.mxu1 %v176_v15  ;;  %v168_v23 = vld [vmem:[#allocation4 + $0x48] sm:$0xff]  ;;  %v165_v24 = vld [vmem:[#allocation4 + $0x30] sm:$0xff]  ;;  %v166_v25 = vld [vmem:[#allocation4 + $0x38] sm:$0xff]  ;;  %v2072_v54 = vpop.eup %1722 }
  0x2f   :  { %257 = vmatpush.msra.mxu2 %v173_v16  ;;  %277 = vmatpush.msra.mxu3 %v174_v17  ;;  %v163_v26 = vld [vmem:[#allocation4 + $0x20] sm:$0xff]  ;;  %v164_v27 = vld [vmem:[#allocation4 + $0x28] sm:$0xff]  ;;  %v161_v28 = vld [vmem:[#allocation4 + $0x10] sm:$0xff]  ;;  %v298_v55 = vmul.f32 512.0, %v2072_v54  ;;  %vm302_vm2 = vweird.f32 %v2072_v54 }
  0x30   :  { %217 = vmatpush.msra.mxu0 %v171_v18  ;;  %237 = vmatpush.msra.mxu1 %v172_v19  ;;  %v162_v29 = vld [vmem:[#allocation4 + $0x18] sm:$0xff]  ;;  %v159_v31 = vld [vmem:[#allocation4] sm:$0xff]  ;;  %v160_v32 = vld [vmem:[#allocation4 + $0x8] sm:$0xff] }
  0x31   :  { %258 = vmatpush.msra.mxu2 %v169_v20  ;;  %278 = vmatpush.msra.mxu3 %v170_v21  ;;  %v158_v30 = vld [vmem:[#allocation2] sm:$0x3]  ;;  %v191_v33 = vld [vmem:[#allocation6] sm:$0xf]  ;;  %v488_v56 = vld [vmem:[#allocation10 + $0x3c0] sm:$0xff]  ;;  %v299_v4 = vsub.f32 1.0, %v298_v55 }
  0x32   :  { %218 = vmatpush.msra.mxu0 %v167_v22  ;;  %238 = vmatpush.msra.mxu1 %v168_v23  ;;  %v193_v34 = vperm.slane %v191_v33, 0  ;;  %v194_v35 = vperm.slane %v191_v33, 1  ;;  %v195_v40 = vperm.slane %v191_v33, 2  ;;  %v196_v41 = vperm.slane %v191_v33, 3  ;;  %v616_v57 = vld [vmem:[#allocation10 + $0x7c0] sm:$0xff] }
  0x33   :  { %259 = vmatpush.msra.mxu2 %v165_v24  ;;  %279 = vmatpush.msra.mxu3 %v166_v25  ;;  %v744_v58 = vld [vmem:[#allocation10 + $0xbc0] sm:$0xff]  ;;  %v300_v13 = vmul.f32 %v2072_v54, %v299_v4 }
  0x34   :  { %219 = vmatpush.msra.mxu0 %v163_v26  ;;  %239 = vmatpush.msra.mxu1 %v164_v27  ;;  %v872_v59 = vld [vmem:[#allocation10 + $0xfc0] sm:$0xff] }
  0x35   :  { %260 = vmatpush.msra.mxu2 %v161_v28  ;;  %280 = vmatpush.msra.mxu3 %v162_v29  ;;  %v480_v60 = vld [vmem:[#allocation10 + $0x380] sm:$0xff]  ;;  %v301_v22 = vadd.f32 %v2072_v54, %v300_v13  ;;  %v489_v13 = vld [vmem:[#allocation10 + $0x3c8] sm:$0xff] }
  0x36   :  { %1705 = vmatmul.msk.f32.vlgmr.msra.gmra.mxu2 %vm201_vm0, %v158_v30  ;;  %1706 = vmatmul.msk.f32.vlgmr.msra.gmra.mxu3 %vm201_vm0, %v158_v30  ;;  %v608_v61 = vld [vmem:[#allocation10 + $0x780] sm:$0xff] }
  0x37   :  { %220 = vmatpush.msra.mxu0 %v159_v31  ;;  %240 = vmatpush.msra.mxu1 %v160_v32  ;;  %v736_v62 = vld [vmem:[#allocation10 + $0xb80] sm:$0xff]  ;;  %v2079_v31 = vsel %vm302_vm2, %v2072_v54, %v301_v22  ;;  %v601_v22 = vld [vmem:[#allocation10 + $0x748] sm:$0xff] }
  0x38   :  { %1703 = vmatmul.msk.f32.vlgmr.msra.gmra.mxu0 %vm201_vm0, %v158_v30  ;;  %1704 = vmatmul.msk.f32.vlgmr.msra.gmra.mxu1 %vm201_vm0, %v158_v30  ;;  %v864_v63 = vld [vmem:[#allocation10 + $0xf80] sm:$0xff] }
  0x39   :  { %898 = vmatpush.msrb.mxu0 %v488_v56  ;;  %918 = vmatpush.msrb.mxu1 %v616_v57  ;;  %v472_v0 = vld [vmem:[#allocation10 + $0x340] sm:$0xff] }
  0x3a   :  { %938 = vmatpush.msrb.mxu2 %v744_v58  ;;  %958 = vmatpush.msrb.mxu3 %v872_v59  ;;  %v600_v1 = vld [vmem:[#allocation10 + $0x740] sm:$0xff] }
  0x3b   :  { %899 = vmatpush.msrb.mxu0 %v480_v60  ;;  %919 = vmatpush.msrb.mxu1 %v608_v61  ;;  %v728_v2 = vld [vmem:[#allocation10 + $0xb40] sm:$0xff] }
  0x3c   :  { %v856_v3 = vld [vmem:[#allocation10 + $0xf40] sm:$0xff]  ;;  %939 = vmatpush.msrb.mxu2 %v736_v62  ;;  %959 = vmatpush.msrb.mxu3 %v864_v63 }
  0x3d   :  { %v464_v5 = vld [vmem:[#allocation10 + $0x300] sm:$0xff]  ;;  %900 = vmatpush.msrb.mxu0 %v472_v0  ;;  %920 = vmatpush.msrb.mxu1 %v600_v1 }
  0x3e   :  { %v592_v6 = vld [vmem:[#allocation10 + $0x700] sm:$0xff]  ;;  %940 = vmatpush.msrb.mxu2 %v728_v2  ;;  %960 = vmatpush.msrb.mxu3 %v856_v3 }
  0x3f   :  { %v720_v7 = vld [vmem:[#allocation10 + $0xb00] sm:$0xff]  ;;  %901 = vmatpush.msrb.mxu0 %v464_v5  ;;  %921 = vmatpush.msrb.mxu1 %v592_v6 }
  0x40   :  { %v848_v8 = vld [vmem:[#allocation10 + $0xf00] sm:$0xff]  ;;  %941 = vmatpush.msrb.mxu2 %v720_v7 }
  0x41   :  { %v456_v9 = vld [vmem:[#allocation10 + $0x2c0] sm:$0xff]  ;;  %961 = vmatpush.msrb.mxu3 %v848_v8 }
  0x42   :  { %v584_v10 = vld [vmem:[#allocation10 + $0x6c0] sm:$0xff]  ;;  %902 = vmatpush.msrb.mxu0 %v456_v9 }
  0x43   :  { %v712_v11 = vld [vmem:[#allocation10 + $0xac0] sm:$0xff]  ;;  %922 = vmatpush.msrb.mxu1 %v584_v10 }
  0x44   :  { %v840_v12 = vld [vmem:[#allocation10 + $0xec0] sm:$0xff]  ;;  %942 = vmatpush.msrb.mxu2 %v712_v11 }
  0x45   :  { %v448_v14 = vld [vmem:[#allocation10 + $0x280] sm:$0xff]  ;;  %962 = vmatpush.msrb.mxu3 %v840_v12 }
  0x46   :  { %v576_v15 = vld [vmem:[#allocation10 + $0x680] sm:$0xff]  ;;  %903 = vmatpush.msrb.mxu0 %v448_v14  ;;  %v617_v14 = vld [vmem:[#allocation10 + $0x7c8] sm:$0xff] }
  0x47   :  { %v704_v16 = vld [vmem:[#allocation10 + $0xa80] sm:$0xff]  ;;  %923 = vmatpush.msrb.mxu1 %v576_v15  ;;  %v745_v15 = vld [vmem:[#allocation10 + $0xbc8] sm:$0xff] }
  0x48   :  { %v832_v17 = vld [vmem:[#allocation10 + $0xe80] sm:$0xff]  ;;  %943 = vmatpush.msrb.mxu2 %v704_v16  ;;  %v873_v16 = vld [vmem:[#allocation10 + $0xfc8] sm:$0xff] }
  0x49   :  { %v440_v18 = vld [vmem:[#allocation10 + $0x240] sm:$0xff]  ;;  %963 = vmatpush.msrb.mxu3 %v832_v17  ;;  %v481_v17 = vld [vmem:[#allocation10 + $0x388] sm:$0xff] }
  0x4a   :  { %v568_v19 = vld [vmem:[#allocation10 + $0x640] sm:$0xff]  ;;  %904 = vmatpush.msrb.mxu0 %v440_v18  ;;  %v609_v18 = vld [vmem:[#allocation10 + $0x788] sm:$0xff] }
  0x4b   :  { %v696_v20 = vld [vmem:[#allocation10 + $0xa40] sm:$0xff]  ;;  %924 = vmatpush.msrb.mxu1 %v568_v19  ;;  %v737_v19 = vld [vmem:[#allocation10 + $0xb88] sm:$0xff] }
  0x4c   :  { %v824_v21 = vld [vmem:[#allocation10 + $0xe40] sm:$0xff]  ;;  %944 = vmatpush.msrb.mxu2 %v696_v20  ;;  %v865_v20 = vld [vmem:[#allocation10 + $0xf88] sm:$0xff] }
  0x4d   :  { %v432_v23 = vld [vmem:[#allocation10 + $0x200] sm:$0xff]  ;;  %964 = vmatpush.msrb.mxu3 %v824_v21  ;;  %v473_v21 = vld [vmem:[#allocation10 + $0x348] sm:$0xff] }
  0x4e   :  { %v560_v24 = vld [vmem:[#allocation10 + $0x600] sm:$0xff]  ;;  %905 = vmatpush.msrb.mxu0 %v432_v23  ;;  %v729_v23 = vld [vmem:[#allocation10 + $0xb48] sm:$0xff] }
  0x4f   :  { %v688_v25 = vld [vmem:[#allocation10 + $0xa00] sm:$0xff]  ;;  %925 = vmatpush.msrb.mxu1 %v560_v24  ;;  %v857_v24 = vld [vmem:[#allocation10 + $0xf48] sm:$0xff] }
  0x50   :  { %v816_v26 = vld [vmem:[#allocation10 + $0xe00] sm:$0xff]  ;;  %945 = vmatpush.msrb.mxu2 %v688_v25  ;;  %v465_v25 = vld [vmem:[#allocation10 + $0x308] sm:$0xff] }
  0x51   :  { %v424_v27 = vld [vmem:[#allocation10 + $0x1c0] sm:$0xff]  ;;  %965 = vmatpush.msrb.mxu3 %v816_v26  ;;  %v593_v26 = vld [vmem:[#allocation10 + $0x708] sm:$0xff] }
  0x52   :  { %v552_v28 = vld [vmem:[#allocation10 + $0x5c0] sm:$0xff]  ;;  %906 = vmatpush.msrb.mxu0 %v424_v27  ;;  %v721_v27 = vld [vmem:[#allocation10 + $0xb08] sm:$0xff] }
  0x53   :  { %v680_v29 = vld [vmem:[#allocation10 + $0x9c0] sm:$0xff]  ;;  %926 = vmatpush.msrb.mxu1 %v552_v28  ;;  %v849_v28 = vld [vmem:[#allocation10 + $0xf08] sm:$0xff] }
  0x54   :  { %v808_v30 = vld [vmem:[#allocation10 + $0xdc0] sm:$0xff]  ;;  %946 = vmatpush.msrb.mxu2 %v680_v29  ;;  %v457_v29 = vld [vmem:[#allocation10 + $0x2c8] sm:$0xff] }
  0x55   :  { %v416_v32 = vld [vmem:[#allocation10 + $0x180] sm:$0xff]  ;;  %966 = vmatpush.msrb.mxu3 %v808_v30  ;;  %v585_v30 = vld [vmem:[#allocation10 + $0x6c8] sm:$0xff] }
  0x56   :  { %v544_v33 = vld [vmem:[#allocation10 + $0x580] sm:$0xff]  ;;  %907 = vmatpush.msrb.mxu0 %v416_v32  ;;  %v713_v32 = vld [vmem:[#allocation10 + $0xac8] sm:$0xff] }
  0x57   :  { %927 = vmatpush.msrb.mxu1 %v544_v33  ;;  %v784_v53 = vld [vmem:[#allocation10 + $0xd00] sm:$0xff]  ;;  %v841_v33 = vld [vmem:[#allocation10 + $0xec8] sm:$0xff] }
  0x58   :  { %v392_v54 = vld [vmem:[#allocation10 + $0xc0] sm:$0xff] }
  0x59   :  { %v648_v55 = vld [vmem:[#allocation10 + $0x8c0] sm:$0xff] }
  0x5a   :  { %v776_v56 = vld [vmem:[#allocation10 + $0xcc0] sm:$0xff] }
  0x5b   :  { %v384_v60 = vld [vmem:[#allocation10 + $0x80] sm:$0xff] }
  0x5c   :  { %v512_v61 = vld [vmem:[#allocation10 + $0x480] sm:$0xff] }
  0x5d   :  { %v640_v63 = vld [vmem:[#allocation10 + $0x880] sm:$0xff] }
  0x5e   :  { %v768_v0 = vld [vmem:[#allocation10 + $0xc80] sm:$0xff] }
  0x5f   :  { %v376_v5 = vld [vmem:[#allocation10 + $0x40] sm:$0xff] }
  0x60   :  { %v504_v6 = vld [vmem:[#allocation10 + $0x440] sm:$0xff] }
  0x61   :  { %v632_v7 = vld [vmem:[#allocation10 + $0x840] sm:$0xff] }
  0x62   :  { %v760_v8 = vld [vmem:[#allocation10 + $0xc40] sm:$0xff] }
  0x63   :  { %v368_v9 = vld [vmem:[#allocation10] sm:$0xff] }
  0x64   :  { %v496_v10 = vld [vmem:[#allocation10 + $0x400] sm:$0xff] }
  0x65   :  { %v624_v11 = vld [vmem:[#allocation10 + $0x800] sm:$0xff] }
  0x66   :  { %v752_v12 = vld [vmem:[#allocation10 + $0xc00] sm:$0xff] }
  0xb5   :  { %v222_v36 = vpop.f32.mrf.mxu0  ;;  %v242_v37 = vpop.f32.mrf.mxu1 }
  0xb6   :  { %v2056_v38 = vadd.f32 %v222_v36, %v193_v34  ;;  %v2058_v39 = vadd.f32 %v242_v37, %v194_v35  ;;  %v672_v34 = vld [vmem:[#allocation10 + $0x980] sm:$0xff] }
  0xb7   :  { %v800_v35 = vld [vmem:[#allocation10 + $0xd80] sm:$0xff]  ;;  %947 = vmatpush.msrb.mxu2 %v672_v34  ;;  %v449_v34 = vld [vmem:[#allocation10 + $0x288] sm:$0xff] }
  0xb8   :  { %v288_v42 = vsel %vm287_vm1, %v2056_v38, 0.0  ;;  %v289_v43 = vsel %vm287_vm1, %v2058_v39, 0.0  ;;  %v408_v37 = vld [vmem:[#allocation10 + $0x140] sm:$0xff]  ;;  %967 = vmatpush.msrb.mxu3 %v800_v35  ;;  %v577_v35 = vld [vmem:[#allocation10 + $0x688] sm:$0xff] }
  0xb9   :  { %v290_v44 = vadd.f32 %v289_v43, %v288_v42  ;;  %v262_v45 = vpop.f32.mrf.mxu2  ;;  %v282_v46 = vpop.f32.mrf.mxu3  ;;  %v664_v42 = vld [vmem:[#allocation10 + $0x940] sm:$0xff]  ;;  %908 = vmatpush.msrb.mxu0 %v408_v37  ;;  %v833_v37 = vld [vmem:[#allocation10 + $0xe88] sm:$0xff] }
  0xba   :  { %v2064_v47 = vadd.f32 %v262_v45, %v195_v40  ;;  %v2066_v48 = vadd.f32 %v282_v46, %v196_v41  ;;  %v536_v41 = vld [vmem:[#allocation10 + $0x540] sm:$0xff]  ;;  %948 = vmatpush.msrb.mxu2 %v664_v42  ;;  %v697_v42 = vld [vmem:[#allocation10 + $0xa48] sm:$0xff] }
  0xbb   :  { %v792_v43 = vld [vmem:[#allocation10 + $0xd40] sm:$0xff]  ;;  %928 = vmatpush.msrb.mxu1 %v536_v41  ;;  %v569_v41 = vld [vmem:[#allocation10 + $0x648] sm:$0xff] }
  0xbc   :  { %v291_v49 = vsel %vm287_vm1, %v2064_v47, 0.0  ;;  %v293_v50 = vsel %vm287_vm1, %v2066_v48, 0.0  ;;  %968 = vmatpush.msrb.mxu3 %v792_v43  ;;  %v825_v43 = vld [vmem:[#allocation10 + $0xe48] sm:$0xff] }
  0xbd   :  { %v292_v51 = vadd.f32 %v291_v49, %v290_v44 }
  0xbe   :  { %969 = vmatpush.msrb.mxu3 %v784_v53  ;;  %v817_v53 = vld [vmem:[#allocation10 + $0xe08] sm:$0xff] }
  0xbf   :  { %v294_v52 = vadd.f32 %v293_v50, %v292_v51  ;;  %v400_v50 = vld [vmem:[#allocation10 + $0x100] sm:$0xff] }
  0xc0   :  { %v528_v51 = vld [vmem:[#allocation10 + $0x500] sm:$0xff]  ;;  %909 = vmatpush.msrb.mxu0 %v400_v50  ;;  %970 = vmatpush.msrb.mxu3 %v776_v56  ;;  %v433_v50 = vld [vmem:[#allocation10 + $0x208] sm:$0xff] }
  0xc1   :  { %295 = vadd.xlane.f32.xlu0 %v294_v52  ;;  %v656_v52 = vld [vmem:[#allocation10 + $0x900] sm:$0xff]  ;;  %929 = vmatpush.msrb.mxu1 %v528_v51  ;;  %v561_v51 = vld [vmem:[#allocation10 + $0x608] sm:$0xff] }
  0xc2   :  { %949 = vmatpush.msrb.mxu2 %v656_v52  ;;  %910 = vmatpush.msrb.mxu0 %v392_v54  ;;  %v689_v52 = vld [vmem:[#allocation10 + $0xa08] sm:$0xff] }
  0xc3   :  { %971 = vmatpush.msrb.mxu3 %v768_v0  ;;  %v809_v54 = vld [vmem:[#allocation10 + $0xdc8] sm:$0xff] }
  0xc4   :  { %950 = vmatpush.msrb.mxu2 %v648_v55  ;;  %911 = vmatpush.msrb.mxu0 %v384_v60  ;;  %v545_v55 = vld [vmem:[#allocation10 + $0x588] sm:$0xff] }
  0xc5   :  { %972 = vmatpush.msrb.mxu3 %v760_v8  ;;  %v673_v56 = vld [vmem:[#allocation10 + $0x988] sm:$0xff] }
  0xc6   :  { %951 = vmatpush.msrb.mxu2 %v640_v63  ;;  %912 = vmatpush.msrb.mxu0 %v376_v5  ;;  %v665_v60 = vld [vmem:[#allocation10 + $0x948] sm:$0xff] }
  0xc7   :  { %973 = vmatpush.msrb.mxu3 %v752_v12  ;;  %v529_v63 = vld [vmem:[#allocation10 + $0x508] sm:$0xff] }
  0xc8   :  { %952 = vmatpush.msrb.mxu2 %v632_v7  ;;  %913 = vmatpush.msrb.mxu0 %v368_v9  ;;  %v657_v0 = vld [vmem:[#allocation10 + $0x908] sm:$0xff] }
  0xc9   :  { %1038 = vmatpush.msra.mxu3 %v873_v16  ;;  %v385_v7 = vld [vmem:[#allocation10 + $0x88] sm:$0xff] }
  0xca   :  { %953 = vmatpush.msrb.mxu2 %v624_v11  ;;  %978 = vmatpush.msra.mxu0 %v489_v13  ;;  %v513_v8 = vld [vmem:[#allocation10 + $0x488] sm:$0xff] }
  0xcb   :  { %1039 = vmatpush.msra.mxu3 %v865_v20  ;;  %v769_v11 = vld [vmem:[#allocation10 + $0xc88] sm:$0xff] }
  0xcc   :  { %1018 = vmatpush.msra.mxu2 %v745_v15  ;;  %979 = vmatpush.msra.mxu0 %v481_v17  ;;  %v377_v12 = vld [vmem:[#allocation10 + $0x48] sm:$0xff] }
  0xcd   :  { %1040 = vmatpush.msra.mxu3 %v857_v24  ;;  %v505_v13 = vld [vmem:[#allocation10 + $0x448] sm:$0xff]  ;;  %v285_v24 = vld [vmem:[#allocation7] sm:$0xf] }
  0xce   :  { %1019 = vmatpush.msra.mxu2 %v737_v19  ;;  %980 = vmatpush.msra.mxu0 %v473_v21  ;;  %v633_v15 = vld [vmem:[#allocation10 + $0x848] sm:$0xff] }
  0xcf   :  { %1041 = vmatpush.msra.mxu3 %v849_v28  ;;  %v761_v16 = vld [vmem:[#allocation10 + $0xc48] sm:$0xff]  ;;  %v339_v28 = vperm.slane %v285_v24, 0 }
  0xd0   :  { %1020 = vmatpush.msra.mxu2 %v729_v23  ;;  %981 = vmatpush.msra.mxu0 %v465_v25  ;;  %v369_v17 = vld [vmem:[#allocation10 + $0x8] sm:$0xff] }
  0xd1   :  { %1042 = vmatpush.msra.mxu3 %v841_v33  ;;  %v753_v19 = vld [vmem:[#allocation10 + $0xc08] sm:$0xff] }
  0xd2   :  { %1021 = vmatpush.msra.mxu2 %v721_v27  ;;  %982 = vmatpush.msra.mxu0 %v457_v29  ;;  %v340_v29 = vperm.slane %v285_v24, 1 }
  0xd3   :  { %1043 = vmatpush.msra.mxu3 %v833_v37 }
  0xd4   :  { %1022 = vmatpush.msra.mxu2 %v713_v32  ;;  %983 = vmatpush.msra.mxu0 %v449_v34  ;;  %v342_v32 = vperm.slane %v285_v24, 3 }
  0xd5   :  { %1044 = vmatpush.msra.mxu3 %v825_v43 }
  0xd7   :  { %1045 = vmatpush.msra.mxu3 %v817_v53 }
  0xd9   :  { %1046 = vmatpush.msra.mxu3 %v809_v54 }
 0x134   :  { %v296_v36 = vpop.xlane.xlu0 %295 }
 0x135   :  { %v304_v40 = vmul.f32 %v2079_v31, %v296_v36  ;;  %v705_v36 = vld [vmem:[#allocation10 + $0xa88] sm:$0xff] }
 0x136   :  { %1023 = vmatpush.msra.mxu2 %v705_v36 }
 0x137   :  { %v2083_v44 = vsub.f32 %v2056_v38, %v304_v40  ;;  %v2086_v45 = vsub.f32 %v2058_v39, %v304_v40  ;;  %v2089_v46 = vsub.f32 %v2064_v47, %v304_v40  ;;  %v2092_v49 = vsub.f32 %v2066_v48, %v304_v40  ;;  %v520_v48 = vld [vmem:[#allocation10 + $0x4c0] sm:$0xff]  ;;  %v441_v40 = vld [vmem:[#allocation10 + $0x248] sm:$0xff] }
 0x138   :  { %930 = vmatpush.msrb.mxu1 %v520_v48  ;;  %984 = vmatpush.msra.mxu0 %v441_v40  ;;  %v417_v48 = vld [vmem:[#allocation10 + $0x188] sm:$0xff] }
 0x139   :  { %v309_v38 = vmul.f32 %v2083_v44, %v2083_v44  ;;  %v310_v39 = vmul.f32 %v2086_v45, %v2086_v45  ;;  %v311_v47 = vmul.f32 %v2089_v46, %v2089_v46  ;;  %v312_v57 = vmul.f32 %v2092_v49, %v2092_v49  ;;  %1024 = vmatpush.msra.mxu2 %v697_v42 }
 0x13a   :  { %931 = vmatpush.msrb.mxu1 %v512_v61  ;;  %985 = vmatpush.msra.mxu0 %v433_v50  ;;  %v793_v61 = vld [vmem:[#allocation10 + $0xd48] sm:$0xff] }
 0x13b   :  { %v313_v58 = vsel %vm287_vm1, %v309_v38, 0.0  ;;  %v314_v59 = vsel %vm287_vm1, %v310_v39, 0.0  ;;  %v316_v1 = vsel %vm287_vm1, %v311_v47, 0.0  ;;  %v318_v3 = vsel %vm287_vm1, %v312_v57, 0.0  ;;  %v425_v38 = vld [vmem:[#allocation10 + $0x1c8] sm:$0xff]  ;;  %1025 = vmatpush.msra.mxu2 %v689_v52 }
 0x13c   :  { %v315_v62 = vadd.f32 %v314_v59, %v313_v58  ;;  %932 = vmatpush.msrb.mxu1 %v504_v6  ;;  %v553_v39 = vld [vmem:[#allocation10 + $0x5c8] sm:$0xff]  ;;  %986 = vmatpush.msra.mxu0 %v425_v38 }
 0x13d   :  { %v681_v47 = vld [vmem:[#allocation10 + $0x9c8] sm:$0xff] }
 0x13e   :  { %v317_v2 = vadd.f32 %v316_v1, %v315_v62  ;;  %933 = vmatpush.msrb.mxu1 %v496_v10  ;;  %1026 = vmatpush.msra.mxu2 %v681_v47  ;;  %v801_v57 = vld [vmem:[#allocation10 + $0xd88] sm:$0xff] }
 0x13f   :  { %987 = vmatpush.msra.mxu0 %v417_v48  ;;  %v409_v58 = vld [vmem:[#allocation10 + $0x148] sm:$0xff]  ;;  %1047 = vmatpush.msra.mxu3 %v801_v57  ;;  %v482_v57 = vld [vmem:[#allocation10 + $0x390] sm:$0xff] }
 0x140   :  { %v319_v4 = vadd.f32 %v318_v3, %v317_v2  ;;  %998 = vmatpush.msra.mxu1 %v617_v14  ;;  %v537_v59 = vld [vmem:[#allocation10 + $0x548] sm:$0xff]  ;;  %1027 = vmatpush.msra.mxu2 %v673_v56  ;;  %v874_v56 = vld [vmem:[#allocation10 + $0xfd0] sm:$0xff] }
 0x141   :  { %988 = vmatpush.msra.mxu0 %v409_v58  ;;  %v401_v62 = vld [vmem:[#allocation10 + $0x108] sm:$0xff]  ;;  %1048 = vmatpush.msra.mxu3 %v793_v61  ;;  %v866_v61 = vld [vmem:[#allocation10 + $0xf90] sm:$0xff] }
 0x142   :  { %320 = vadd.xlane.f32.xlu0 %v319_v4  ;;  %999 = vmatpush.msra.mxu1 %v609_v18  ;;  %v785_v1 = vld [vmem:[#allocation10 + $0xd08] sm:$0xff] }
 0x143   :  { %1028 = vmatpush.msra.mxu2 %v665_v60  ;;  %989 = vmatpush.msra.mxu0 %v401_v62  ;;  %v393_v2 = vld [vmem:[#allocation10 + $0xc8] sm:$0xff]  ;;  %v738_v60 = vld [vmem:[#allocation10 + $0xb90] sm:$0xff] }
 0x144   :  { %1000 = vmatpush.msra.mxu1 %v601_v22  ;;  %v521_v3 = vld [vmem:[#allocation10 + $0x4c8] sm:$0xff]  ;;  %1049 = vmatpush.msra.mxu3 %v785_v1  ;;  %v474_v62 = vld [vmem:[#allocation10 + $0x350] sm:$0xff] }
 0x145   :  { %v649_v4 = vld [vmem:[#allocation10 + $0x8c8] sm:$0xff]  ;;  %1029 = vmatpush.msra.mxu2 %v657_v0  ;;  %990 = vmatpush.msra.mxu0 %v393_v2  ;;  %v730_v0 = vld [vmem:[#allocation10 + $0xb50] sm:$0xff] }
 0x146   :  { %1001 = vmatpush.msra.mxu1 %v593_v26  ;;  %v777_v6 = vld [vmem:[#allocation10 + $0xcc8] sm:$0xff]  ;;  %v286_v26 = vld [vmem:[#allocation9] sm:$0xf]  ;;  %v858_v1 = vld [vmem:[#allocation10 + $0xf50] sm:$0xff] }
 0x147   :  { %v641_v10 = vld [vmem:[#allocation10 + $0x888] sm:$0xff]  ;;  %1030 = vmatpush.msra.mxu2 %v649_v4  ;;  %1050 = vmatpush.msra.mxu3 %v777_v6  ;;  %v352_v33 = vperm.slane %v286_v26, 0  ;;  %v353_v34 = vperm.slane %v286_v26, 1  ;;  %v355_v43 = vperm.slane %v286_v26, 3  ;;  %v466_v2 = vld [vmem:[#allocation10 + $0x310] sm:$0xff] }
 0x148   :  { %1002 = vmatpush.msra.mxu1 %v585_v30  ;;  %991 = vmatpush.msra.mxu0 %v385_v7  ;;  %v497_v18 = vld [vmem:[#allocation10 + $0x408] sm:$0xff]  ;;  %v341_v30 = vperm.slane %v285_v24, 2  ;;  %v722_v4 = vld [vmem:[#allocation10 + $0xb10] sm:$0xff] }
 0x149   :  { %1031 = vmatpush.msra.mxu2 %v641_v10  ;;  %1051 = vmatpush.msra.mxu3 %v769_v11  ;;  %v458_v6 = vld [vmem:[#allocation10 + $0x2d0] sm:$0xff] }
 0x14a   :  { %1003 = vmatpush.msra.mxu1 %v577_v35  ;;  %992 = vmatpush.msra.mxu0 %v377_v12  ;;  %v354_v35 = vperm.slane %v286_v26, 2  ;;  %v586_v7 = vld [vmem:[#allocation10 + $0x6d0] sm:$0xff] }
 0x14b   :  { %1032 = vmatpush.msra.mxu2 %v633_v15  ;;  %1052 = vmatpush.msra.mxu3 %v761_v16  ;;  %v450_v10 = vld [vmem:[#allocation10 + $0x290] sm:$0xff] }
 0x14c   :  { %1004 = vmatpush.msra.mxu1 %v569_v41  ;;  %993 = vmatpush.msra.mxu0 %v369_v17  ;;  %v578_v11 = vld [vmem:[#allocation10 + $0x690] sm:$0xff] }
 0x14d   :  { %1053 = vmatpush.msra.mxu3 %v753_v19  ;;  %v706_v12 = vld [vmem:[#allocation10 + $0xa90] sm:$0xff] }
 0x14e   :  { %1005 = vmatpush.msra.mxu1 %v561_v51  ;;  %v570_v15 = vld [vmem:[#allocation10 + $0x650] sm:$0xff] }
 0x14f   :  { %v698_v16 = vld [vmem:[#allocation10 + $0xa50] sm:$0xff] }
 0x150   :  { %1006 = vmatpush.msra.mxu1 %v553_v39  ;;  %v826_v17 = vld [vmem:[#allocation10 + $0xe50] sm:$0xff] }
 0x151   :  { %v690_v19 = vld [vmem:[#allocation10 + $0xa10] sm:$0xff] }
 0x152   :  { %1007 = vmatpush.msra.mxu1 %v545_v55  ;;  %v810_v24 = vld [vmem:[#allocation10 + $0xdd0] sm:$0xff] }
 0x153   :  { %v546_v26 = vld [vmem:[#allocation10 + $0x590] sm:$0xff] }
 0x154   :  { %1008 = vmatpush.msra.mxu1 %v537_v59  ;;  %v610_v59 = vld [vmem:[#allocation10 + $0x790] sm:$0xff] }
 0x156   :  { %1009 = vmatpush.msra.mxu1 %v529_v63  ;;  %v602_v63 = vld [vmem:[#allocation10 + $0x750] sm:$0xff] }
 0x158   :  { %1010 = vmatpush.msra.mxu1 %v521_v3  ;;  %v594_v3 = vld [vmem:[#allocation10 + $0x710] sm:$0xff] }
 0x15a   :  { %1011 = vmatpush.msra.mxu1 %v513_v8  ;;  %v714_v8 = vld [vmem:[#allocation10 + $0xad0] sm:$0xff] }
 0x15c   :  { %1012 = vmatpush.msra.mxu1 %v505_v13  ;;  %v834_v13 = vld [vmem:[#allocation10 + $0xe90] sm:$0xff] }
 0x15e   :  { %1013 = vmatpush.msra.mxu1 %v497_v18  ;;  %v434_v18 = vld [vmem:[#allocation10 + $0x210] sm:$0xff] }
 0x1b5   :  { %v321_v5 = vpop.xlane.xlu0 %320 }
 0x1b6   :  { %v322_v9 = vmul.f32 %v321_v5, %v2079_v31  ;;  %v625_v31 = vld [vmem:[#allocation10 + $0x808] sm:$0xff]  ;;  %v850_v5 = vld [vmem:[#allocation10 + $0xf10] sm:$0xff] }
 0x1b7   :  { %1033 = vmatpush.msra.mxu2 %v625_v31  ;;  %v562_v31 = vld [vmem:[#allocation10 + $0x610] sm:$0xff] }
 0x1b8   :  { %v323_v14 = vadd.f32 1e-05, %v322_v9  ;;  %v842_v9 = vld [vmem:[#allocation10 + $0xed0] sm:$0xff] }
 0x1ba   :  { %1724 = vrsqrt.f32 %v323_v14  ;;  %vm330_vm4 = vweird.f32 %v323_v14 }
 0x1c0   :  { %v1725_v20 = vpop.eup %1724 }
 0x1c1   :  { %v325_v21 = vmul.f32 %v1725_v20, %v323_v14  ;;  %vm331_vm3 = vweird.f32 %v1725_v20  ;;  %v442_v14 = vld [vmem:[#allocation10 + $0x250] sm:$0xff] }
 0x1c2   :  { %vm332_vm5 = vmor %vm330_vm4, %vm331_vm3 }
 0x1c3   :  { %v326_v22 = vmul.f32 %v1725_v20, %v325_v21  ;;  %v426_v21 = vld [vmem:[#allocation10 + $0x1d0] sm:$0xff] }
 0x1c5   :  { %v327_v23 = vmul.f32 0.5, %v326_v22  ;;  %v554_v22 = vld [vmem:[#allocation10 + $0x5d0] sm:$0xff] }
 0x1c7   :  { %v328_v25 = vsub.f32 1.5, %v327_v23  ;;  %v682_v23 = vld [vmem:[#allocation10 + $0x9d0] sm:$0xff] }
 0x1c9   :  { %v329_v27 = vmul.f32 %v1725_v20, %v328_v25  ;;  %v418_v25 = vld [vmem:[#allocation10 + $0x190] sm:$0xff] }
 0x1cb   :  { %v333_v36 = vsel %vm332_vm5, %v1725_v20, %v329_v27  ;;  %v818_v20 = vld [vmem:[#allocation10 + $0xe10] sm:$0xff] }
 0x1cc   :  { %v334_v37 = vmul.f32 %v333_v36, %v2083_v44  ;;  %v335_v40 = vmul.f32 %v333_v36, %v2086_v45  ;;  %v336_v41 = vmul.f32 %v333_v36, %v2089_v46  ;;  %v337_v42 = vmul.f32 %v333_v36, %v2092_v49  ;;  %v490_v44 = vld [vmem:[#allocation10 + $0x3d0] sm:$0xff] }
 0x1cd   :  { %v618_v45 = vld [vmem:[#allocation10 + $0x7d0] sm:$0xff] }
 0x1ce   :  { %v347_v50 = vmul.f32 %v339_v28, %v334_v37  ;;  %v348_v51 = vmul.f32 %v340_v29, %v335_v40  ;;  %v349_v52 = vmul.f32 %v341_v30, %v336_v41  ;;  %v350_v53 = vmul.f32 %v342_v32, %v337_v42  ;;  %v746_v49 = vld [vmem:[#allocation10 + $0xbd0] sm:$0xff] }
 0x1cf   :  { %v674_v27 = vld [vmem:[#allocation10 + $0x990] sm:$0xff] }
 0x1d0   :  { %v360_v38 = vadd.f32 %v352_v33, %v347_v50  ;;  %v361_v39 = vadd.f32 %v353_v34, %v348_v51  ;;  %v362_v47 = vadd.f32 %v354_v35, %v349_v52  ;;  %v363_v54 = vadd.f32 %v355_v43, %v350_v53  ;;  %v802_v28 = vld [vmem:[#allocation10 + $0xd90] sm:$0xff] }
 0x1d1   :  { %v410_v29 = vld [vmem:[#allocation10 + $0x150] sm:$0xff] }
 0x1d2   :  { %1726 = vtanh.f32 %v360_v38  ;;  %v538_v30 = vld [vmem:[#allocation10 + $0x550] sm:$0xff] }
 0x1d3   :  { %1728 = vtanh.f32 %v361_v39  ;;  %v666_v32 = vld [vmem:[#allocation10 + $0x950] sm:$0xff] }
 0x1d4   :  { %1730 = vtanh.f32 %v362_v47  ;;  %v794_v33 = vld [vmem:[#allocation10 + $0xd50] sm:$0xff] }
 0x1d5   :  { %1732 = vtanh.f32 %v363_v54  ;;  %v402_v34 = vld [vmem:[#allocation10 + $0x110] sm:$0xff] }
 0x1d6   :  { %v530_v35 = vld [vmem:[#allocation10 + $0x510] sm:$0xff] }
 0x1d7   :  { %v658_v36 = vld [vmem:[#allocation10 + $0x910] sm:$0xff] }
 0x1d8   :  { %v2111_v48 = vpop.eup %1726  ;;  %v786_v37 = vld [vmem:[#allocation10 + $0xd10] sm:$0xff] }
 0x1d9   :  { %v2113_v46 = vpop.eup %1728  ;;  %914 = vmatmul.f32.vlgmr.msrb.gmra.mxu0 %v2111_v48  ;;  %v394_v40 = vld [vmem:[#allocation10 + $0xd0] sm:$0xff] }
 0x1da   :  { %v2116_v55 = vpop.eup %1730  ;;  %934 = vmatmul.f32.vlgmr.msrb.gmra.mxu1 %v2113_v46  ;;  %1058 = vmatpush.msrb.mxu0 %v490_v44  ;;  %v522_v41 = vld [vmem:[#allocation10 + $0x4d0] sm:$0xff] }
 0x1db   :  { %v2119_v58 = vpop.eup %1732  ;;  %954 = vmatmul.f32.vlgmr.msrb.gmra.mxu2 %v2116_v55  ;;  %1078 = vmatpush.msrb.mxu1 %v618_v45  ;;  %v650_v42 = vld [vmem:[#allocation10 + $0x8d0] sm:$0xff] }
 0x1dc   :  { %974 = vmatmul.f32.vlgmr.msrb.gmra.mxu3 %v2119_v58  ;;  %1098 = vmatpush.msrb.mxu2 %v746_v49  ;;  %v778_v43 = vld [vmem:[#allocation10 + $0xcd0] sm:$0xff] }
 0x1dd   :  { %1118 = vmatpush.msrb.mxu3 %v874_v56  ;;  %1059 = vmatpush.msrb.mxu0 %v482_v57  ;;  %v386_v50 = vld [vmem:[#allocation10 + $0x90] sm:$0xff]  ;;  %v491_v57 = vld [vmem:[#allocation10 + $0x3d8] sm:$0xff] }
 0x1de   :  { %1079 = vmatpush.msrb.mxu1 %v610_v59  ;;  %1099 = vmatpush.msrb.mxu2 %v738_v60  ;;  %v514_v51 = vld [vmem:[#allocation10 + $0x490] sm:$0xff]  ;;  %v619_v59 = vld [vmem:[#allocation10 + $0x7d8] sm:$0xff] }
 0x1df   :  { %1119 = vmatpush.msrb.mxu3 %v866_v61  ;;  %1060 = vmatpush.msrb.mxu0 %v474_v62  ;;  %v642_v52 = vld [vmem:[#allocation10 + $0x890] sm:$0xff]  ;;  %v747_v60 = vld [vmem:[#allocation10 + $0xbd8] sm:$0xff] }
 0x1e0   :  { %1080 = vmatpush.msrb.mxu1 %v602_v63  ;;  %1100 = vmatpush.msrb.mxu2 %v730_v0  ;;  %v770_v53 = vld [vmem:[#allocation10 + $0xc90] sm:$0xff]  ;;  %v875_v61 = vld [vmem:[#allocation10 + $0xfd8] sm:$0xff] }
 0x1e1   :  { %1120 = vmatpush.msrb.mxu3 %v858_v1  ;;  %1061 = vmatpush.msrb.mxu0 %v466_v2  ;;  %v378_v38 = vld [vmem:[#allocation10 + $0x50] sm:$0xff]  ;;  %v483_v62 = vld [vmem:[#allocation10 + $0x398] sm:$0xff] }
 0x1e2   :  { %1081 = vmatpush.msrb.mxu1 %v594_v3  ;;  %1101 = vmatpush.msrb.mxu2 %v722_v4  ;;  %v506_v39 = vld [vmem:[#allocation10 + $0x450] sm:$0xff]  ;;  %v611_v63 = vld [vmem:[#allocation10 + $0x798] sm:$0xff] }
 0x1e3   :  { %1121 = vmatpush.msrb.mxu3 %v850_v5  ;;  %994 = vmatmul.f32.vlgmr.msra.gmra.mxu0 %v2111_v48  ;;  %v634_v47 = vld [vmem:[#allocation10 + $0x850] sm:$0xff]  ;;  %v739_v0 = vld [vmem:[#allocation10 + $0xb98] sm:$0xff] }
 0x1e4   :  { %1014 = vmatmul.f32.vlgmr.msra.gmra.mxu1 %v2113_v46  ;;  %1034 = vmatmul.f32.vlgmr.msra.gmra.mxu2 %v2116_v55  ;;  %v762_v54 = vld [vmem:[#allocation10 + $0xc50] sm:$0xff]  ;;  %v867_v1 = vld [vmem:[#allocation10 + $0xf98] sm:$0xff] }
 0x1e5   :  { %1054 = vmatmul.f32.vlgmr.msra.gmra.mxu3 %v2119_v58  ;;  %1062 = vmatpush.msrb.mxu0 %v458_v6  ;;  %v370_v44 = vld [vmem:[#allocation10 + $0x10] sm:$0xff]  ;;  %v475_v2 = vld [vmem:[#allocation10 + $0x358] sm:$0xff] }
 0x1e6   :  { %1082 = vmatpush.msrb.mxu1 %v586_v7  ;;  %1102 = vmatpush.msrb.mxu2 %v714_v8  ;;  %v498_v45 = vld [vmem:[#allocation10 + $0x410] sm:$0xff]  ;;  %v603_v3 = vld [vmem:[#allocation10 + $0x758] sm:$0xff] }
 0x1e7   :  { %1122 = vmatpush.msrb.mxu3 %v842_v9  ;;  %1063 = vmatpush.msrb.mxu0 %v450_v10  ;;  %v626_v49 = vld [vmem:[#allocation10 + $0x810] sm:$0xff]  ;;  %v731_v4 = vld [vmem:[#allocation10 + $0xb58] sm:$0xff] }
 0x1e8   :  { %1083 = vmatpush.msrb.mxu1 %v578_v11  ;;  %1103 = vmatpush.msrb.mxu2 %v706_v12  ;;  %v754_v56 = vld [vmem:[#allocation10 + $0xc10] sm:$0xff]  ;;  %v859_v5 = vld [vmem:[#allocation10 + $0xf58] sm:$0xff] }
 0x1e9   :  { %1123 = vmatpush.msrb.mxu3 %v834_v13  ;;  %1064 = vmatpush.msrb.mxu0 %v442_v14  ;;  %v467_v6 = vld [vmem:[#allocation10 + $0x318] sm:$0xff] }
 0x1ea   :  { %1084 = vmatpush.msrb.mxu1 %v570_v15  ;;  %1104 = vmatpush.msrb.mxu2 %v698_v16  ;;  %v595_v7 = vld [vmem:[#allocation10 + $0x718] sm:$0xff] }
 0x1eb   :  { %1124 = vmatpush.msrb.mxu3 %v826_v17  ;;  %1065 = vmatpush.msrb.mxu0 %v434_v18  ;;  %v723_v8 = vld [vmem:[#allocation10 + $0xb18] sm:$0xff] }
 0x1ec   :  { %1085 = vmatpush.msrb.mxu1 %v562_v31  ;;  %1105 = vmatpush.msrb.mxu2 %v690_v19  ;;  %v851_v9 = vld [vmem:[#allocation10 + $0xf18] sm:$0xff] }
 0x1ed   :  { %1125 = vmatpush.msrb.mxu3 %v818_v20  ;;  %1066 = vmatpush.msrb.mxu0 %v426_v21  ;;  %v459_v10 = vld [vmem:[#allocation10 + $0x2d8] sm:$0xff] }
 0x1ee   :  { %1086 = vmatpush.msrb.mxu1 %v554_v22  ;;  %1106 = vmatpush.msrb.mxu2 %v682_v23  ;;  %v587_v11 = vld [vmem:[#allocation10 + $0x6d8] sm:$0xff] }
 0x1ef   :  { %1126 = vmatpush.msrb.mxu3 %v810_v24  ;;  %1067 = vmatpush.msrb.mxu0 %v418_v25  ;;  %v715_v12 = vld [vmem:[#allocation10 + $0xad8] sm:$0xff] }
 0x1f0   :  { %1087 = vmatpush.msrb.mxu1 %v546_v26  ;;  %1107 = vmatpush.msrb.mxu2 %v674_v27  ;;  %v843_v13 = vld [vmem:[#allocation10 + $0xed8] sm:$0xff] }
 0x1f1   :  { %1127 = vmatpush.msrb.mxu3 %v802_v28  ;;  %1068 = vmatpush.msrb.mxu0 %v410_v29  ;;  %v451_v14 = vld [vmem:[#allocation10 + $0x298] sm:$0xff] }
 0x1f2   :  { %1088 = vmatpush.msrb.mxu1 %v538_v30  ;;  %1108 = vmatpush.msrb.mxu2 %v666_v32  ;;  %v579_v15 = vld [vmem:[#allocation10 + $0x698] sm:$0xff] }
 0x1f3   :  { %1128 = vmatpush.msrb.mxu3 %v794_v33  ;;  %1069 = vmatpush.msrb.mxu0 %v402_v34  ;;  %v707_v16 = vld [vmem:[#allocation10 + $0xa98] sm:$0xff] }
 0x1f4   :  { %1089 = vmatpush.msrb.mxu1 %v530_v35  ;;  %1109 = vmatpush.msrb.mxu2 %v658_v36  ;;  %v835_v17 = vld [vmem:[#allocation10 + $0xe98] sm:$0xff] }
 0x1f5   :  { %1129 = vmatpush.msrb.mxu3 %v786_v37  ;;  %1070 = vmatpush.msrb.mxu0 %v394_v40  ;;  %v443_v18 = vld [vmem:[#allocation10 + $0x258] sm:$0xff] }
 0x1f6   :  { %1090 = vmatpush.msrb.mxu1 %v522_v41  ;;  %1110 = vmatpush.msrb.mxu2 %v650_v42  ;;  %v571_v31 = vld [vmem:[#allocation10 + $0x658] sm:$0xff] }
 0x1f7   :  { %1130 = vmatpush.msrb.mxu3 %v778_v43  ;;  %1071 = vmatpush.msrb.mxu0 %v386_v50  ;;  %v699_v19 = vld [vmem:[#allocation10 + $0xa58] sm:$0xff] }
 0x1f8   :  { %1091 = vmatpush.msrb.mxu1 %v514_v51  ;;  %1111 = vmatpush.msrb.mxu2 %v642_v52  ;;  %v827_v20 = vld [vmem:[#allocation10 + $0xe58] sm:$0xff] }
 0x1f9   :  { %1131 = vmatpush.msrb.mxu3 %v770_v53  ;;  %1072 = vmatpush.msrb.mxu0 %v378_v38  ;;  %v435_v21 = vld [vmem:[#allocation10 + $0x218] sm:$0xff] }
 0x1fa   :  { %1092 = vmatpush.msrb.mxu1 %v506_v39  ;;  %1112 = vmatpush.msrb.mxu2 %v634_v47  ;;  %v563_v22 = vld [vmem:[#allocation10 + $0x618] sm:$0xff] }
 0x1fb   :  { %1132 = vmatpush.msrb.mxu3 %v762_v54  ;;  %1073 = vmatpush.msrb.mxu0 %v370_v44  ;;  %v691_v23 = vld [vmem:[#allocation10 + $0xa18] sm:$0xff] }
 0x1fc   :  { %1093 = vmatpush.msrb.mxu1 %v498_v45  ;;  %1113 = vmatpush.msrb.mxu2 %v626_v49  ;;  %v819_v24 = vld [vmem:[#allocation10 + $0xe18] sm:$0xff] }
 0x1fd   :  { %1133 = vmatpush.msrb.mxu3 %v754_v56  ;;  %1074 = vmatmul.f32.vlgmr.msrb.gmra.mxu0 %v2111_v48  ;;  %v427_v25 = vld [vmem:[#allocation10 + $0x1d8] sm:$0xff] }
 0x1fe   :  { %1094 = vmatmul.f32.vlgmr.msrb.gmra.mxu1 %v2113_v46  ;;  %1114 = vmatmul.f32.vlgmr.msrb.gmra.mxu2 %v2116_v55  ;;  %v555_v26 = vld [vmem:[#allocation10 + $0x5d8] sm:$0xff] }
 0x1ff   :  { %1134 = vmatmul.f32.vlgmr.msrb.gmra.mxu3 %v2119_v58  ;;  %1138 = vmatpush.msra.mxu0 %v491_v57  ;;  %v683_v27 = vld [vmem:[#allocation10 + $0x9d8] sm:$0xff] }
 0x200   :  { %1158 = vmatpush.msra.mxu1 %v619_v59  ;;  %1178 = vmatpush.msra.mxu2 %v747_v60  ;;  %v811_v28 = vld [vmem:[#allocation10 + $0xdd8] sm:$0xff] }
 0x201   :  { %1198 = vmatpush.msra.mxu3 %v875_v61  ;;  %1139 = vmatpush.msra.mxu0 %v483_v62  ;;  %v419_v29 = vld [vmem:[#allocation10 + $0x198] sm:$0xff]  ;;  %v492_v62 = vld [vmem:[#allocation10 + $0x3e0] sm:$0xff] }
 0x202   :  { %1159 = vmatpush.msra.mxu1 %v611_v63  ;;  %1179 = vmatpush.msra.mxu2 %v739_v0  ;;  %v547_v30 = vld [vmem:[#allocation10 + $0x598] sm:$0xff]  ;;  %v620_v63 = vld [vmem:[#allocation10 + $0x7e0] sm:$0xff] }
 0x203   :  { %1199 = vmatpush.msra.mxu3 %v867_v1  ;;  %1140 = vmatpush.msra.mxu0 %v475_v2  ;;  %v675_v32 = vld [vmem:[#allocation10 + $0x998] sm:$0xff]  ;;  %v748_v0 = vld [vmem:[#allocation10 + $0xbe0] sm:$0xff] }
 0x204   :  { %1160 = vmatpush.msra.mxu1 %v603_v3  ;;  %1180 = vmatpush.msra.mxu2 %v731_v4  ;;  %v803_v33 = vld [vmem:[#allocation10 + $0xd98] sm:$0xff]  ;;  %v876_v1 = vld [vmem:[#allocation10 + $0xfe0] sm:$0xff] }
 0x205   :  { %1200 = vmatpush.msra.mxu3 %v859_v5  ;;  %1141 = vmatpush.msra.mxu0 %v467_v6  ;;  %v411_v34 = vld [vmem:[#allocation10 + $0x158] sm:$0xff]  ;;  %v484_v2 = vld [vmem:[#allocation10 + $0x3a0] sm:$0xff] }
 0x206   :  { %1161 = vmatpush.msra.mxu1 %v595_v7  ;;  %1181 = vmatpush.msra.mxu2 %v723_v8  ;;  %v539_v35 = vld [vmem:[#allocation10 + $0x558] sm:$0xff]  ;;  %v612_v3 = vld [vmem:[#allocation10 + $0x7a0] sm:$0xff] }
 0x207   :  { %1201 = vmatpush.msra.mxu3 %v851_v9  ;;  %1142 = vmatpush.msra.mxu0 %v459_v10  ;;  %v667_v36 = vld [vmem:[#allocation10 + $0x958] sm:$0xff]  ;;  %v740_v4 = vld [vmem:[#allocation10 + $0xba0] sm:$0xff] }
 0x208   :  { %1162 = vmatpush.msra.mxu1 %v587_v11  ;;  %1182 = vmatpush.msra.mxu2 %v715_v12  ;;  %v795_v37 = vld [vmem:[#allocation10 + $0xd58] sm:$0xff]  ;;  %v868_v5 = vld [vmem:[#allocation10 + $0xfa0] sm:$0xff] }
 0x209   :  { %1202 = vmatpush.msra.mxu3 %v843_v13  ;;  %1143 = vmatpush.msra.mxu0 %v451_v14  ;;  %v403_v40 = vld [vmem:[#allocation10 + $0x118] sm:$0xff]  ;;  %v476_v6 = vld [vmem:[#allocation10 + $0x360] sm:$0xff] }
 0x20a   :  { %1163 = vmatpush.msra.mxu1 %v579_v15  ;;  %1183 = vmatpush.msra.mxu2 %v707_v16  ;;  %v531_v41 = vld [vmem:[#allocation10 + $0x518] sm:$0xff]  ;;  %v604_v7 = vld [vmem:[#allocation10 + $0x760] sm:$0xff] }
 0x20b   :  { %1203 = vmatpush.msra.mxu3 %v835_v17  ;;  %1144 = vmatpush.msra.mxu0 %v443_v18  ;;  %v659_v42 = vld [vmem:[#allocation10 + $0x918] sm:$0xff]  ;;  %v732_v8 = vld [vmem:[#allocation10 + $0xb60] sm:$0xff] }
 0x20c   :  { %1164 = vmatpush.msra.mxu1 %v571_v31  ;;  %1184 = vmatpush.msra.mxu2 %v699_v19  ;;  %v787_v43 = vld [vmem:[#allocation10 + $0xd18] sm:$0xff]  ;;  %v860_v9 = vld [vmem:[#allocation10 + $0xf60] sm:$0xff] }
 0x20d   :  { %1204 = vmatpush.msra.mxu3 %v827_v20  ;;  %1145 = vmatpush.msra.mxu0 %v435_v21  ;;  %v395_v50 = vld [vmem:[#allocation10 + $0xd8] sm:$0xff]  ;;  %v468_v10 = vld [vmem:[#allocation10 + $0x320] sm:$0xff] }
 0x20e   :  { %1165 = vmatpush.msra.mxu1 %v563_v22  ;;  %1185 = vmatpush.msra.mxu2 %v691_v23  ;;  %v523_v51 = vld [vmem:[#allocation10 + $0x4d8] sm:$0xff]  ;;  %v596_v11 = vld [vmem:[#allocation10 + $0x720] sm:$0xff] }
 0x20f   :  { %1205 = vmatpush.msra.mxu3 %v819_v24  ;;  %1146 = vmatpush.msra.mxu0 %v427_v25  ;;  %v651_v52 = vld [vmem:[#allocation10 + $0x8d8] sm:$0xff]  ;;  %v724_v12 = vld [vmem:[#allocation10 + $0xb20] sm:$0xff] }
 0x210   :  { %1166 = vmatpush.msra.mxu1 %v555_v26  ;;  %1186 = vmatpush.msra.mxu2 %v683_v27  ;;  %v779_v53 = vld [vmem:[#allocation10 + $0xcd8] sm:$0xff]  ;;  %v852_v13 = vld [vmem:[#allocation10 + $0xf20] sm:$0xff] }
 0x211   :  { %1206 = vmatpush.msra.mxu3 %v811_v28  ;;  %1147 = vmatpush.msra.mxu0 %v419_v29  ;;  %v387_v38 = vld [vmem:[#allocation10 + $0x98] sm:$0xff]  ;;  %v460_v14 = vld [vmem:[#allocation10 + $0x2e0] sm:$0xff] }
 0x212   :  { %1167 = vmatpush.msra.mxu1 %v547_v30  ;;  %1187 = vmatpush.msra.mxu2 %v675_v32  ;;  %v515_v39 = vld [vmem:[#allocation10 + $0x498] sm:$0xff]  ;;  %v588_v15 = vld [vmem:[#allocation10 + $0x6e0] sm:$0xff] }
 0x213   :  { %1207 = vmatpush.msra.mxu3 %v803_v33  ;;  %1148 = vmatpush.msra.mxu0 %v411_v34  ;;  %v643_v47 = vld [vmem:[#allocation10 + $0x898] sm:$0xff]  ;;  %v716_v16 = vld [vmem:[#allocation10 + $0xae0] sm:$0xff] }
 0x214   :  { %1168 = vmatpush.msra.mxu1 %v539_v35  ;;  %1188 = vmatpush.msra.mxu2 %v667_v36  ;;  %v771_v54 = vld [vmem:[#allocation10 + $0xc98] sm:$0xff]  ;;  %v844_v17 = vld [vmem:[#allocation10 + $0xee0] sm:$0xff] }
 0x215   :  { %1208 = vmatpush.msra.mxu3 %v795_v37  ;;  %1149 = vmatpush.msra.mxu0 %v403_v40  ;;  %v379_v44 = vld [vmem:[#allocation10 + $0x58] sm:$0xff]  ;;  %v452_v18 = vld [vmem:[#allocation10 + $0x2a0] sm:$0xff] }
 0x216   :  { %1169 = vmatpush.msra.mxu1 %v531_v41  ;;  %1189 = vmatpush.msra.mxu2 %v659_v42  ;;  %v507_v45 = vld [vmem:[#allocation10 + $0x458] sm:$0xff]  ;;  %v580_v31 = vld [vmem:[#allocation10 + $0x6a0] sm:$0xff] }
 0x217   :  { %1209 = vmatpush.msra.mxu3 %v787_v43  ;;  %1150 = vmatpush.msra.mxu0 %v395_v50  ;;  %v635_v49 = vld [vmem:[#allocation10 + $0x858] sm:$0xff]  ;;  %v708_v19 = vld [vmem:[#allocation10 + $0xaa0] sm:$0xff] }
 0x218   :  { %1170 = vmatpush.msra.mxu1 %v523_v51  ;;  %1190 = vmatpush.msra.mxu2 %v651_v52  ;;  %v763_v56 = vld [vmem:[#allocation10 + $0xc58] sm:$0xff]  ;;  %v836_v20 = vld [vmem:[#allocation10 + $0xea0] sm:$0xff] }
 0x219   :  { %1210 = vmatpush.msra.mxu3 %v779_v53  ;;  %1151 = vmatpush.msra.mxu0 %v387_v38  ;;  %v371_v57 = vld [vmem:[#allocation10 + $0x18] sm:$0xff]  ;;  %v444_v21 = vld [vmem:[#allocation10 + $0x260] sm:$0xff] }
 0x21a   :  { %1171 = vmatpush.msra.mxu1 %v515_v39  ;;  %1191 = vmatpush.msra.mxu2 %v643_v47  ;;  %v499_v59 = vld [vmem:[#allocation10 + $0x418] sm:$0xff]  ;;  %v572_v22 = vld [vmem:[#allocation10 + $0x660] sm:$0xff] }
 0x21b   :  { %1211 = vmatpush.msra.mxu3 %v771_v54  ;;  %1152 = vmatpush.msra.mxu0 %v379_v44  ;;  %v627_v60 = vld [vmem:[#allocation10 + $0x818] sm:$0xff]  ;;  %v700_v23 = vld [vmem:[#allocation10 + $0xa60] sm:$0xff] }
 0x21c   :  { %1172 = vmatpush.msra.mxu1 %v507_v45  ;;  %1192 = vmatpush.msra.mxu2 %v635_v49  ;;  %v755_v61 = vld [vmem:[#allocation10 + $0xc18] sm:$0xff]  ;;  %v828_v24 = vld [vmem:[#allocation10 + $0xe60] sm:$0xff] }
 0x21d   :  { %1212 = vmatpush.msra.mxu3 %v763_v56  ;;  %1153 = vmatpush.msra.mxu0 %v371_v57  ;;  %v436_v25 = vld [vmem:[#allocation10 + $0x220] sm:$0xff] }
 0x21e   :  { %1173 = vmatpush.msra.mxu1 %v499_v59  ;;  %1193 = vmatpush.msra.mxu2 %v627_v60  ;;  %v564_v26 = vld [vmem:[#allocation10 + $0x620] sm:$0xff] }
 0x21f   :  { %1213 = vmatpush.msra.mxu3 %v755_v61  ;;  %1154 = vmatmul.f32.vlgmr.msra.gmra.mxu0 %v2111_v48  ;;  %v692_v27 = vld [vmem:[#allocation10 + $0xa20] sm:$0xff] }
 0x220   :  { %1174 = vmatmul.f32.vlgmr.msra.gmra.mxu1 %v2113_v46  ;;  %1194 = vmatmul.f32.vlgmr.msra.gmra.mxu2 %v2116_v55  ;;  %v820_v28 = vld [vmem:[#allocation10 + $0xe20] sm:$0xff] }
 0x221   :  { %1214 = vmatmul.f32.vlgmr.msra.gmra.mxu3 %v2119_v58  ;;  %1218 = vmatpush.msrb.mxu0 %v492_v62  ;;  %v428_v29 = vld [vmem:[#allocation10 + $0x1e0] sm:$0xff] }
 0x222   :  { %1238 = vmatpush.msrb.mxu1 %v620_v63  ;;  %1258 = vmatpush.msrb.mxu2 %v748_v0  ;;  %v556_v30 = vld [vmem:[#allocation10 + $0x5e0] sm:$0xff] }
 0x223   :  { %1278 = vmatpush.msrb.mxu3 %v876_v1  ;;  %1219 = vmatpush.msrb.mxu0 %v484_v2  ;;  %v684_v32 = vld [vmem:[#allocation10 + $0x9e0] sm:$0xff]  ;;  %v493_v2 = vld [vmem:[#allocation10 + $0x3e8] sm:$0xff] }
 0x224   :  { %1239 = vmatpush.msrb.mxu1 %v612_v3  ;;  %1259 = vmatpush.msrb.mxu2 %v740_v4  ;;  %v812_v33 = vld [vmem:[#allocation10 + $0xde0] sm:$0xff]  ;;  %v621_v3 = vld [vmem:[#allocation10 + $0x7e8] sm:$0xff] }
 0x225   :  { %1279 = vmatpush.msrb.mxu3 %v868_v5  ;;  %1220 = vmatpush.msrb.mxu0 %v476_v6  ;;  %v420_v34 = vld [vmem:[#allocation10 + $0x1a0] sm:$0xff]  ;;  %v749_v4 = vld [vmem:[#allocation10 + $0xbe8] sm:$0xff] }
 0x226   :  { %1240 = vmatpush.msrb.mxu1 %v604_v7  ;;  %1260 = vmatpush.msrb.mxu2 %v732_v8  ;;  %v548_v35 = vld [vmem:[#allocation10 + $0x5a0] sm:$0xff]  ;;  %v877_v5 = vld [vmem:[#allocation10 + $0xfe8] sm:$0xff] }
 0x227   :  { %1280 = vmatpush.msrb.mxu3 %v860_v9  ;;  %1221 = vmatpush.msrb.mxu0 %v468_v10  ;;  %v676_v36 = vld [vmem:[#allocation10 + $0x9a0] sm:$0xff]  ;;  %v485_v6 = vld [vmem:[#allocation10 + $0x3a8] sm:$0xff] }
 0x228   :  { %1241 = vmatpush.msrb.mxu1 %v596_v11  ;;  %1261 = vmatpush.msrb.mxu2 %v724_v12  ;;  %v804_v37 = vld [vmem:[#allocation10 + $0xda0] sm:$0xff]  ;;  %v613_v7 = vld [vmem:[#allocation10 + $0x7a8] sm:$0xff] }
 0x229   :  { %1281 = vmatpush.msrb.mxu3 %v852_v13  ;;  %1222 = vmatpush.msrb.mxu0 %v460_v14  ;;  %v412_v40 = vld [vmem:[#allocation10 + $0x160] sm:$0xff]  ;;  %v741_v8 = vld [vmem:[#allocation10 + $0xba8] sm:$0xff] }
 0x22a   :  { %1242 = vmatpush.msrb.mxu1 %v588_v15  ;;  %1262 = vmatpush.msrb.mxu2 %v716_v16  ;;  %v540_v41 = vld [vmem:[#allocation10 + $0x560] sm:$0xff]  ;;  %v869_v9 = vld [vmem:[#allocation10 + $0xfa8] sm:$0xff] }
 0x22b   :  { %1282 = vmatpush.msrb.mxu3 %v844_v17  ;;  %1223 = vmatpush.msrb.mxu0 %v452_v18  ;;  %v668_v42 = vld [vmem:[#allocation10 + $0x960] sm:$0xff]  ;;  %v477_v10 = vld [vmem:[#allocation10 + $0x368] sm:$0xff] }
 0x22c   :  { %1243 = vmatpush.msrb.mxu1 %v580_v31  ;;  %1263 = vmatpush.msrb.mxu2 %v708_v19  ;;  %v796_v43 = vld [vmem:[#allocation10 + $0xd60] sm:$0xff]  ;;  %v605_v11 = vld [vmem:[#allocation10 + $0x768] sm:$0xff] }
 0x22d   :  { %1283 = vmatpush.msrb.mxu3 %v836_v20  ;;  %1224 = vmatpush.msrb.mxu0 %v444_v21  ;;  %v404_v50 = vld [vmem:[#allocation10 + $0x120] sm:$0xff]  ;;  %v733_v12 = vld [vmem:[#allocation10 + $0xb68] sm:$0xff] }
 0x22e   :  { %1244 = vmatpush.msrb.mxu1 %v572_v22  ;;  %1264 = vmatpush.msrb.mxu2 %v700_v23  ;;  %v532_v51 = vld [vmem:[#allocation10 + $0x520] sm:$0xff]  ;;  %v861_v13 = vld [vmem:[#allocation10 + $0xf68] sm:$0xff] }
 0x22f   :  { %1284 = vmatpush.msrb.mxu3 %v828_v24  ;;  %1225 = vmatpush.msrb.mxu0 %v436_v25  ;;  %v660_v52 = vld [vmem:[#allocation10 + $0x920] sm:$0xff]  ;;  %v469_v14 = vld [vmem:[#allocation10 + $0x328] sm:$0xff] }
 0x230   :  { %1245 = vmatpush.msrb.mxu1 %v564_v26  ;;  %1265 = vmatpush.msrb.mxu2 %v692_v27  ;;  %v788_v53 = vld [vmem:[#allocation10 + $0xd20] sm:$0xff]  ;;  %v597_v15 = vld [vmem:[#allocation10 + $0x728] sm:$0xff] }
 0x231   :  { %1285 = vmatpush.msrb.mxu3 %v820_v28  ;;  %1226 = vmatpush.msrb.mxu0 %v428_v29  ;;  %v396_v38 = vld [vmem:[#allocation10 + $0xe0] sm:$0xff]  ;;  %v725_v16 = vld [vmem:[#allocation10 + $0xb28] sm:$0xff] }
 0x232   :  { %1246 = vmatpush.msrb.mxu1 %v556_v30  ;;  %1266 = vmatpush.msrb.mxu2 %v684_v32  ;;  %v524_v39 = vld [vmem:[#allocation10 + $0x4e0] sm:$0xff]  ;;  %v853_v17 = vld [vmem:[#allocation10 + $0xf28] sm:$0xff] }
 0x233   :  { %1286 = vmatpush.msrb.mxu3 %v812_v33  ;;  %1227 = vmatpush.msrb.mxu0 %v420_v34  ;;  %v652_v47 = vld [vmem:[#allocation10 + $0x8e0] sm:$0xff]  ;;  %v461_v18 = vld [vmem:[#allocation10 + $0x2e8] sm:$0xff] }
 0x234   :  { %1247 = vmatpush.msrb.mxu1 %v548_v35  ;;  %1267 = vmatpush.msrb.mxu2 %v676_v36  ;;  %v780_v54 = vld [vmem:[#allocation10 + $0xce0] sm:$0xff]  ;;  %v589_v31 = vld [vmem:[#allocation10 + $0x6e8] sm:$0xff] }
 0x235   :  { %1287 = vmatpush.msrb.mxu3 %v804_v37  ;;  %1228 = vmatpush.msrb.mxu0 %v412_v40  ;;  %v388_v44 = vld [vmem:[#allocation10 + $0xa0] sm:$0xff]  ;;  %v717_v19 = vld [vmem:[#allocation10 + $0xae8] sm:$0xff] }
 0x236   :  { %1248 = vmatpush.msrb.mxu1 %v540_v41  ;;  %1268 = vmatpush.msrb.mxu2 %v668_v42  ;;  %v516_v45 = vld [vmem:[#allocation10 + $0x4a0] sm:$0xff]  ;;  %v845_v20 = vld [vmem:[#allocation10 + $0xee8] sm:$0xff] }
 0x237   :  { %1288 = vmatpush.msrb.mxu3 %v796_v43  ;;  %1229 = vmatpush.msrb.mxu0 %v404_v50  ;;  %v644_v49 = vld [vmem:[#allocation10 + $0x8a0] sm:$0xff]  ;;  %v453_v21 = vld [vmem:[#allocation10 + $0x2a8] sm:$0xff] }
 0x238   :  { %1249 = vmatpush.msrb.mxu1 %v532_v51  ;;  %1269 = vmatpush.msrb.mxu2 %v660_v52  ;;  %v772_v56 = vld [vmem:[#allocation10 + $0xca0] sm:$0xff]  ;;  %v581_v22 = vld [vmem:[#allocation10 + $0x6a8] sm:$0xff] }
 0x239   :  { %1289 = vmatpush.msrb.mxu3 %v788_v53  ;;  %1230 = vmatpush.msrb.mxu0 %v396_v38  ;;  %v380_v57 = vld [vmem:[#allocation10 + $0x60] sm:$0xff]  ;;  %v709_v23 = vld [vmem:[#allocation10 + $0xaa8] sm:$0xff] }
 0x23a   :  { %1250 = vmatpush.msrb.mxu1 %v524_v39  ;;  %1270 = vmatpush.msrb.mxu2 %v652_v47  ;;  %v508_v59 = vld [vmem:[#allocation10 + $0x460] sm:$0xff]  ;;  %v837_v24 = vld [vmem:[#allocation10 + $0xea8] sm:$0xff] }
 0x23b   :  { %1290 = vmatpush.msrb.mxu3 %v780_v54  ;;  %1231 = vmatpush.msrb.mxu0 %v388_v44  ;;  %v636_v60 = vld [vmem:[#allocation10 + $0x860] sm:$0xff]  ;;  %v445_v25 = vld [vmem:[#allocation10 + $0x268] sm:$0xff] }
 0x23c   :  { %1251 = vmatpush.msrb.mxu1 %v516_v45  ;;  %1271 = vmatpush.msrb.mxu2 %v644_v49  ;;  %v764_v61 = vld [vmem:[#allocation10 + $0xc60] sm:$0xff]  ;;  %v573_v26 = vld [vmem:[#allocation10 + $0x668] sm:$0xff] }
 0x23d   :  { %v372_v62 = vld [vmem:[#allocation10 + $0x20] sm:$0xff]  ;;  %1291 = vmatpush.msrb.mxu3 %v772_v56  ;;  %1232 = vmatpush.msrb.mxu0 %v380_v57  ;;  %v701_v27 = vld [vmem:[#allocation10 + $0xa68] sm:$0xff] }
 0x23e   :  { %v500_v63 = vld [vmem:[#allocation10 + $0x420] sm:$0xff]  ;;  %1252 = vmatpush.msrb.mxu1 %v508_v59  ;;  %1272 = vmatpush.msrb.mxu2 %v636_v60  ;;  %v829_v28 = vld [vmem:[#allocation10 + $0xe68] sm:$0xff] }
 0x23f   :  { %v628_v0 = vld [vmem:[#allocation10 + $0x820] sm:$0xff]  ;;  %1292 = vmatpush.msrb.mxu3 %v764_v61  ;;  %1233 = vmatpush.msrb.mxu0 %v372_v62  ;;  %v437_v29 = vld [vmem:[#allocation10 + $0x228] sm:$0xff] }
 0x240   :  { %v756_v1 = vld [vmem:[#allocation10 + $0xc20] sm:$0xff]  ;;  %1253 = vmatpush.msrb.mxu1 %v500_v63  ;;  %1273 = vmatpush.msrb.mxu2 %v628_v0  ;;  %v565_v30 = vld [vmem:[#allocation10 + $0x628] sm:$0xff] }
 0x241   :  { %1293 = vmatpush.msrb.mxu3 %v756_v1  ;;  %1234 = vmatmul.f32.vlgmr.msrb.gmra.mxu0 %v2111_v48  ;;  %v693_v32 = vld [vmem:[#allocation10 + $0xa28] sm:$0xff] }
 0x242   :  { %1254 = vmatmul.f32.vlgmr.msrb.gmra.mxu1 %v2113_v46  ;;  %1274 = vmatmul.f32.vlgmr.msrb.gmra.mxu2 %v2116_v55  ;;  %v821_v33 = vld [vmem:[#allocation10 + $0xe28] sm:$0xff] }
 0x243   :  { %1294 = vmatmul.f32.vlgmr.msrb.gmra.mxu3 %v2119_v58  ;;  %1298 = vmatpush.msra.mxu0 %v493_v2  ;;  %v429_v34 = vld [vmem:[#allocation10 + $0x1e8] sm:$0xff] }
 0x244   :  { %1318 = vmatpush.msra.mxu1 %v621_v3  ;;  %1338 = vmatpush.msra.mxu2 %v749_v4  ;;  %v557_v35 = vld [vmem:[#allocation10 + $0x5e8] sm:$0xff] }
 0x245   :  { %1358 = vmatpush.msra.mxu3 %v877_v5  ;;  %1299 = vmatpush.msra.mxu0 %v485_v6  ;;  %v685_v36 = vld [vmem:[#allocation10 + $0x9e8] sm:$0xff]  ;;  %v494_v6 = vld [vmem:[#allocation10 + $0x3f0] sm:$0xff] }
 0x246   :  { %1319 = vmatpush.msra.mxu1 %v613_v7  ;;  %1339 = vmatpush.msra.mxu2 %v741_v8  ;;  %v813_v37 = vld [vmem:[#allocation10 + $0xde8] sm:$0xff]  ;;  %v622_v7 = vld [vmem:[#allocation10 + $0x7f0] sm:$0xff] }
 0x247   :  { %1359 = vmatpush.msra.mxu3 %v869_v9  ;;  %1300 = vmatpush.msra.mxu0 %v477_v10  ;;  %v421_v40 = vld [vmem:[#allocation10 + $0x1a8] sm:$0xff]  ;;  %v750_v8 = vld [vmem:[#allocation10 + $0xbf0] sm:$0xff] }
 0x248   :  { %1320 = vmatpush.msra.mxu1 %v605_v11  ;;  %1340 = vmatpush.msra.mxu2 %v733_v12  ;;  %v549_v41 = vld [vmem:[#allocation10 + $0x5a8] sm:$0xff]  ;;  %v878_v9 = vld [vmem:[#allocation10 + $0xff0] sm:$0xff] }
 0x249   :  { %1360 = vmatpush.msra.mxu3 %v861_v13  ;;  %1301 = vmatpush.msra.mxu0 %v469_v14  ;;  %v677_v42 = vld [vmem:[#allocation10 + $0x9a8] sm:$0xff]  ;;  %v486_v10 = vld [vmem:[#allocation10 + $0x3b0] sm:$0xff] }
 0x24a   :  { %1321 = vmatpush.msra.mxu1 %v597_v15  ;;  %1341 = vmatpush.msra.mxu2 %v725_v16  ;;  %v805_v43 = vld [vmem:[#allocation10 + $0xda8] sm:$0xff]  ;;  %v614_v11 = vld [vmem:[#allocation10 + $0x7b0] sm:$0xff] }
 0x24b   :  { %1361 = vmatpush.msra.mxu3 %v853_v17  ;;  %1302 = vmatpush.msra.mxu0 %v461_v18  ;;  %v413_v50 = vld [vmem:[#allocation10 + $0x168] sm:$0xff]  ;;  %v742_v12 = vld [vmem:[#allocation10 + $0xbb0] sm:$0xff] }
 0x24c   :  { %1322 = vmatpush.msra.mxu1 %v589_v31  ;;  %1342 = vmatpush.msra.mxu2 %v717_v19  ;;  %v541_v51 = vld [vmem:[#allocation10 + $0x568] sm:$0xff]  ;;  %v870_v13 = vld [vmem:[#allocation10 + $0xfb0] sm:$0xff] }
 0x24d   :  { %1362 = vmatpush.msra.mxu3 %v845_v20  ;;  %1303 = vmatpush.msra.mxu0 %v453_v21  ;;  %v669_v52 = vld [vmem:[#allocation10 + $0x968] sm:$0xff]  ;;  %v478_v14 = vld [vmem:[#allocation10 + $0x370] sm:$0xff] }
 0x24e   :  { %1323 = vmatpush.msra.mxu1 %v581_v22  ;;  %1343 = vmatpush.msra.mxu2 %v709_v23  ;;  %v797_v53 = vld [vmem:[#allocation10 + $0xd68] sm:$0xff]  ;;  %v606_v15 = vld [vmem:[#allocation10 + $0x770] sm:$0xff] }
 0x24f   :  { %1363 = vmatpush.msra.mxu3 %v837_v24  ;;  %1304 = vmatpush.msra.mxu0 %v445_v25  ;;  %v405_v38 = vld [vmem:[#allocation10 + $0x128] sm:$0xff]  ;;  %v734_v16 = vld [vmem:[#allocation10 + $0xb70] sm:$0xff] }
 0x250   :  { %1324 = vmatpush.msra.mxu1 %v573_v26  ;;  %1344 = vmatpush.msra.mxu2 %v701_v27  ;;  %v533_v39 = vld [vmem:[#allocation10 + $0x528] sm:$0xff]  ;;  %v862_v17 = vld [vmem:[#allocation10 + $0xf70] sm:$0xff] }
 0x251   :  { %1364 = vmatpush.msra.mxu3 %v829_v28  ;;  %1305 = vmatpush.msra.mxu0 %v437_v29  ;;  %v661_v47 = vld [vmem:[#allocation10 + $0x928] sm:$0xff]  ;;  %v470_v18 = vld [vmem:[#allocation10 + $0x330] sm:$0xff] }
 0x252   :  { %1325 = vmatpush.msra.mxu1 %v565_v30  ;;  %1345 = vmatpush.msra.mxu2 %v693_v32  ;;  %v789_v54 = vld [vmem:[#allocation10 + $0xd28] sm:$0xff]  ;;  %v598_v31 = vld [vmem:[#allocation10 + $0x730] sm:$0xff] }
 0x253   :  { %1365 = vmatpush.msra.mxu3 %v821_v33  ;;  %1306 = vmatpush.msra.mxu0 %v429_v34  ;;  %v397_v44 = vld [vmem:[#allocation10 + $0xe8] sm:$0xff]  ;;  %v726_v19 = vld [vmem:[#allocation10 + $0xb30] sm:$0xff] }
 0x254   :  { %1326 = vmatpush.msra.mxu1 %v557_v35  ;;  %1346 = vmatpush.msra.mxu2 %v685_v36  ;;  %v525_v45 = vld [vmem:[#allocation10 + $0x4e8] sm:$0xff]  ;;  %v854_v20 = vld [vmem:[#allocation10 + $0xf30] sm:$0xff] }
 0x255   :  { %1366 = vmatpush.msra.mxu3 %v813_v37  ;;  %1307 = vmatpush.msra.mxu0 %v421_v40  ;;  %v653_v49 = vld [vmem:[#allocation10 + $0x8e8] sm:$0xff]  ;;  %v462_v21 = vld [vmem:[#allocation10 + $0x2f0] sm:$0xff] }
 0x256   :  { %1327 = vmatpush.msra.mxu1 %v549_v41  ;;  %1347 = vmatpush.msra.mxu2 %v677_v42  ;;  %v781_v56 = vld [vmem:[#allocation10 + $0xce8] sm:$0xff]  ;;  %v590_v22 = vld [vmem:[#allocation10 + $0x6f0] sm:$0xff] }
 0x257   :  { %1367 = vmatpush.msra.mxu3 %v805_v43  ;;  %1308 = vmatpush.msra.mxu0 %v413_v50  ;;  %v389_v57 = vld [vmem:[#allocation10 + $0xa8] sm:$0xff]  ;;  %v718_v23 = vld [vmem:[#allocation10 + $0xaf0] sm:$0xff] }
 0x258   :  { %1328 = vmatpush.msra.mxu1 %v541_v51  ;;  %1348 = vmatpush.msra.mxu2 %v669_v52  ;;  %v517_v59 = vld [vmem:[#allocation10 + $0x4a8] sm:$0xff]  ;;  %v846_v24 = vld [vmem:[#allocation10 + $0xef0] sm:$0xff] }
 0x259   :  { %1368 = vmatpush.msra.mxu3 %v797_v53  ;;  %1309 = vmatpush.msra.mxu0 %v405_v38  ;;  %v645_v60 = vld [vmem:[#allocation10 + $0x8a8] sm:$0xff]  ;;  %v454_v25 = vld [vmem:[#allocation10 + $0x2b0] sm:$0xff] }
 0x25a   :  { %1329 = vmatpush.msra.mxu1 %v533_v39  ;;  %1349 = vmatpush.msra.mxu2 %v661_v47  ;;  %v773_v61 = vld [vmem:[#allocation10 + $0xca8] sm:$0xff]  ;;  %v582_v26 = vld [vmem:[#allocation10 + $0x6b0] sm:$0xff] }
 0x25b   :  { %1369 = vmatpush.msra.mxu3 %v789_v54  ;;  %1310 = vmatpush.msra.mxu0 %v397_v44  ;;  %v381_v62 = vld [vmem:[#allocation10 + $0x68] sm:$0xff]  ;;  %v710_v27 = vld [vmem:[#allocation10 + $0xab0] sm:$0xff] }
 0x25c   :  { %1330 = vmatpush.msra.mxu1 %v525_v45  ;;  %1350 = vmatpush.msra.mxu2 %v653_v49  ;;  %v509_v63 = vld [vmem:[#allocation10 + $0x468] sm:$0xff]  ;;  %v838_v28 = vld [vmem:[#allocation10 + $0xeb0] sm:$0xff] }
 0x25d   :  { %1370 = vmatpush.msra.mxu3 %v781_v56  ;;  %1311 = vmatpush.msra.mxu0 %v389_v57  ;;  %v637_v0 = vld [vmem:[#allocation10 + $0x868] sm:$0xff]  ;;  %v446_v29 = vld [vmem:[#allocation10 + $0x270] sm:$0xff] }
 0x25e   :  { %1331 = vmatpush.msra.mxu1 %v517_v59  ;;  %1351 = vmatpush.msra.mxu2 %v645_v60  ;;  %v765_v1 = vld [vmem:[#allocation10 + $0xc68] sm:$0xff]  ;;  %v574_v30 = vld [vmem:[#allocation10 + $0x670] sm:$0xff] }
 0x25f   :  { %v373_v2 = vld [vmem:[#allocation10 + $0x28] sm:$0xff]  ;;  %1371 = vmatpush.msra.mxu3 %v773_v61  ;;  %1312 = vmatpush.msra.mxu0 %v381_v62  ;;  %v702_v32 = vld [vmem:[#allocation10 + $0xa70] sm:$0xff] }
 0x260   :  { %v501_v3 = vld [vmem:[#allocation10 + $0x428] sm:$0xff]  ;;  %1332 = vmatpush.msra.mxu1 %v509_v63  ;;  %1352 = vmatpush.msra.mxu2 %v637_v0  ;;  %v830_v33 = vld [vmem:[#allocation10 + $0xe70] sm:$0xff] }
 0x261   :  { %v629_v4 = vld [vmem:[#allocation10 + $0x828] sm:$0xff]  ;;  %1372 = vmatpush.msra.mxu3 %v765_v1  ;;  %1313 = vmatpush.msra.mxu0 %v373_v2  ;;  %v438_v34 = vld [vmem:[#allocation10 + $0x230] sm:$0xff] }
 0x262   :  { %v757_v5 = vld [vmem:[#allocation10 + $0xc28] sm:$0xff]  ;;  %1333 = vmatpush.msra.mxu1 %v501_v3  ;;  %1353 = vmatpush.msra.mxu2 %v629_v4  ;;  %v566_v35 = vld [vmem:[#allocation10 + $0x630] sm:$0xff] }
 0x263   :  { %1373 = vmatpush.msra.mxu3 %v757_v5  ;;  %1314 = vmatmul.f32.vlgmr.msra.gmra.mxu0 %v2111_v48  ;;  %v694_v36 = vld [vmem:[#allocation10 + $0xa30] sm:$0xff] }
 0x264   :  { %1334 = vmatmul.f32.vlgmr.msra.gmra.mxu1 %v2113_v46  ;;  %1354 = vmatmul.f32.vlgmr.msra.gmra.mxu2 %v2116_v55  ;;  %v822_v37 = vld [vmem:[#allocation10 + $0xe30] sm:$0xff] }
 0x265   :  { %1374 = vmatmul.f32.vlgmr.msra.gmra.mxu3 %v2119_v58  ;;  %1378 = vmatpush.msrb.mxu0 %v494_v6  ;;  %v430_v40 = vld [vmem:[#allocation10 + $0x1f0] sm:$0xff] }
 0x266   :  { %1398 = vmatpush.msrb.mxu1 %v622_v7  ;;  %1418 = vmatpush.msrb.mxu2 %v750_v8  ;;  %v558_v41 = vld [vmem:[#allocation10 + $0x5f0] sm:$0xff] }
 0x267   :  { %1438 = vmatpush.msrb.mxu3 %v878_v9  ;;  %1379 = vmatpush.msrb.mxu0 %v486_v10  ;;  %v686_v42 = vld [vmem:[#allocation10 + $0x9f0] sm:$0xff]  ;;  %v495_v10 = vld [vmem:[#allocation10 + $0x3f8] sm:$0xff] }
 0x268   :  { %1399 = vmatpush.msrb.mxu1 %v614_v11  ;;  %1419 = vmatpush.msrb.mxu2 %v742_v12  ;;  %v814_v43 = vld [vmem:[#allocation10 + $0xdf0] sm:$0xff]  ;;  %v623_v11 = vld [vmem:[#allocation10 + $0x7f8] sm:$0xff] }
 0x269   :  { %1439 = vmatpush.msrb.mxu3 %v870_v13  ;;  %1380 = vmatpush.msrb.mxu0 %v478_v14  ;;  %v422_v50 = vld [vmem:[#allocation10 + $0x1b0] sm:$0xff]  ;;  %v751_v12 = vld [vmem:[#allocation10 + $0xbf8] sm:$0xff] }
 0x26a   :  { %1400 = vmatpush.msrb.mxu1 %v606_v15  ;;  %1420 = vmatpush.msrb.mxu2 %v734_v16  ;;  %v550_v51 = vld [vmem:[#allocation10 + $0x5b0] sm:$0xff]  ;;  %v879_v13 = vld [vmem:[#allocation10 + $0xff8] sm:$0xff] }
 0x26b   :  { %1440 = vmatpush.msrb.mxu3 %v862_v17  ;;  %1381 = vmatpush.msrb.mxu0 %v470_v18  ;;  %v678_v52 = vld [vmem:[#allocation10 + $0x9b0] sm:$0xff]  ;;  %v487_v14 = vld [vmem:[#allocation10 + $0x3b8] sm:$0xff] }
 0x26c   :  { %1401 = vmatpush.msrb.mxu1 %v598_v31  ;;  %1421 = vmatpush.msrb.mxu2 %v726_v19  ;;  %v806_v53 = vld [vmem:[#allocation10 + $0xdb0] sm:$0xff]  ;;  %v615_v15 = vld [vmem:[#allocation10 + $0x7b8] sm:$0xff] }
 0x26d   :  { %1441 = vmatpush.msrb.mxu3 %v854_v20  ;;  %1382 = vmatpush.msrb.mxu0 %v462_v21  ;;  %v414_v38 = vld [vmem:[#allocation10 + $0x170] sm:$0xff]  ;;  %v743_v16 = vld [vmem:[#allocation10 + $0xbb8] sm:$0xff] }
 0x26e   :  { %1402 = vmatpush.msrb.mxu1 %v590_v22  ;;  %1422 = vmatpush.msrb.mxu2 %v718_v23  ;;  %v542_v39 = vld [vmem:[#allocation10 + $0x570] sm:$0xff]  ;;  %v871_v17 = vld [vmem:[#allocation10 + $0xfb8] sm:$0xff] }
 0x26f   :  { %1442 = vmatpush.msrb.mxu3 %v846_v24  ;;  %1383 = vmatpush.msrb.mxu0 %v454_v25  ;;  %v670_v47 = vld [vmem:[#allocation10 + $0x970] sm:$0xff]  ;;  %v479_v18 = vld [vmem:[#allocation10 + $0x378] sm:$0xff] }
 0x270   :  { %1403 = vmatpush.msrb.mxu1 %v582_v26  ;;  %1423 = vmatpush.msrb.mxu2 %v710_v27  ;;  %v798_v54 = vld [vmem:[#allocation10 + $0xd70] sm:$0xff]  ;;  %v607_v31 = vld [vmem:[#allocation10 + $0x778] sm:$0xff] }
 0x271   :  { %1443 = vmatpush.msrb.mxu3 %v838_v28  ;;  %1384 = vmatpush.msrb.mxu0 %v446_v29  ;;  %v406_v44 = vld [vmem:[#allocation10 + $0x130] sm:$0xff]  ;;  %v735_v19 = vld [vmem:[#allocation10 + $0xb78] sm:$0xff] }
 0x272   :  { %1404 = vmatpush.msrb.mxu1 %v574_v30  ;;  %1424 = vmatpush.msrb.mxu2 %v702_v32  ;;  %v534_v45 = vld [vmem:[#allocation10 + $0x530] sm:$0xff]  ;;  %v863_v20 = vld [vmem:[#allocation10 + $0xf78] sm:$0xff] }
 0x273   :  { %1444 = vmatpush.msrb.mxu3 %v830_v33  ;;  %1385 = vmatpush.msrb.mxu0 %v438_v34  ;;  %v662_v49 = vld [vmem:[#allocation10 + $0x930] sm:$0xff]  ;;  %v471_v21 = vld [vmem:[#allocation10 + $0x338] sm:$0xff] }
 0x274   :  { %1405 = vmatpush.msrb.mxu1 %v566_v35  ;;  %1425 = vmatpush.msrb.mxu2 %v694_v36  ;;  %v790_v56 = vld [vmem:[#allocation10 + $0xd30] sm:$0xff]  ;;  %v599_v22 = vld [vmem:[#allocation10 + $0x738] sm:$0xff] }
 0x275   :  { %1445 = vmatpush.msrb.mxu3 %v822_v37  ;;  %1386 = vmatpush.msrb.mxu0 %v430_v40  ;;  %v398_v57 = vld [vmem:[#allocation10 + $0xf0] sm:$0xff]  ;;  %v727_v23 = vld [vmem:[#allocation10 + $0xb38] sm:$0xff] }
 0x276   :  { %1406 = vmatpush.msrb.mxu1 %v558_v41  ;;  %1426 = vmatpush.msrb.mxu2 %v686_v42  ;;  %v526_v59 = vld [vmem:[#allocation10 + $0x4f0] sm:$0xff]  ;;  %v855_v24 = vld [vmem:[#allocation10 + $0xf38] sm:$0xff] }
 0x277   :  { %1446 = vmatpush.msrb.mxu3 %v814_v43  ;;  %1387 = vmatpush.msrb.mxu0 %v422_v50  ;;  %v654_v60 = vld [vmem:[#allocation10 + $0x8f0] sm:$0xff]  ;;  %v463_v25 = vld [vmem:[#allocation10 + $0x2f8] sm:$0xff] }
 0x278   :  { %1407 = vmatpush.msrb.mxu1 %v550_v51  ;;  %1427 = vmatpush.msrb.mxu2 %v678_v52  ;;  %v782_v61 = vld [vmem:[#allocation10 + $0xcf0] sm:$0xff]  ;;  %v591_v26 = vld [vmem:[#allocation10 + $0x6f8] sm:$0xff] }
 0x279   :  { %1447 = vmatpush.msrb.mxu3 %v806_v53  ;;  %1388 = vmatpush.msrb.mxu0 %v414_v38  ;;  %v390_v62 = vld [vmem:[#allocation10 + $0xb0] sm:$0xff]  ;;  %v719_v27 = vld [vmem:[#allocation10 + $0xaf8] sm:$0xff] }
 0x27a   :  { %1408 = vmatpush.msrb.mxu1 %v542_v39  ;;  %1428 = vmatpush.msrb.mxu2 %v670_v47  ;;  %v518_v63 = vld [vmem:[#allocation10 + $0x4b0] sm:$0xff]  ;;  %v847_v28 = vld [vmem:[#allocation10 + $0xef8] sm:$0xff] }
 0x27b   :  { %1448 = vmatpush.msrb.mxu3 %v798_v54  ;;  %1389 = vmatpush.msrb.mxu0 %v406_v44  ;;  %v646_v0 = vld [vmem:[#allocation10 + $0x8b0] sm:$0xff]  ;;  %v455_v29 = vld [vmem:[#allocation10 + $0x2b8] sm:$0xff] }
 0x27c   :  { %1409 = vmatpush.msrb.mxu1 %v534_v45  ;;  %1429 = vmatpush.msrb.mxu2 %v662_v49  ;;  %v774_v1 = vld [vmem:[#allocation10 + $0xcb0] sm:$0xff]  ;;  %v583_v30 = vld [vmem:[#allocation10 + $0x6b8] sm:$0xff] }
 0x27d   :  { %1449 = vmatpush.msrb.mxu3 %v790_v56  ;;  %1390 = vmatpush.msrb.mxu0 %v398_v57  ;;  %v382_v2 = vld [vmem:[#allocation10 + $0x70] sm:$0xff]  ;;  %v711_v32 = vld [vmem:[#allocation10 + $0xab8] sm:$0xff] }
 0x27e   :  { %1410 = vmatpush.msrb.mxu1 %v526_v59  ;;  %1430 = vmatpush.msrb.mxu2 %v654_v60  ;;  %v510_v3 = vld [vmem:[#allocation10 + $0x470] sm:$0xff]  ;;  %v839_v33 = vld [vmem:[#allocation10 + $0xeb8] sm:$0xff] }
 0x27f   :  { %1450 = vmatpush.msrb.mxu3 %v782_v61  ;;  %1391 = vmatpush.msrb.mxu0 %v390_v62  ;;  %v638_v4 = vld [vmem:[#allocation10 + $0x870] sm:$0xff]  ;;  %v447_v34 = vld [vmem:[#allocation10 + $0x278] sm:$0xff] }
 0x280   :  { %1411 = vmatpush.msrb.mxu1 %v518_v63  ;;  %1431 = vmatpush.msrb.mxu2 %v646_v0  ;;  %v766_v5 = vld [vmem:[#allocation10 + $0xc70] sm:$0xff]  ;;  %v575_v35 = vld [vmem:[#allocation10 + $0x678] sm:$0xff] }
 0x281   :  { %v374_v6 = vld [vmem:[#allocation10 + $0x30] sm:$0xff]  ;;  %1451 = vmatpush.msrb.mxu3 %v774_v1  ;;  %1392 = vmatpush.msrb.mxu0 %v382_v2  ;;  %v703_v36 = vld [vmem:[#allocation10 + $0xa78] sm:$0xff] }
 0x282   :  { %v502_v7 = vld [vmem:[#allocation10 + $0x430] sm:$0xff]  ;;  %1412 = vmatpush.msrb.mxu1 %v510_v3  ;;  %1432 = vmatpush.msrb.mxu2 %v638_v4  ;;  %v831_v37 = vld [vmem:[#allocation10 + $0xe78] sm:$0xff] }
 0x283   :  { %v630_v8 = vld [vmem:[#allocation10 + $0x830] sm:$0xff]  ;;  %1452 = vmatpush.msrb.mxu3 %v766_v5  ;;  %1393 = vmatpush.msrb.mxu0 %v374_v6  ;;  %v439_v40 = vld [vmem:[#allocation10 + $0x238] sm:$0xff] }
 0x284   :  { %v758_v9 = vld [vmem:[#allocation10 + $0xc30] sm:$0xff]  ;;  %1413 = vmatpush.msrb.mxu1 %v502_v7  ;;  %1433 = vmatpush.msrb.mxu2 %v630_v8  ;;  %v567_v41 = vld [vmem:[#allocation10 + $0x638] sm:$0xff] }
 0x285   :  { %1453 = vmatpush.msrb.mxu3 %v758_v9  ;;  %1394 = vmatmul.f32.vlgmr.msrb.gmra.mxu0 %v2111_v48  ;;  %v695_v42 = vld [vmem:[#allocation10 + $0xa38] sm:$0xff] }
 0x286   :  { %1414 = vmatmul.f32.vlgmr.msrb.gmra.mxu1 %v2113_v46  ;;  %1434 = vmatmul.f32.vlgmr.msrb.gmra.mxu2 %v2116_v55  ;;  %v823_v43 = vld [vmem:[#allocation10 + $0xe38] sm:$0xff] }
 0x287   :  { %1454 = vmatmul.f32.vlgmr.msrb.gmra.mxu3 %v2119_v58  ;;  %1458 = vmatpush.msra.mxu0 %v495_v10  ;;  %v431_v50 = vld [vmem:[#allocation10 + $0x1f8] sm:$0xff] }
 0x288   :  { %1478 = vmatpush.msra.mxu1 %v623_v11  ;;  %1498 = vmatpush.msra.mxu2 %v751_v12  ;;  %v559_v51 = vld [vmem:[#allocation10 + $0x5f8] sm:$0xff] }
 0x289   :  { %1518 = vmatpush.msra.mxu3 %v879_v13  ;;  %1459 = vmatpush.msra.mxu0 %v487_v14  ;;  %v687_v52 = vld [vmem:[#allocation10 + $0x9f8] sm:$0xff]  ;;  %v915_v14 = vpop.f32.mrf.mxu0 }
 0x28a   :  { %1479 = vmatpush.msra.mxu1 %v615_v15  ;;  %1499 = vmatpush.msra.mxu2 %v743_v16  ;;  %v815_v53 = vld [vmem:[#allocation10 + $0xdf8] sm:$0xff]  ;;  %v935_v15 = vpop.f32.mrf.mxu1  ;;  %v955_v16 = vpop.f32.mrf.mxu2 }
 0x28b   :  { %1519 = vmatpush.msra.mxu3 %v871_v17  ;;  %1460 = vmatpush.msra.mxu0 %v479_v18  ;;  %v423_v38 = vld [vmem:[#allocation10 + $0x1b8] sm:$0xff]  ;;  %v975_v17 = vpop.f32.mrf.mxu3 }
 0x28c   :  { %1480 = vmatpush.msra.mxu1 %v607_v31  ;;  %1500 = vmatpush.msra.mxu2 %v735_v19  ;;  %v551_v39 = vld [vmem:[#allocation10 + $0x5b8] sm:$0xff] }
 0x28d   :  { %1520 = vmatpush.msra.mxu3 %v863_v20  ;;  %1461 = vmatpush.msra.mxu0 %v471_v21  ;;  %v679_v47 = vld [vmem:[#allocation10 + $0x9b8] sm:$0xff] }
 0x28e   :  { %1481 = vmatpush.msra.mxu1 %v599_v22  ;;  %1501 = vmatpush.msra.mxu2 %v727_v23  ;;  %v807_v54 = vld [vmem:[#allocation10 + $0xdb8] sm:$0xff] }
 0x28f   :  { %1521 = vmatpush.msra.mxu3 %v855_v24  ;;  %1462 = vmatpush.msra.mxu0 %v463_v25  ;;  %v415_v44 = vld [vmem:[#allocation10 + $0x178] sm:$0xff] }
 0x290   :  { %1482 = vmatpush.msra.mxu1 %v591_v26  ;;  %1502 = vmatpush.msra.mxu2 %v719_v27  ;;  %v543_v45 = vld [vmem:[#allocation10 + $0x578] sm:$0xff] }
 0x291   :  { %1522 = vmatpush.msra.mxu3 %v847_v28  ;;  %1463 = vmatpush.msra.mxu0 %v455_v29  ;;  %v671_v49 = vld [vmem:[#allocation10 + $0x978] sm:$0xff]  ;;  %v995_v18 = vpop.f32.mrf.mxu0 }
 0x292   :  { %1483 = vmatpush.msra.mxu1 %v583_v30  ;;  %1503 = vmatpush.msra.mxu2 %v711_v32  ;;  %v799_v56 = vld [vmem:[#allocation10 + $0xd78] sm:$0xff]  ;;  %v1015_v31 = vpop.f32.mrf.mxu1  ;;  %v1035_v19 = vpop.f32.mrf.mxu2 }
 0x293   :  { %1523 = vmatpush.msra.mxu3 %v839_v33  ;;  %1464 = vmatpush.msra.mxu0 %v447_v34  ;;  %v407_v57 = vld [vmem:[#allocation10 + $0x138] sm:$0xff]  ;;  %v1055_v21 = vpop.f32.mrf.mxu3 }
 0x294   :  { %1484 = vmatpush.msra.mxu1 %v575_v35  ;;  %1504 = vmatpush.msra.mxu2 %v703_v36  ;;  %v535_v59 = vld [vmem:[#allocation10 + $0x538] sm:$0xff] }
 0x295   :  { %1524 = vmatpush.msra.mxu3 %v831_v37  ;;  %1465 = vmatpush.msra.mxu0 %v439_v40  ;;  %v663_v60 = vld [vmem:[#allocation10 + $0x938] sm:$0xff] }
 0x296   :  { %1485 = vmatpush.msra.mxu1 %v567_v41  ;;  %1505 = vmatpush.msra.mxu2 %v695_v42  ;;  %v791_v61 = vld [vmem:[#allocation10 + $0xd38] sm:$0xff] }
 0x297   :  { %1525 = vmatpush.msra.mxu3 %v823_v43  ;;  %1466 = vmatpush.msra.mxu0 %v431_v50  ;;  %v399_v62 = vld [vmem:[#allocation10 + $0xf8] sm:$0xff] }
 0x298   :  { %1486 = vmatpush.msra.mxu1 %v559_v51  ;;  %1506 = vmatpush.msra.mxu2 %v687_v52  ;;  %v527_v63 = vld [vmem:[#allocation10 + $0x4f8] sm:$0xff] }
 0x299   :  { %1526 = vmatpush.msra.mxu3 %v815_v53  ;;  %1467 = vmatpush.msra.mxu0 %v423_v38  ;;  %v655_v0 = vld [vmem:[#allocation10 + $0x8f8] sm:$0xff]  ;;  %v1075_v20 = vpop.f32.mrf.mxu0 }
 0x29a   :  { %1487 = vmatpush.msra.mxu1 %v551_v39  ;;  %1507 = vmatpush.msra.mxu2 %v679_v47  ;;  %v783_v1 = vld [vmem:[#allocation10 + $0xcf8] sm:$0xff]  ;;  %v1095_v22 = vpop.f32.mrf.mxu1  ;;  %v1115_v23 = vpop.f32.mrf.mxu2 }
 0x29b   :  { %1527 = vmatpush.msra.mxu3 %v807_v54  ;;  %1468 = vmatpush.msra.mxu0 %v415_v44  ;;  %v391_v2 = vld [vmem:[#allocation10 + $0xb8] sm:$0xff]  ;;  %v1135_v25 = vpop.f32.mrf.mxu3 }
 0x29c   :  { %1488 = vmatpush.msra.mxu1 %v543_v45  ;;  %1508 = vmatpush.msra.mxu2 %v671_v49  ;;  %v519_v3 = vld [vmem:[#allocation10 + $0x4b8] sm:$0xff] }
 0x29d   :  { %1528 = vmatpush.msra.mxu3 %v799_v56  ;;  %1469 = vmatpush.msra.mxu0 %v407_v57  ;;  %v647_v4 = vld [vmem:[#allocation10 + $0x8b8] sm:$0xff] }
 0x29e   :  { %1489 = vmatpush.msra.mxu1 %v535_v59  ;;  %1509 = vmatpush.msra.mxu2 %v663_v60  ;;  %v775_v5 = vld [vmem:[#allocation10 + $0xcb8] sm:$0xff] }
 0x29f   :  { %1529 = vmatpush.msra.mxu3 %v791_v61  ;;  %1470 = vmatpush.msra.mxu0 %v399_v62  ;;  %v383_v6 = vld [vmem:[#allocation10 + $0x78] sm:$0xff] }
 0x2a0   :  { %1490 = vmatpush.msra.mxu1 %v527_v63  ;;  %1510 = vmatpush.msra.mxu2 %v655_v0  ;;  %v511_v7 = vld [vmem:[#allocation10 + $0x478] sm:$0xff] }
 0x2a1   :  { %1530 = vmatpush.msra.mxu3 %v783_v1  ;;  %1471 = vmatpush.msra.mxu0 %v391_v2  ;;  %v639_v8 = vld [vmem:[#allocation10 + $0x878] sm:$0xff]  ;;  %v1155_v24 = vpop.f32.mrf.mxu0 }
 0x2a2   :  { %1491 = vmatpush.msra.mxu1 %v519_v3  ;;  %1511 = vmatpush.msra.mxu2 %v647_v4  ;;  %v767_v9 = vld [vmem:[#allocation10 + $0xc78] sm:$0xff] }
 0x2a3   :  { %v375_v10 = vld [vmem:[#allocation10 + $0x38] sm:$0xff]  ;;  %1531 = vmatpush.msra.mxu3 %v775_v5  ;;  %1472 = vmatpush.msra.mxu0 %v383_v6  ;;  %v1195_v26 = vpop.f32.mrf.mxu2 }
 0x2a4   :  { %v503_v11 = vld [vmem:[#allocation10 + $0x438] sm:$0xff]  ;;  %1492 = vmatpush.msra.mxu1 %v511_v7  ;;  %1512 = vmatpush.msra.mxu2 %v639_v8  ;;  %v1215_v27 = vpop.f32.mrf.mxu3 }
 0x2a5   :  { %v631_v12 = vld [vmem:[#allocation10 + $0x838] sm:$0xff]  ;;  %1532 = vmatpush.msra.mxu3 %v767_v9  ;;  %1473 = vmatpush.msra.mxu0 %v375_v10 }
 0x2a6   :  { %v759_v13 = vld [vmem:[#allocation10 + $0xc38] sm:$0xff]  ;;  %1493 = vmatpush.msra.mxu1 %v503_v11  ;;  %1513 = vmatpush.msra.mxu2 %v631_v12 }
 0x2a7   :  { %1533 = vmatpush.msra.mxu3 %v759_v13  ;;  %1474 = vmatmul.f32.vlgmr.msra.gmra.mxu0 %v2111_v48  ;;  %v1175_v48 = vpop.f32.mrf.mxu1 }
 0x2a8   :  { %1494 = vmatmul.f32.vlgmr.msra.gmra.mxu1 %v2113_v46  ;;  %1514 = vmatmul.f32.vlgmr.msra.gmra.mxu2 %v2116_v55  ;;  %v880_v55 = vld [vmem:[#allocation12] sm:$0xff] }
 0x2a9   :  { %1534 = vmatmul.f32.vlgmr.msra.gmra.mxu3 %v2119_v58  ;;  %v883_v28 = vperm.slane %v880_v55, 1  ;;  %v882_v30 = vperm.slane %v880_v55, 0  ;;  %v884_v32 = vperm.slane %v880_v55, 2  ;;  %v885_v35 = vperm.slane %v880_v55, 3 }
 0x2aa   :  { %v886_v41 = vperm.slane %v880_v55, 4  ;;  %v887_v50 = vperm.slane %v880_v55, 5  ;;  %v888_v54 = vperm.slane %v880_v55, 6  ;;  %v889_v10 = vperm.slane %v880_v55, 7 }
 0x2ab   :  { %v996_v33 = vadd.f32 %v995_v18, %v883_v28  ;;  %v916_v37 = vadd.f32 %v915_v14, %v882_v30  ;;  %v1076_v40 = vadd.f32 %v1075_v20, %v884_v32  ;;  %v1156_v43 = vadd.f32 %v1155_v24, %v885_v35 }
 0x2ad   :  { %v1016_v42 = vadd.f32 %v1015_v31, %v996_v33  ;;  %v936_v38 = vadd.f32 %v935_v15, %v916_v37  ;;  %v1096_v39 = vadd.f32 %v1095_v22, %v1076_v40  ;;  %v1176_v56 = vadd.f32 %v1175_v48, %v1156_v43 }
 0x2af   :  { %v1036_v51 = vadd.f32 %v1035_v19, %v1016_v42  ;;  %v956_v45 = vadd.f32 %v955_v16, %v936_v38  ;;  %v1116_v49 = vadd.f32 %v1115_v23, %v1096_v39  ;;  %v1196_v61 = vadd.f32 %v1195_v26, %v1176_v56 }
 0x2b1   :  { %v1056_v59 = vadd.f32 %v1055_v21, %v1036_v51  ;;  %v976_v0 = vadd.f32 %v975_v17, %v956_v45  ;;  %v1136_v1 = vadd.f32 %v1135_v25, %v1116_v49  ;;  %v1216_v7 = vadd.f32 %v1215_v27, %v1196_v61 }
 0x2b3   :  { %v1541_v4 = vsel %vm287_vm1, %v1056_v59, 0.0  ;;  %v1540_v11 = vsel %vm287_vm1, %v976_v0, 0.0  ;;  %v1543_v12 = vsel %vm287_vm1, %v1136_v1, 0.0  ;;  %v1545_v18 = vsel %vm287_vm1, %v1216_v7, 0.0 }
 0x2b4   :  { %v1542_v16 = vadd.f32 %v1541_v4, %v1540_v11 }
 0x2b6   :  { %v1544_v20 = vadd.f32 %v1543_v12, %v1542_v16 }
 0x2b8   :  { %v1546_v23 = vadd.f32 %v1545_v18, %v1544_v20 }
 0x2be   :  { %v1235_v46 = vpop.f32.mrf.mxu0 }
 0x2bf   :  { %v1255_v58 = vpop.f32.mrf.mxu1  ;;  %v1236_v47 = vadd.f32 %v1235_v46, %v886_v41 }
 0x2c1   :  { %v1256_v62 = vadd.f32 %v1255_v58, %v1236_v47 }
 0x2c5   :  { %v1275_v29 = vpop.f32.mrf.mxu2 }
 0x2c6   :  { %v1295_v36 = vpop.f32.mrf.mxu3  ;;  %v1276_v2 = vadd.f32 %v1275_v29, %v1256_v62 }
 0x2c8   :  { %v1296_v13 = vadd.f32 %v1295_v36, %v1276_v2 }
 0x2ca   :  { %v1547_v21 = vsel %vm287_vm1, %v1296_v13, 0.0 }
 0x2cb   :  { %v1548_v26 = vadd.f32 %v1547_v21, %v1546_v23  ;;  %v1539_v21 = vld [vmem:[#allocation15] sm:$0xff] }
 0x2e0   :  { %v1315_v34 = vpop.f32.mrf.mxu0 }
 0x2e1   :  { %v1335_v52 = vpop.f32.mrf.mxu1  ;;  %v1316_v57 = vadd.f32 %v1315_v34, %v887_v50  ;;  %v1978_v34 = vmov 1024.0  }
 0x2e2   :  { %1734 = vrcp.f32 %v1978_v34  ;;  %v1649_v34 = vperm.slane %v1539_v21, 5 }
 0x2e3   :  { %v1336_v3 = vadd.f32 %v1335_v52, %v1316_v57 }
 0x2e7   :  { %v1355_v53 = vpop.f32.mrf.mxu2 }
 0x2e8   :  { %v1375_v60 = vpop.f32.mrf.mxu3  ;;  %v1356_v8 = vadd.f32 %v1355_v53, %v1336_v3  ;;  %v1735_v35 = vpop.eup %1734 }
 0x2e9   :  { %v1558_v36 = vmul.f32 1024.0, %v1735_v35  ;;  %vm1562_vm6 = vweird.f32 %v1735_v35 }
 0x2ea   :  { %v1376_v31 = vadd.f32 %v1375_v60, %v1356_v8 }
 0x2eb   :  { %v1559_v37 = vsub.f32 1.0, %v1558_v36  ;;  %v1651_v36 = vperm.slane %v1539_v21, 7 }
 0x2ec   :  { %v1549_v25 = vsel %vm287_vm1, %v1376_v31, 0.0 }
 0x2ed   :  { %v1550_v28 = vadd.f32 %v1549_v25, %v1548_v26  ;;  %v1560_v40 = vmul.f32 %v1735_v35, %v1559_v37 }
 0x2ef   :  { %v1561_v41 = vadd.f32 %v1735_v35, %v1560_v40 }
 0x2f1   :  { %v1563_v42 = vsel %vm1562_vm6, %v1735_v35, %v1561_v41  ;;  %v1650_v35 = vperm.slane %v1539_v21, 6 }
 0x302   :  { %v1395_v44 = vpop.f32.mrf.mxu0 }
 0x303   :  { %v1396_v63 = vadd.f32 %v1395_v44, %v888_v54  ;;  %v1415_v5 = vpop.f32.mrf.mxu1 }
 0x305   :  { %v1416_v9 = vadd.f32 %v1415_v5, %v1396_v63 }
 0x309   :  { %v1435_v6 = vpop.f32.mrf.mxu2 }
 0x30a   :  { %v1436_v14 = vadd.f32 %v1435_v6, %v1416_v9  ;;  %v1455_v17 = vpop.f32.mrf.mxu3 }
 0x30c   :  { %v1456_v22 = vadd.f32 %v1455_v17, %v1436_v14 }
 0x30e   :  { %v1551_v27 = vsel %vm287_vm1, %v1456_v22, 0.0 }
 0x30f   :  { %v1552_v30 = vadd.f32 %v1551_v27, %v1550_v28  ;;  %v1644_v28 = vperm.slane %v1539_v21, 0 }
 0x324   :  { %v1475_v15 = vpop.f32.mrf.mxu0 }
 0x325   :  { %v1476_v19 = vadd.f32 %v1475_v15, %v889_v10  ;;  %v1495_v24 = vpop.f32.mrf.mxu1 }
 0x327   :  { %v1496_v48 = vadd.f32 %v1495_v24, %v1476_v19 }
 0x32b   :  { %v1515_v46 = vpop.f32.mrf.mxu2 }
 0x32c   :  { %v1516_v55 = vadd.f32 %v1515_v46, %v1496_v48  ;;  %v1535_v58 = vpop.f32.mrf.mxu3 }
 0x32e   :  { %v1536_v29 = vadd.f32 %v1535_v58, %v1516_v55 }
 0x330   :  { %v1553_v32 = vsel %vm287_vm1, %v1536_v29, 0.0 }
 0x331   :  { %v1554_v33 = vadd.f32 %v1553_v32, %v1552_v30  ;;  %v1646_v30 = vperm.slane %v1539_v21, 2  ;;  %v1647_v32 = vperm.slane %v1539_v21, 3 }
 0x333   :  { %1555 = vadd.xlane.f32.xlu1 %v1554_v33  ;;  %v1648_v33 = vperm.slane %v1539_v21, 4 }
 0x3a6   :  { %v1556_v43 = vpop.xlane.xlu1 %1555 }
 0x3a7   :  { %v1564_v50 = vmul.f32 %v1563_v42, %v1556_v43 }
 0x3a9   :  { %v2159_v51 = vsub.f32 %v976_v0, %v1564_v50  ;;  %v2161_v52 = vsub.f32 %v1056_v59, %v1564_v50  ;;  %v2163_v53 = vsub.f32 %v1136_v1, %v1564_v50  ;;  %v2165_v38 = vsub.f32 %v1216_v7, %v1564_v50 }
 0x3aa   :  { %v2167_v39 = vsub.f32 %v1296_v13, %v1564_v50  ;;  %v1570_v45 = vsub.f32 %v1376_v31, %v1564_v50  ;;  %v1571_v60 = vsub.f32 %v1456_v22, %v1564_v50  ;;  %v1572_v0 = vsub.f32 %v1536_v29, %v1564_v50  ;;  %v1538_v31 = vld [vmem:[#allocation13] sm:$0xff] }
 0x3ab   :  { %v1573_v47 = vmul.f32 %v2159_v51, %v2159_v51  ;;  %v1574_v54 = vmul.f32 %v2161_v52, %v2161_v52  ;;  %v1575_v44 = vmul.f32 %v2163_v53, %v2163_v53  ;;  %v1576_v49 = vmul.f32 %v2165_v38, %v2165_v38 }
 0x3ac   :  { %v1577_v61 = vmul.f32 %v2167_v39, %v2167_v39  ;;  %v1578_v1 = vmul.f32 %v1570_v45, %v1570_v45  ;;  %v1579_v4 = vmul.f32 %v1571_v60, %v1571_v60  ;;  %v1580_v7 = vmul.f32 %v1572_v0, %v1572_v0 }
 0x3ad   :  { %v1581_v56 = vsel %vm287_vm1, %v1573_v47, 0.0  ;;  %v1582_v57 = vsel %vm287_vm1, %v1574_v54, 0.0  ;;  %v1584_v62 = vsel %vm287_vm1, %v1575_v44, 0.0  ;;  %v1586_v2 = vsel %vm287_vm1, %v1576_v49, 0.0 }
 0x3ae   :  { %v1583_v59 = vadd.f32 %v1582_v57, %v1581_v56  ;;  %v1588_v5 = vsel %vm287_vm1, %v1577_v61, 0.0  ;;  %v1590_v8 = vsel %vm287_vm1, %v1578_v1, 0.0  ;;  %v1592_v10 = vsel %vm287_vm1, %v1579_v4, 0.0 }
 0x3af   :  { %v1594_v12 = vsel %vm287_vm1, %v1580_v7, 0.0  ;;  %v1619_v22 = vperm.slane %v1538_v31, 0  ;;  %v1620_v23 = vperm.slane %v1538_v31, 1  ;;  %v1621_v24 = vperm.slane %v1538_v31, 2 }
 0x3b0   :  { %v1585_v63 = vadd.f32 %v1584_v62, %v1583_v59  ;;  %v1622_v48 = vperm.slane %v1538_v31, 3  ;;  %v1623_v26 = vperm.slane %v1538_v31, 4  ;;  %v1624_v46 = vperm.slane %v1538_v31, 5 }
 0x3b1   :  { %v1625_v27 = vperm.slane %v1538_v31, 6  ;;  %v1626_v55 = vperm.slane %v1538_v31, 7  ;;  %v1645_v29 = vperm.slane %v1539_v21, 1 }
 0x3b2   :  { %v1587_v3 = vadd.f32 %v1586_v2, %v1585_v63 }
 0x3b4   :  { %v1589_v6 = vadd.f32 %v1588_v5, %v1587_v3 }
 0x3b6   :  { %v1591_v9 = vadd.f32 %v1590_v8, %v1589_v6 }
 0x3b8   :  { %v1593_v11 = vadd.f32 %v1592_v10, %v1591_v9 }
 0x3ba   :  { %v1595_v13 = vadd.f32 %v1594_v12, %v1593_v11 }
 0x3bc   :  { %1596 = vadd.xlane.f32.xlu1 %v1595_v13 }
 0x42f   :  { %v1597_v14 = vpop.xlane.xlu1 %1596 }
 0x430   :  { %v1598_v15 = vmul.f32 %v1597_v14, %v1563_v42 }
 0x432   :  { %v1599_v16 = vadd.f32 1e-05, %v1598_v15 }
 0x434   :  { %1736 = vrsqrt.f32 %v1599_v16  ;;  %vm1606_vm8 = vweird.f32 %v1599_v16 }
 0x43a   :  { %v1737_v17 = vpop.eup %1736 }
 0x43b   :  { %v1601_v18 = vmul.f32 %v1737_v17, %v1599_v16  ;;  %vm1607_vm7 = vweird.f32 %v1737_v17 }
 0x43c   :  { %vm1608_vm9 = vmor %vm1606_vm8, %vm1607_vm7 }
 0x43d   :  { %v1602_v19 = vmul.f32 %v1737_v17, %v1601_v18 }
 0x43f   :  { %v1603_v20 = vmul.f32 0.5, %v1602_v19 }
 0x441   :  { %v1604_v25 = vsub.f32 1.5, %v1603_v20 }
 0x443   :  { %v1605_v58 = vmul.f32 %v1737_v17, %v1604_v25 }
 0x445   :  { %v1609_v37 = vsel %vm1608_vm9, %v1737_v17, %v1605_v58 }
 0x446   :  { %v1610_v40 = vmul.f32 %v1609_v37, %v2159_v51  ;;  %v1611_v41 = vmul.f32 %v1609_v37, %v2161_v52  ;;  %v1612_v42 = vmul.f32 %v1609_v37, %v2163_v53  ;;  %v1613_v43 = vmul.f32 %v1609_v37, %v2165_v38 }
 0x447   :  { %v1614_v50 = vmul.f32 %v1609_v37, %v2167_v39  ;;  %v1615_v47 = vmul.f32 %v1609_v37, %v1570_v45  ;;  %v1616_v54 = vmul.f32 %v1609_v37, %v1571_v60  ;;  %v1617_v44 = vmul.f32 %v1609_v37, %v1572_v0 }
 0x448   :  { %v1635_v49 = vmul.f32 %v1619_v22, %v1610_v40  ;;  %v1636_v56 = vmul.f32 %v1620_v23, %v1611_v41  ;;  %v1637_v57 = vmul.f32 %v1621_v24, %v1612_v42  ;;  %v1638_v59 = vmul.f32 %v1622_v48, %v1613_v43 }
 0x449   :  { %v1639_v61 = vmul.f32 %v1623_v26, %v1614_v50  ;;  %v1640_v62 = vmul.f32 %v1624_v46, %v1615_v47  ;;  %v1641_v63 = vmul.f32 %v1625_v27, %v1616_v54  ;;  %v1642_v1 = vmul.f32 %v1626_v55, %v1617_v44 }
 0x44a   :  { %v1661_v51 = vadd.f32 %v1645_v29, %v1636_v56  ;;  %v1662_v52 = vadd.f32 %v1646_v30, %v1637_v57  ;;  %v1663_v2 = vadd.f32 %v1647_v32, %v1638_v59  ;;  %v1660_v39 = vadd.f32 %v1644_v28, %v1635_v49 }
 0x44b   :  { %v1665_v53 = vadd.f32 %v1649_v34, %v1640_v62  ;;  %v1666_v38 = vadd.f32 %v1650_v35, %v1641_v63  ;;  %v1667_v3 = vadd.f32 %v1651_v36, %v1642_v1  ;;  %v1664_v4 = vadd.f32 %v1648_v33, %v1639_v61 }
 0x44c   :  { %v1676_v45 = vrot.slane %v1661_v51, 6  ;;  %v1677_v60 = vrot.slane %v1662_v52, 4  ;;  %v1678_v0 = vrot.slane %v1663_v2, 2 }
 0x44d   :  { %v1679_v5 = vrot.slane %v1665_v53, 6  ;;  %v1680_v6 = vrot.slane %v1666_v38, 4  ;;  %v1681_v7 = vrot.slane %v1667_v3, 2 }
 0x44e   :  { %v1682_v8 = vsel %vm287_vm1, %v1660_v39, %v1676_v45  ;;  %v1684_v9 = vsel %vm1683_vm10, %v1677_v60, %v1678_v0 }
 0x44f   :  { %v1686_v10 = vsel %vm1685_vm11, %v1682_v8, %v1684_v9  ;;  %v1687_v11 = vsel %vm287_vm1, %v1664_v4, %v1679_v5  ;;  %v1688_v12 = vsel %vm1683_vm10, %v1680_v6, %v1681_v7 }
 0x450   :  { %v1689_v13 = vsel %vm1685_vm11, %v1687_v11, %v1688_v12  ;;  %1692 = vst [vmem:[%s2213_s9] sm:$0xff] %v1686_v10 }
 0x451   :  { %1693 = vst [vmem:[%s2213_s9 + $0x8] sm:$0xff] %v1689_v13 }
 0x452   :  { %1698 = vsyncpa [#allocation3], 1 }
 0x453   :  { %1699 = vsyncpa [#allocation5], 1 }
 0x454   :  { %1700 = vsyncpa [#allocation8], 1 }
 0x455   :  { %1701 = vsyncpa [#allocation11], 1 }
 0x456   :  { %1702 = vsyncpa [#allocation14], 1 }

// kernel: _lambda_.9
= control target key start
LH: loop header
LB: loop body
LE: loop exit
PB: predicated region body
PF: predicated region fallthrough
CT: control target
= control target key end

     0   :  { %s2248_s0 = inlined_call_operand.vmem [shape: f32[2,16,64], index: 0, kind: input, shape index: {}]   ;;  %s2249_s1 = inlined_call_operand.vmem [shape: f32[2,16,64], index: 1, kind: input, shape index: {}]   ;;  %s2250_s2 = inlined_call_operand.vmem [shape: f32[2,16,64], index: 2, kind: input, shape index: {}]   ;;  %s2251_s3 = inlined_call_operand.hbm [shape: f32[1,64], index: 3, kind: input, shape index: {}]   ;;  %s2252_s4 = inlined_call_operand.hbm [shape: f32[1,64], index: 4, kind: input, shape index: {}]   ;;  %s2253_s5 = inlined_call_operand.hbm [shape: f32[64,64], index: 5, kind: input, shape index: {}]   ;;  %s2254_s6 = inlined_call_operand.hbm [shape: f32[1,64], index: 6, kind: input, shape index: {}]   ;;  %s2255_s7 = inlined_call_operand.hbm [shape: f32[1,64], index: 7, kind: input, shape index: {}]   ;;  %s2256_s8 = inlined_call_operand.hbm [shape: f32[1,64], index: 8, kind: input, shape index: {}]   ;;  %s2257_s9 = inlined_call_operand.hbm [shape: f32[1,64], index: 9, kind: input, shape index: {}]   ;;  %s2258_s10 = inlined_call_operand.hbm [shape: f32[1,64], index: 10, kind: input, shape index: {}]   ;;  %s2259_s11 = inlined_call_operand.hbm [shape: f32[64,128], index: 11, kind: input, shape index: {}]   ;;  %s2260_s12 = inlined_call_operand.vmem [shape: f32[128,64], index: 12, kind: input, shape index: {}]   ;;  %s2261_s13 = inlined_call_operand.hbm [shape: f32[64,64], index: 13, kind: input, shape index: {}]   ;;  %s2262_s14 = inlined_call_operand.hbm [shape: f32[2,16,64], index: 14, kind: output, shape index: {}]  }
   0x1   :  { %2269 = sst [smem:[#allocation33_spill]] %s2251_s3 }
   0x2   :  { %2270 = sst [smem:[#allocation34_spill]] %s2252_s4 }
   0x3   :  { %2271 = sst [smem:[#allocation35_spill]] %s2254_s6 }
   0x4   :  { %2272 = sst [smem:[#allocation36_spill]] %s2256_s8 }
   0x5   :  { %19 = vsyncpa [#allocation3], 0 }
   0x6   :  { %20 = vsyncpa [#allocation6], 0 }
   0x7   :  { %21 = vsyncpa [#allocation9], 0 }
   0x8   :  { %22 = vsyncpa [#allocation12], 0 }
   0x9   :  { %23 = vsyncpa [#allocation15], 0 }
   0xa   :  { %24 = vsyncpa [#allocation18], 0 }
   0xb   :  { %25 = vsyncpa [#allocation4], 0 }
   0xc   :  { %27 = vsyncpa [#allocation4 + $0x1], 0  ;;  %s1936_s29 = smov 0   ;;  %s1938_s30 = smov 0  }
   0xd   :  { %s1940_s15 = smov 0   ;;  %s1942_s16 = smov 0  }
   0xe LB: > { %2273 = sst [smem:[#allocation27_spill]] %s1830_s29  ;;  %s1957_s17 = sadd.s32 4294967295, %s1842_s16   ;;  %s1842_s16 = sphi %s1942_s16, %s2292_s16   ;;  %s1838_s15 = sphi %s1940_s15, %s2297_s15   ;;  %s1834_s30 = sphi %s1938_s30, %s2296_s30   ;;  %s1830_s29 = sphi %s1936_s29, %s2295_s29  }
   0xf   : > { %2274 = sst [smem:[#allocation28_spill]] %s1838_s15  ;;  %s1236_s18 = sadd.s32 4294967294, %s1842_s16  }
  0x10   : > { %2275 = sst [smem:[#allocation29_spill]] %s1842_s16  ;;  %s1961_s19 = sadd.s32 1, %s1842_s16  }
  0x11   : > { %2276 = sst [smem:[#allocation30_spill]] %s1961_s19  ;;  %s349_s20 = sadd.s32 1, %s1838_s15 }
  0x12   : > { %s346_s21 = ssub.s32 %s1842_s16, %s1961_s19  ;;  %p359_p0 = scmp.ne.s32.totalorder %s1838_s15, %s1834_s30 }
  0x13   : > { %p347_p1 = scmp.eq.s32.totalorder %s346_s21, 0  ;;  %p360_p2 = scmp.eq.s32.totalorder %s1957_s17, 1 }
  0x14   : > { %p365_p3 = scmp.ne.s32.totalorder %s1834_s30, %s1830_s29  ;;  %p366_p4 = scmp.eq.s32.totalorder %s1236_s18, 1 }
  0x15   : > { %s1972_s22 = scalar_select %p347_p1, %s1838_s15, %s349_s20  }
  0x16   : > { %p1974_p5 = por %p360_p2, %p359_p0  ;;  %p1978_p6 = por %p366_p4, %p365_p3 }
  0x17   : > { %2277 = sst [smem:[#allocation31_spill]] %s1972_s22  ;;  %p1237_p7 = scmp.ge.s32.totalorder %s1842_s16, 1 }
  0x18   : > { %s2279_s24 = scalar_select %p1978_p6, 1, 0 }
  0x19   : > { %p373_p8 = scmp.lt.s32.totalorder %s1842_s16, 3  ;;  %p1356_p9 = scmp.eq.s32.totalorder %s1957_s17, 0 }
  0x1a   : > { %2280 = sst [smem:[#allocation32_spill]] %s2279_s24  ;;  %s1844_s18 = smov [#allocation5]  }
  0x1b   : > { %p1985_p10 = pnand %p1237_p7, %p373_p8  ;;  %s2282_s4 = sld [smem:[#allocation34_spill]] }
  0x1c   : > { %s399_s20 = sshll.u32 %s1844_s18, 4  ;;  %s2283_s6 = sld [smem:[#allocation35_spill]]  ;;  %s400_s20 = int_to_ptr.vmem [resolvable:$true] %s399_s20 }
  0x1d   : > { %p1321_p11 = pneg %p1985_p10  ;;  %s2285_s8 = sld [smem:[#allocation36_spill]] }
  0x1e   : > { %s1845_s24 = smov [#allocation8]   ;;  %s1846_s29 = smov [#allocation11]  }
  0x1f   : > { %p1999_p12 = pnand %p1356_p9, %p1321_p11  ;;  %s425_s18 = sshll.u32 %s1845_s24, 4  ;;  %s426_s18 = int_to_ptr.vmem [resolvable:$true] %s425_s18 }
  0x20   : > { %s449_s16 = sshll.u32 %s1846_s29, 4  ;;  %s1847_s26 = smov [#allocation14]   ;;  %s450_s16 = int_to_ptr.vmem [resolvable:$true] %s449_s16 }
  0x21   : > { %s397_s28 = sshll.u32 %s2282_s4, 4  ;;  %s473_s24 = sshll.u32 %s1847_s26, 4  ;;  %s398_s28 = int_to_ptr.hbm [resolvable:$true] %s397_s28  ;;  %s474_s24 = int_to_ptr.vmem [resolvable:$true] %s473_s24 }
  0x22   : > { %s423_s15 = sshll.u32 %s2283_s6, 4  ;;  %s471_s6 = sshll.u32 %s2258_s10, 4  ;;  %s424_s15 = int_to_ptr.hbm [resolvable:$true] %s423_s15  ;;  %s472_s6 = int_to_ptr.hbm [resolvable:$true] %s471_s6 }
  0x23   : > { %s447_s4 = sshll.u32 %s2285_s8, 4  ;;  %s2286_s3 = sld [smem:[#allocation33_spill]]  ;;  %s448_s4 = int_to_ptr.hbm [resolvable:$true] %s447_s4 }
  0x24   : > { %1327 = dma.hbm_to_vmem [thread:$0]  (!%p1999_p12), %s398_s28, 16, %s400_s20, [#allocation6]  }
  0x25   : > { %1333 = dma.hbm_to_vmem [thread:$0]  (!%p1999_p12), %s424_s15, 16, %s426_s18, [#allocation9]  }
  0x26   : > { %1339 = dma.hbm_to_vmem [thread:$0]  (!%p1999_p12), %s448_s4, 16, %s450_s16, [#allocation12]  }
  0x27   : > { %1345 = dma.hbm_to_vmem [thread:$0]  (!%p1999_p12), %s472_s6, 16, %s474_s24, [#allocation15]  }
  0x28   : > { %s408_s18 = sshll.u32 %s2253_s5, 4  ;;  %s1848_s29 = smov [#allocation2]   ;;  %s409_s18 = int_to_ptr.hbm [resolvable:$true] %s408_s18 }
  0x29   : > { %s385_s28 = sshll.u32 %s2286_s3, 4  ;;  %s387_s22 = sshll.u32 %s1848_s29, 4  ;;  %s386_s28 = int_to_ptr.hbm [resolvable:$true] %s385_s28  ;;  %s388_s22 = int_to_ptr.vmem [resolvable:$true] %s387_s22 }
  0x2a   : > { %1324 = dma.hbm_to_vmem [thread:$0]  (!%p1999_p12), %s386_s28, 16, %s388_s22, [#allocation3]  }
  0x2b   : > { %s1849_s4 = smov [#allocation7]   ;;  %s1850_s8 = smov 128  }
  0x2c   : > { %s410_s16 = sshll.u32 %s1849_s4, 4  ;;  %s1851_s21 = smov 8   ;;  %s411_s16 = int_to_ptr.vmem [resolvable:$true] %s410_s16 }
  0x2d   : > { %1330 = dma.hbm_to_vmem [thread:$0]  (!%p1999_p12), %s409_s18, 1024, %s411_s16, [#allocation6], %s1850_s8, %s1850_s8, %s1851_s21  }
  0x2e   : > { %s435_s24 = sshll.u32 %s2255_s7, 4  ;;  %s1852_s27 = smov [#allocation10]   ;;  %s436_s24 = int_to_ptr.hbm [resolvable:$true] %s435_s24 }
  0x2f   : > { %s437_s15 = sshll.u32 %s1852_s27, 4  ;;  %s459_s28 = sshll.u32 %s2257_s9, 4  ;;  %s438_s15 = int_to_ptr.vmem [resolvable:$true] %s437_s15  ;;  %s460_s28 = int_to_ptr.hbm [resolvable:$true] %s459_s28 }
  0x30   : > { %1336 = dma.hbm_to_vmem [thread:$0]  (!%p1999_p12), %s436_s24, 16, %s438_s15, [#allocation9]  }
  0x31   : > { %s1853_s22 = smov [#allocation13]   ;;  %s482_s6 = sshll.u32 %s2259_s11, 4  ;;  %s483_s6 = int_to_ptr.hbm [resolvable:$true] %s482_s6 }
  0x32   : > { %s461_s4 = sshll.u32 %s1853_s22, 4  ;;  %s499_s3 = sshll.u32 %s2261_s13, 4  ;;  %s462_s4 = int_to_ptr.vmem [resolvable:$true] %s461_s4  ;;  %s500_s3 = int_to_ptr.hbm [resolvable:$true] %s499_s3 }
  0x33   : > { %1342 = dma.hbm_to_vmem [thread:$0]  (!%p1999_p12), %s460_s28, 16, %s462_s4, [#allocation12]  }
  0x34   : > { %s1854_s20 = smov [#allocation16]   ;;  %s1855_s24 = smov [#allocation17]  }
  0x35   : > { %s484_s29 = sshll.u32 %s1854_s20, 4  ;;  %s501_s15 = sshll.u32 %s1855_s24, 4  ;;  %s485_s29 = int_to_ptr.vmem [resolvable:$true] %s484_s29  ;;  %s502_s15 = int_to_ptr.vmem [resolvable:$true] %s501_s15 }
  0x36   : > { %1348 = dma.hbm_to_vmem [thread:$0]  (!%p1999_p12), %s483_s6, 1024, %s485_s29, [#allocation15], %s1850_s8, %s1850_s8, %s1851_s21  }
  0x37   : > { %1351 = dma.hbm_to_vmem [thread:$0]  (!%p1999_p12), %s500_s3, 1024, %s502_s15, [#allocation18], %s1850_s8, %s1850_s8, %s1851_s21  }
  0x38   : > { %541 = sbr.rel (%p1985_p10) target bundleno = 1293 (0x50d), region = 76 }
  0x3d   : > { %1801 = dma.done.wait (%p1356_p9), [#allocation3], 16  }
  0x3e   : > { %1803 = vsyncadd (%p1356_p9), [#allocation3], 4294967280 }
  0x3f   : > { %1805 = dma.done.wait (%p1356_p9), [#allocation6], 1040  }
  0x40   : > { %1807 = vsyncadd (%p1356_p9), [#allocation6], 4294966256 }
  0x41   : > { %1809 = dma.done.wait (%p1356_p9), [#allocation9], 32  }
  0x42   : > { %1811 = vsyncadd (%p1356_p9), [#allocation9], 4294967264 }
  0x43   : > { %1813 = dma.done.wait (%p1356_p9), [#allocation12], 32  }
  0x44   : > { %1815 = vsyncadd (%p1356_p9), [#allocation12], 4294967264 }
  0x45   : > { %1817 = dma.done.wait (%p1356_p9), [#allocation15], 1040  }
  0x46   : > { %1819 = vsyncadd (%p1356_p9), [#allocation15], 4294966256 }
  0x47   : > { %1821 = dma.done.wait (%p1356_p9), [#allocation18], 1024  }
  0x48   : > { %1823 = vsyncadd (%p1356_p9), [#allocation18], 4294966272  ;;  %p643_p13 = scmp.lt.s32.totalorder %s1957_s17, 1  ;;  %vm661_vm0 = vcmask 261120   ;;  %s1856_s28 = smov 96   ;;  %v1857_v4 = vmov 32.0  }
  0x49   : > { %1432 = vrcp.f32 %v1857_v4  ;;  %v799_v42 = vld [vmem:[#allocation7 + $0x30] sm:$0xff]  ;;  %v800_v43 = vld [vmem:[#allocation7 + $0x38] sm:$0xff]  ;;  %v797_v46 = vld [vmem:[#allocation7 + $0x20] sm:$0xff]  ;;  %vm806_vm14 = vcmask 523264   ;;  %s640_s6 = sand.u32 1, %s1834_s30   ;;  %s1278_s27 = sshll.u32 %s1957_s17, 4 }
  0x4a   : > { %s644_s3 = scalar_select %p643_p13, %s1957_s17, 1  ;;  %v805_v44 = vpack.c.bf16 %v800_v43, %v799_v42  ;;  %v798_v47 = vld [vmem:[#allocation7 + $0x28] sm:$0xff]  ;;  %v795_v50 = vld [vmem:[#allocation7 + $0x10] sm:$0xff]  ;;  %v796_v51 = vld [vmem:[#allocation7 + $0x18] sm:$0xff] }
  0x4b   : > { %v804_v48 = vpack.c.bf16 %v798_v47, %v797_v46  ;;  %v803_v53 = vpack.c.bf16 %v796_v51, %v795_v50  ;;  %v793_v54 = vld [vmem:[#allocation7] sm:$0xff]  ;;  %v794_v55 = vld [vmem:[#allocation7 + $0x8] sm:$0xff]  ;;  %v1858_v51 = vmov 64.0   ;;  %s1048_s24 = scalar_lea.hbm %s2262_s14, %s1278_s27  ;;  %s1037_s17 = scalar_lea.sflag [#allocation4], %s640_s6 }
  0x4c   : > { %s2075_s19 = sshll.u32 %s644_s3, 4  ;;  %814 = vmatpush.bf16.msra.mxu0 %v805_v44  ;;  %v802_v59 = vpack.c.bf16 %v794_v55, %v793_v54  ;;  %s1776_s22 = scalar_lea.hbm %s2262_s14, 32 }
  0x4d   : > { %s647_s21 = scalar_lea.vmem %s2248_s0, %s2075_s19  ;;  %s652_s18 = scalar_lea.vmem %s2249_s1, %s2075_s19 }
  0x4e   : > { %v659_v0 = vld [vmem:[%s647_s21] sm:$0xff]  ;;  %v660_v2 = vld [vmem:[%s647_s21 + $0x8] sm:$0xff]  ;;  %s657_s26 = scalar_lea.vmem %s2250_s2, %s2075_s19  ;;  %s1051_s19 = sshll.u32 %s1048_s24, 4  ;;  %s1052_s19 = int_to_ptr.hbm [resolvable:$true] %s1051_s19 }
  0x4f   : > { %715 = vrot.lane.b32.xlu0 %v659_v0, %s1856_s28  ;;  %v662_v1 = vsel %vm661_vm0, %v659_v0, 0.0  ;;  %v665_v3 = vsel %vm661_vm0, %v660_v2, 0.0  ;;  %v1433_v5 = vpop.eup %1432  ;;  %v788_v47 = vld [vmem:[%s657_s26 + $0x8] sm:$0xff]  ;;  %s1770_s25 = sshra.s32 %s1052_s19, 4  ;;  %s1771_s25 = int_to_ptr.hbm [resolvable:$true] %s1770_s25 }
  0x50   : > { %663 = vadd.xlane.f32.xlu2 %v662_v1  ;;  %v669_v6 = vmul.f32 32.0, %v1433_v5  ;;  %vm673_vm1 = vweird.f32 %v1433_v5  ;;  %815 = vmatpush.bf16.msra.mxu0 %v804_v48  ;;  %s1772_s8 = scalar_lea.hbm %s1771_s25, 16  ;;  %p1777_p3 = scmp.lt.s32.totalorder %s1771_s25, %s2262_s14 }
  0x51   : > { %p1773_p0 = scmp.ne.s32.totalorder %s1771_s25, %s1772_s8  ;;  %p1778_p4 = scmp.lt.s32.totalorder %s1776_s22, %s1772_s8 }
  0x52   : > { %v670_v7 = vsub.f32 1.0, %v669_v6 }
  0x53   : > { %p1774_p1 = pnand %p1773_p0, %p1974_p5  ;;  %p1779_p7 = por %p1778_p4, %p1777_p3 }
  0x54   : > { %v671_v8 = vmul.f32 %v1433_v5, %v670_v7  ;;  %816 = vmatpush.bf16.msra.mxu0 %v803_v53 }
  0x55   : > { %p1775_p2 = pneg %p1774_p1 }
  0x56   : > { %v672_v9 = vadd.f32 %v1433_v5, %v671_v8 }
  0x57   : > { %717 = vrot.lane.b32.xlu0 %v660_v2, %s1856_s28  ;;  %p1780_p8 = pnand %p1779_p7, %p1775_p2 }
  0x58   : > { %666 = vadd.xlane.f32.xlu2 %v665_v3  ;;  %v2085_v11 = vsel %vm673_vm1, %v1433_v5, %v672_v9  ;;  %817 = vmatpush.bf16.msra.mxu0 %v802_v59 }
  0xc1   : > { %v716_v10 = vpop.permute.xlu0 %715 }
  0xc2   : > { %v721_v12 = vsel %vm661_vm0, %v716_v10, 0.0 }
  0xc3   : > { %722 = vadd.xlane.f32.xlu1 %v721_v12  ;;  %v664_v13 = vpop.xlane.xlu2 %663 }
  0xc4   : > { %v675_v14 = vmul.f32 %v2085_v11, %v664_v13 }
  0xc6   : > { %v2089_v15 = vsub.f32 %v659_v0, %v675_v14 }
  0xc8   : > { %v679_v16 = vmul.f32 %v2089_v15, %v2089_v15 }
  0xc9   : > { %v718_v17 = vpop.permute.xlu0 %717 }
  0xca   : > { %v724_v18 = vsel %vm661_vm0, %v718_v17, 0.0  ;;  %v681_v19 = vsel %vm661_vm0, %v679_v16, 0.0 }
  0xcb   : > { %725 = vadd.xlane.f32.xlu1 %v724_v18  ;;  %682 = vadd.xlane.f32.xlu2 %v681_v19  ;;  %v667_v28 = vpop.xlane.xlu2 %666 }
  0xcc   : > { %v676_v29 = vmul.f32 %v2085_v11, %v667_v28  ;;  %v1426_v28 = vld [vmem:[#allocation2] ss:$0 sm:$0xff] }
  0xce   : > { %v2108_v30 = vsub.f32 %v660_v2, %v676_v29 }
  0xd0   : > { %v680_v31 = vmul.f32 %v2108_v30, %v2108_v30 }
  0xd2   : > { %v684_v32 = vsel %vm661_vm0, %v680_v31, 0.0 }
 0x136   : > { %v723_v20 = vpop.xlane.xlu1 %722 }
 0x137   : > { %v727_v21 = vmul.f32 %v723_v20, %v2085_v11 }
 0x139   : > { %v2096_v22 = vsub.f32 %v659_v0, %v727_v21 }
 0x13b   : > { %v731_v23 = vmul.f32 %v2096_v22, %v2096_v22 }
 0x13d   : > { %735 = vrot.lane.b32.xlu0 %v731_v23, %s1856_s28 }
 0x13e   : > { %v726_v24 = vpop.xlane.xlu1 %725  ;;  %v683_v37 = vpop.xlane.xlu2 %682 }
 0x13f   : > { %v728_v25 = vmul.f32 %v726_v24, %v2085_v11  ;;  %v687_v38 = vmul.f32 %v683_v37, %v2085_v11 }
 0x141   : > { %v2102_v26 = vsub.f32 %v660_v2, %v728_v25  ;;  %v689_v39 = vadd.f32 0.00064, %v687_v38 }
 0x143   : > { %v732_v27 = vmul.f32 %v2102_v26, %v2102_v26  ;;  %1434 = vrsqrt.f32 %v689_v39  ;;  %vm697_vm2 = vweird.f32 %v689_v39 }
 0x145   : > { %737 = vrot.lane.b32.xlu1 %v732_v27, %s1856_s28 }
 0x149   : > { %v1435_v49 = vpop.eup %1434 }
 0x14a   : > { %v692_v56 = vmul.f32 %v1435_v49, %v689_v39  ;;  %vm698_vm3 = vweird.f32 %v1435_v49  ;;  %v789_v39 = vld [vmem:[%s652_s18] sm:$0xff] }
 0x14b   : > { %vm2119_vm4 = vmor %vm697_vm2, %vm698_vm3 }
 0x14c   : > { %v693_v61 = vmul.f32 %v1435_v49, %v692_v56 }
 0x14e   : > { %v694_v0 = vmul.f32 0.5, %v693_v61 }
 0x150   : > { %v695_v6 = vsub.f32 1.5, %v694_v0 }
 0x152   : > { %v696_v10 = vmul.f32 %v1435_v49, %v695_v6  ;;  %v996_v6 = vld [vmem:[#allocation17 + $0x30] sm:$0xff] }
 0x154   : > { %v700_v18 = vsel %vm2119_vm4, %v1435_v49, %v696_v10 }
 0x155   : > { %v711_v25 = vmul.f32 %v700_v18, %v2089_v15  ;;  %v995_v18 = vld [vmem:[#allocation17 + $0x28] sm:$0xff] }
 0x167   : > { %685 = vadd.xlane.f32.xlu0 %v684_v32 }
 0x1af   : > { %v736_v33 = vpop.permute.xlu0 %735 }
 0x1b0   : > { %v741_v34 = vsel %vm661_vm0, %v736_v33, 0.0 }
 0x1b1   : > { %742 = vadd.xlane.f32.xlu2 %v741_v34 }
 0x1b7   : > { %v738_v35 = vpop.permute.xlu1 %737 }
 0x1b8   : > { %v744_v36 = vsel %vm661_vm0, %v738_v35, 0.0  ;;  %v1427_v35 = vld [vmem:[#allocation5] ss:$0 sm:$0xff] }
 0x1b9   : > { %745 = vadd.xlane.f32.xlu2 %v744_v36 }
 0x1da   : > { %v686_v40 = vpop.xlane.xlu0 %685 }
 0x1db   : > { %v688_v41 = vmul.f32 %v686_v40, %v2085_v11  ;;  %v790_v40 = vld [vmem:[%s652_s18 + $0x8] sm:$0xff] }
 0x1dd   : > { %v690_v45 = vadd.f32 0.00064, %v688_v41 }
 0x1df   : > { %1436 = vrsqrt.f32 %v690_v45  ;;  %vm707_vm8 = vweird.f32 %v690_v45 }
 0x1e5   : > { %v1437_v60 = vpop.eup %1436 }
 0x1e6   : > { %v702_v62 = vmul.f32 %v1437_v60, %v690_v45  ;;  %vm708_vm9 = vweird.f32 %v1437_v60 }
 0x1e7   : > { %vm709_vm10 = vmor %vm707_vm8, %vm708_vm9 }
 0x1e8   : > { %v703_v4 = vmul.f32 %v1437_v60, %v702_v62 }
 0x1ea   : > { %v704_v8 = vmul.f32 0.5, %v703_v4  ;;  %v923_v4 = vld [vmem:[#allocation16 + $0x30] sm:$0xff] }
 0x224   : > { %v743_v52 = vpop.xlane.xlu2 %742 }
 0x225   : > { %v747_v57 = vmul.f32 %v743_v52, %v2085_v11 }
 0x227   : > { %v749_v58 = vadd.f32 0.00064, %v747_v57 }
 0x229   : > { %1438 = vrsqrt.f32 %v749_v58  ;;  %vm757_vm6 = vweird.f32 %v749_v58 }
 0x22c   : > { %v746_v63 = vpop.xlane.xlu2 %745 }
 0x22d   : > { %v748_v1 = vmul.f32 %v746_v63, %v2085_v11  ;;  %v705_v11 = vsub.f32 1.5, %v704_v8  ;;  %v997_v8 = vld [vmem:[#allocation17 + $0x38] sm:$0xff] }
 0x22e   : > { %v1002_v10 = vpack.c.bf16 %v997_v8, %v996_v6 }
 0x22f   : > { %v1439_v2 = vpop.eup %1438  ;;  %v750_v3 = vadd.f32 0.00064, %v748_v1  ;;  %v706_v23 = vmul.f32 %v1437_v60, %v705_v11  ;;  %v994_v11 = vld [vmem:[#allocation17 + $0x20] sm:$0xff] }
 0x230   : > { %v752_v5 = vmul.f32 %v1439_v2, %v749_v58  ;;  %vm758_vm5 = vweird.f32 %v1439_v2  ;;  %1010 = vmatpush.bf16.msra.mxu3 %v1002_v10 }
 0x231   : > { %1440 = vrsqrt.f32 %v750_v3  ;;  %vm759_vm7 = vmor %vm757_vm6, %vm758_vm5  ;;  %v710_v31 = vsel %vm709_vm10, %v1437_v60, %v706_v23  ;;  %vm767_vm12 = vweird.f32 %v750_v3  ;;  %v992_v23 = vld [vmem:[#allocation17 + $0x10] sm:$0xff]  ;;  %vm892_vm6 = vcmask 1040384  }
 0x232   : > { %v753_v7 = vmul.f32 %v1439_v2, %v752_v5  ;;  %1442 = vrcp.f32 %v1858_v51  ;;  %v924_v5 = vld [vmem:[#allocation16 + $0x38] sm:$0xff]  ;;  %v962_v51 = vld [vmem:[%s2260_s12 + $0x58] sm:$0xff] }
 0x234   : > { %v754_v9 = vmul.f32 0.5, %v753_v7  ;;  %v929_v7 = vpack.c.bf16 %v924_v5, %v923_v4  ;;  %v889_v5 = vld [vmem:[#allocation11] sm:$0x1] }
 0x236   : > { %v755_v13 = vsub.f32 1.5, %v754_v9  ;;  %937 = vmatpush.bf16.msra.mxu1 %v929_v7 }
 0x237   : > { %v1441_v14 = vpop.eup %1440 }
 0x238   : > { %v756_v16 = vmul.f32 %v1439_v2, %v755_v13  ;;  %v762_v17 = vmul.f32 %v1441_v14, %v750_v3  ;;  %vm768_vm11 = vweird.f32 %v1441_v14  ;;  %v1443_v52 = vpop.eup %1442  ;;  %v921_v13 = vld [vmem:[#allocation16 + $0x20] sm:$0xff] }
 0x239   : > { %vm769_vm13 = vmor %vm767_vm12, %vm768_vm11  ;;  %v835_v53 = vmul.f32 64.0, %v1443_v52  ;;  %vm839_vm15 = vweird.f32 %v1443_v52 }
 0x23a   : > { %v760_v19 = vsel %vm759_vm7, %v1439_v2, %v756_v16  ;;  %v763_v20 = vmul.f32 %v1441_v14, %v762_v17 }
 0x23b   : > { %v771_v21 = vmul.f32 %v760_v19, %v2096_v22  ;;  %v712_v22 = vmul.f32 %v710_v31, %v2108_v30  ;;  %v836_v54 = vsub.f32 1.0, %v835_v53  ;;  %v919_v19 = vld [vmem:[#allocation16 + $0x10] sm:$0xff]  ;;  %v990_v31 = vld [vmem:[#allocation17] sm:$0xff] }
 0x23c   : > { %v764_v24 = vmul.f32 0.5, %v763_v20  ;;  %v920_v20 = vld [vmem:[#allocation16 + $0x18] sm:$0xff] }
 0x23d   : > { %v773_v29 = vsel %vm661_vm0, %v711_v25, %v771_v21  ;;  %v837_v55 = vmul.f32 %v1443_v52, %v836_v54  ;;  %v1001_v21 = vpack.c.bf16 %v995_v18, %v994_v11  ;;  %v927_v25 = vpack.c.bf16 %v920_v20, %v919_v19 }
 0x23e   : > { %v765_v27 = vsub.f32 1.5, %v764_v24  ;;  %v779_v34 = vmul.f32 %v1426_v28, %v773_v29  ;;  %v993_v24 = vld [vmem:[#allocation17 + $0x18] sm:$0xff]  ;;  %v918_v29 = vld [vmem:[#allocation16 + $0x8] sm:$0xff] }
 0x23f   : > { %v838_v56 = vadd.f32 %v1443_v52, %v837_v55  ;;  %1011 = vmatpush.bf16.msra.mxu3 %v1001_v21  ;;  %v1429_v55 = vld [vmem:[#allocation10] ss:$0 sm:$0xff] }
 0x240   : > { %v766_v32 = vmul.f32 %v1441_v14, %v765_v27  ;;  %v785_v38 = vadd.f32 %v1427_v35, %v779_v34  ;;  %v1000_v27 = vpack.c.bf16 %v993_v24, %v992_v23 }
 0x241   : > { %v840_v57 = vsel %vm839_vm15, %v1443_v52, %v838_v56  ;;  %v1428_v52 = vld [vmem:[#allocation8] ss:$0 sm:$0xff] }
 0x242   : > { %v770_v33 = vsel %vm769_vm13, %v1441_v14, %v766_v32  ;;  %v791_v42 = vmul.f32 %v789_v39, %v785_v38  ;;  %v922_v14 = vld [vmem:[#allocation16 + $0x28] sm:$0xff] }
 0x243   : > { %v772_v36 = vmul.f32 %v770_v33, %v2102_v26  ;;  %v787_v26 = vld [vmem:[%s657_s26] sm:$0xff]  ;;  %v928_v17 = vpack.c.bf16 %v922_v14, %v921_v13  ;;  %v991_v32 = vld [vmem:[#allocation17 + $0x8] sm:$0xff]  ;;  %1012 = vmatpush.bf16.msra.mxu3 %v1000_v27  ;;  %v1431_v13 = vld [vmem:[#allocation14] ss:$0 sm:$0xff]  ;;  %s1260_s26 = sshll.u32 %s640_s6, 4 }
 0x244   : > { %s642_s15 = scalar_lea.vmem [#allocation19], %s1260_s26 }
 0x245   : > { %v774_v15 = vsel %vm661_vm0, %v712_v22, %v772_v36  ;;  %938 = vmatpush.bf16.msra.mxu1 %v928_v17  ;;  %v999_v22 = vpack.c.bf16 %v991_v32, %v990_v31  ;;  %v955_v32 = vld [vmem:[%s2260_s12 + $0x20] sm:$0xff]  ;;  %s1049_s3 = sshll.u32 %s642_s15, 4  ;;  %s1050_s3 = int_to_ptr.vmem [resolvable:$true] %s1049_s3 }
 0x246   : > { %v780_v37 = vmul.f32 %v1426_v28, %v774_v15  ;;  %v917_v28 = vld [vmem:[#allocation16] sm:$0xff] }
 0x247   : > { %1013 = vmatpush.bf16.msra.mxu3 %v999_v22  ;;  %v954_v22 = vld [vmem:[%s2260_s12 + $0x18] sm:$0xff] }
 0x248   : > { %v786_v41 = vadd.f32 %v1427_v35, %v780_v37  ;;  %v926_v35 = vpack.c.bf16 %v918_v29, %v917_v28  ;;  %v957_v28 = vld [vmem:[%s2260_s12 + $0x30] sm:$0xff]  ;;  %v958_v29 = vld [vmem:[%s2260_s12 + $0x38] sm:$0xff] }
 0x249   : > { %939 = vmatpush.bf16.msra.mxu1 %v927_v25  ;;  %v971_v31 = vpack.c.bf16 %v958_v29, %v957_v28 }
 0x24a   : > { %v792_v43 = vmul.f32 %v790_v40, %v786_v41  ;;  %v965_v40 = vld [vmem:[%s2260_s12 + $0x70] sm:$0xff]  ;;  %v966_v41 = vld [vmem:[%s2260_s12 + $0x78] sm:$0xff] }
 0x24c   : > { %v801_v44 = vpack.c.bf16 %v792_v43, %v791_v42  ;;  %v963_v42 = vld [vmem:[%s2260_s12 + $0x60] sm:$0xff]  ;;  %v975_v43 = vpack.c.bf16 %v966_v41, %v965_v40 }
 0x24d   : > { %940 = vmatpush.bf16.msra.mxu1 %v926_v35  ;;  %v953_v35 = vld [vmem:[%s2260_s12 + $0x10] sm:$0xff] }
 0x24e   : > { %1267 = vmatmul.msk.bf16.vlgmr.msra.gmra.mxu0 %vm806_vm14, %v801_v44  ;;  %v964_v44 = vld [vmem:[%s2260_s12 + $0x68] sm:$0xff]  ;;  %976 = vmatpush.bf16.msra.mxu2 %v975_v43 }
 0x2cb   : > { %v819_v30 = vpop.f32.mrf.mxu0 }
 0x2cc   : > { %v2140_v45 = vadd.f32 %v819_v30, %v787_v26 }
 0x2ce   : > { %v828_v46 = vsel %vm806_vm14, %v2140_v45, 0.0 }
 0x2cf   : > { %829 = vadd.xlane.f32.xlu2 %v828_v46  ;;  %v974_v46 = vpack.c.bf16 %v964_v44, %v963_v42 }
 0x2d1   : > { %977 = vmatpush.bf16.msra.mxu2 %v974_v46 }
 0x2d3   : > { %v821_v48 = vpop.f32.mrf.mxu0 }
 0x2d4   : > { %v2144_v49 = vadd.f32 %v821_v48, %v788_v47 }
 0x2d6   : > { %v831_v50 = vsel %vm806_vm14, %v2144_v49, 0.0 }
 0x2d7   : > { %832 = vadd.xlane.f32.xlu1 %v831_v50  ;;  %v961_v50 = vld [vmem:[%s2260_s12 + $0x50] sm:$0xff] }
 0x342   : > { %v830_v58 = vpop.xlane.xlu2 %829 }
 0x343   : > { %v841_v59 = vmul.f32 %v840_v57, %v830_v58 }
 0x345   : > { %v2149_v60 = vsub.f32 %v2140_v45, %v841_v59  ;;  %v959_v59 = vld [vmem:[%s2260_s12 + $0x40] sm:$0xff] }
 0x347   : > { %v845_v61 = vmul.f32 %v2149_v60, %v2149_v60 }
 0x349   : > { %v847_v62 = vsel %vm806_vm14, %v845_v61, 0.0  ;;  %v960_v61 = vld [vmem:[%s2260_s12 + $0x48] sm:$0xff] }
 0x34a   : > { %848 = vadd.xlane.f32.xlu2 %v847_v62  ;;  %v833_v63 = vpop.xlane.xlu1 %832 }
 0x34b   : > { %v842_v0 = vmul.f32 %v840_v57, %v833_v63 }
 0x34d   : > { %v2155_v1 = vsub.f32 %v2144_v49, %v842_v0 }
 0x34f   : > { %v846_v2 = vmul.f32 %v2155_v1, %v2155_v1 }
 0x351   : > { %v850_v3 = vsel %vm806_vm14, %v846_v2, 0.0  ;;  %v972_v2 = vpack.c.bf16 %v960_v61, %v959_v59 }
 0x352   : > { %851 = vadd.xlane.f32.xlu2 %v850_v3 }
 0x3bd   : > { %v849_v9 = vpop.xlane.xlu2 %848 }
 0x3be   : > { %v853_v12 = vmul.f32 %v849_v9, %v840_v57 }
 0x3c0   : > { %v855_v16 = vadd.f32 1e-05, %v853_v12  ;;  %v1430_v12 = vld [vmem:[#allocation13] ss:$0 sm:$0xff] }
 0x3c2   : > { %1444 = vrsqrt.f32 %v855_v16  ;;  %vm863_vm1 = vweird.f32 %v855_v16 }
 0x3c5   : > { %v852_v33 = vpop.xlane.xlu2 %851 }
 0x3c6   : > { %v854_v34 = vmul.f32 %v852_v33, %v840_v57  ;;  %v973_v57 = vpack.c.bf16 %v962_v51, %v961_v50  ;;  %v956_v33 = vld [vmem:[%s2260_s12 + $0x28] sm:$0xff] }
 0x3c8   : > { %v1445_v36 = vpop.eup %1444  ;;  %v856_v15 = vadd.f32 1e-05, %v854_v34  ;;  %978 = vmatpush.bf16.msra.mxu2 %v973_v57  ;;  %v970_v34 = vpack.c.bf16 %v956_v33, %v955_v32 }
 0x3c9   : > { %v858_v37 = vmul.f32 %v1445_v36, %v855_v16  ;;  %vm864_vm0 = vweird.f32 %v1445_v36 }
 0x3ca   : > { %1446 = vrsqrt.f32 %v856_v15  ;;  %vm865_vm2 = vmor %vm863_vm1, %vm864_vm0  ;;  %vm873_vm4 = vweird.f32 %v856_v15 }
 0x3cb   : > { %v859_v38 = vmul.f32 %v1445_v36, %v858_v37  ;;  %v952_v37 = vld [vmem:[%s2260_s12 + $0x8] sm:$0xff] }
 0x3cc   : > { %979 = vmatpush.bf16.msra.mxu2 %v972_v2 }
 0x3cd   : > { %v860_v39 = vmul.f32 0.5, %v859_v38 }
 0x3cf   : > { %v861_v26 = vsub.f32 1.5, %v860_v39 }
 0x3d0   : > { %v1447_v30 = vpop.eup %1446  ;;  %980 = vmatpush.bf16.msra.mxu2 %v971_v31 }
 0x3d1   : > { %v862_v47 = vmul.f32 %v1445_v36, %v861_v26  ;;  %v868_v48 = vmul.f32 %v1447_v30, %v856_v15  ;;  %vm874_vm3 = vweird.f32 %v1447_v30  ;;  %v951_v15 = vld [vmem:[%s2260_s12] sm:$0xff] }
 0x3d2   : > { %vm875_vm5 = vmor %vm873_vm4, %vm874_vm3  ;;  %v968_v38 = vpack.c.bf16 %v952_v37, %v951_v15 }
 0x3d3   : > { %v866_v53 = vsel %vm865_vm2, %v1445_v36, %v862_v47  ;;  %v869_v54 = vmul.f32 %v1447_v30, %v868_v48  ;;  %v969_v36 = vpack.c.bf16 %v954_v22, %v953_v35 }
 0x3d4   : > { %v877_v56 = vmul.f32 %v866_v53, %v2149_v60  ;;  %981 = vmatpush.bf16.msra.mxu2 %v970_v34 }
 0x3d5   : > { %v870_v58 = vmul.f32 0.5, %v869_v54 }
 0x3d6   : > { %v882_v62 = vmul.f32 %v1428_v52, %v877_v56 }
 0x3d7   : > { %v871_v63 = vsub.f32 1.5, %v870_v58 }
 0x3d8   : > { %v887_v0 = vadd.f32 %v1429_v55, %v882_v62  ;;  %982 = vmatpush.bf16.msra.mxu2 %v969_v36 }
 0x3d9   : > { %v872_v3 = vmul.f32 %v1447_v30, %v871_v63 }
 0x3da   : > { %v893_v60 = vrot.slane %v887_v0, 7 }
 0x3db   : > { %v876_v4 = vsel %vm875_vm5, %v1447_v30, %v872_v3 }
 0x3dc   : > { %v878_v6 = vmul.f32 %v876_v4, %v2155_v1  ;;  %v898_v8 = vsel %vm892_vm6, %v889_v5, %v893_v60  ;;  %983 = vmatpush.bf16.msra.mxu2 %v968_v38 }
 0x3dd   : > { %v899_v10 = vsub.f32 %v898_v8, %v887_v0 }
 0x3de   : > { %v883_v7 = vmul.f32 %v1428_v52, %v878_v6 }
 0x3df   : > { %v905_v17 = vmul.f32 %v1430_v12, %v899_v10  ;;  %v913_v18 = vmul.f32 %v1431_v13, %v899_v10 }
 0x3e0   : > { %v888_v9 = vadd.f32 %v1429_v55, %v883_v7 }
 0x3e1   : > { %v907_v21 = vadd.f32 %v905_v17, %v887_v0  ;;  %v915_v24 = vadd.f32 %v913_v18, %v887_v0 }
 0x3e2   : > { %v894_v14 = vrot.slane %v888_v9, 7 }
 0x3e4   : > { %v895_v11 = vsel %vm892_vm6, %v893_v60, %v894_v14 }
 0x3e5   : > { %v900_v16 = vsub.f32 %v895_v11, %v888_v9 }
 0x3e7   : > { %v906_v19 = vmul.f32 %v1430_v12, %v900_v16  ;;  %v914_v20 = vmul.f32 %v1431_v13, %v900_v16 }
 0x3e9   : > { %v908_v23 = vadd.f32 %v906_v19, %v888_v9  ;;  %v916_v25 = vadd.f32 %v914_v20, %v888_v9 }
 0x3eb   : > { %v925_v27 = vpack.c.bf16 %v908_v23, %v907_v21  ;;  %v998_v1 = vpack.c.bf16 %v916_v25, %v915_v24 }
 0x3ed   : > { %1268 = vmatmul.msk.bf16.vlgmr.msra.gmra.mxu1 %vm806_vm14, %v925_v27  ;;  %1269 = vmatmul.msk.bf16.vlgmr.msra.gmra.mxu3 %vm806_vm14, %v998_v1 }
 0x46a   : > { %v942_v39 = vpop.f32.mrf.mxu1 }
 0x46b   : > { %v947_v40 = vmax.f32 %v942_v39, 0.0 }
 0x46d   : > { %v949_v43 = vmul.f32 %v947_v40, %v947_v40 }
 0x470   : > { %v1015_v30 = vpop.f32.mrf.mxu3 }
 0x471   : > { %v1020_v46 = vsub.f32 0.0, %v1015_v30 }
 0x472   : > { %v944_v41 = vpop.f32.mrf.mxu1 }
 0x473   : > { %v948_v42 = vmax.f32 %v944_v41, 0.0  ;;  %v1022_v47 = vmul.f32 1.442695, %v1020_v46 }
 0x475   : > { %v950_v44 = vmul.f32 %v948_v42, %v948_v42  ;;  %1448 = vpow2.f32 %v1022_v47 }
 0x477   : > { %v967_v26 = vpack.c.bf16 %v950_v44, %v949_v43 }
 0x478   : > { %v1017_v48 = vpop.f32.mrf.mxu3 }
 0x479   : > { %984 = vmatmul.bf16.vlgmr.msra.gmra.mxu2 %v967_v26  ;;  %v1021_v50 = vsub.f32 0.0, %v1017_v48 }
 0x47b   : > { %v1024_v51 = vmul.f32 1.442695, %v1021_v50  ;;  %v1449_v52 = vpop.eup %1448 }
 0x47c   : > { %v1026_v53 = vadd.f32 1.0, %v1449_v52 }
 0x47d   : > { %1450 = vpow2.f32 %v1024_v51 }
 0x47e   : > { %1452 = vrcp.f32 %v1026_v53 }
 0x483   : > { %v1451_v54 = vpop.eup %1450 }
 0x484   : > { %v1027_v55 = vadd.f32 1.0, %v1451_v54  ;;  %v1453_v56 = vpop.eup %1452 }
 0x486   : > { %1454 = vrcp.f32 %v1027_v55 }
 0x48c   : > { %v1455_v61 = vpop.eup %1454 }
 0x4fc   : > { %v985_v57 = vpop.f32.mrf.mxu2 }
 0x4fd   : > { %v1030_v58 = vmul.f32 %v1453_v56, %v985_v57 }
 0x4ff   : > { %v1032_v59 = vadd.f32 %v1030_v58, %v2140_v45 }
 0x501   : > { %1034 = vst.msk [vmem:[%s642_s15] sm:$0xff] %vm806_vm14, %v1032_v59 }
 0x504   : > { %v987_v62 = vpop.f32.mrf.mxu2 }
 0x505   : > { %v1031_v63 = vmul.f32 %v1455_v61, %v987_v62 }
 0x507   : > { %v1033_v0 = vadd.f32 %v1031_v63, %v2144_v49 }
 0x509   : > { %1035 = vst.msk [vmem:[%s642_s15 + $0x8] sm:$0xff] %vm806_vm14, %v1033_v0 }
 0x50a   : > { %1783 = shalt.err (!%p1780_p8)
}
 0x50b   : > { %s1859_s16 = smov 128   ;;  %s1860_s6 = smov 8  }
 0x50c   : > { %1319 = dma.vmem_to_hbm [thread:$0]  (%p1974_p5), %s1050_s3, 256, %s1052_s19, %s1037_s17, %s1859_s16, %s1859_s16, %s1860_s6  }
 0x50d PF: > { %s2289_s26 = sld [smem:[#allocation29_spill]] }
 0x50e   : > { %s2290_s27 = sld [smem:[#allocation27_spill]] }
 0x513   : > { %p1376_p9 = scmp.ge.s32.totalorder %s2289_s26, 2 }
 0x514   : > { %s1066_s29 = sand.u32 1, %s2290_s27  }
 0x515   : > { %p1353_p10 = pnand %p1376_p9, %p1978_p6  ;;  %s1067_s24 = scalar_lea.sflag [#allocation4], %s1066_s29 }
 0x517   : > { %p1354_p11 = pneg %p1353_p10 }
 0x519   : > { %1825 = dma.done.wait (%p1354_p11), %s1067_s24, 256  }
 0x51a   : > { %1827 = vsyncadd (%p1354_p11), %s1067_s24, 4294967040  ;;  %s2292_s16 = sld [smem:[#allocation30_spill]]  ;;  %s2295_s29 = smov %s1834_s30 }
 0x51b   : > { %s2293_s15 = sld [smem:[#allocation28_spill]] }
 0x51c   : > { %s2294_s25 = sld [smem:[#allocation31_spill]] }
 0x520   : > { %p30_p12 = scmp.ge.s32.totalorder %s2292_s16, 4  }
 0x521   : > { %s2296_s30 = smov %s2293_s15 }
 0x522   : > { %s2297_s15 = smov %s2294_s25  ;;  %32 = sbr.rel (!%p30_p12) target bundleno = 14 (0xe), region = 158 }
 0x527   :  { %1073 = vsyncpa [#allocation3], 1 }
 0x528   :  { %1075 = vsyncpa [#allocation3 + $0x1], 1 }
 0x529   :  { %1076 = vsyncpa [#allocation6], 1 }
 0x52a   :  { %1077 = vsyncpa [#allocation9], 1 }
 0x52b   :  { %1078 = vsyncpa [#allocation12], 1 }
 0x52c   :  { %1079 = vsyncpa [#allocation15], 1 }
 0x52d   :  { %1080 = vsyncpa [#allocation18], 1 }
 0x52e   :  { %1081 = vsyncpa [#allocation4], 1 }
 0x52f   :  { %1083 = vsyncpa [#allocation4 + $0x1], 1 }

</bundles_post_ra>
